<compile_context>
chip_gen: v5e
topology: v5e:2x2
jax: 0.10.0
libtpu: 0.0.40
codegen_flags: <defaults>
</compile_context>

<pallas_src>
import jax
import jax.numpy as jnp
from jax.experimental import pallas as pl
from jax.experimental.pallas import tpu as pltpu


_LANE = 128
_SMALL_N = 64 * 1024                               # below this: skip pallas_call
_TARGET_COMBINED_BLOCK_BYTES = 6 * 1024 * 1024     # input + output bytes / step
_VMEM_LIMIT_BYTES = 32 * 1024 * 1024               # explicit, safe on v5e/v6e/v7x


def _scale_kernel(scalar_ref, x_ref, o_ref):
    # scalar_ref: (1,) float32 in SMEM.  One VPU vector-scalar multiply per
    # tile; cast to the (possibly promoted) output dtype.
    s = scalar_ref[0]
    o_ref[...] = (x_ref[...] * s).astype(o_ref.dtype)


def _sublane_multiple(dtype):
    # Min second-to-last-dim tiling by element width (32b: 8, 16b: 16, 8b: 32).
    itemsize = jnp.dtype(dtype).itemsize
    return {4: 8, 2: 16, 1: 32}.get(itemsize, 8)


def _scale_2d(x2d, scalar_f32, out_dtype):
    """Pipelined streaming multiply over a lane-dense (rows, cols) slab."""
    rows, cols = x2d.shape
    sub = _sublane_multiple(x2d.dtype)
    in_item = jnp.dtype(x2d.dtype).itemsize
    out_item = jnp.dtype(out_dtype).itemsize

    # Size blocks by combined in+out bytes so a promoted (wider) output can't
    # blow the double-buffered VMEM budget (e.g. bf16 x * f32 scalar -> f32).
    bytes_per_row = cols * (in_item + out_item)
    block_rows = (_TARGET_COMBINED_BLOCK_BYTES // bytes_per_row) // sub * sub
    block_rows = max(sub, block_rows)
    if block_rows >= rows:
        block_rows = rows      # single full-extent block (valid even if rows % sub != 0)
    grid = (pl.cdiv(rows, block_rows),)

    return pl.pallas_call(
        _scale_kernel,
        out_shape=jax.ShapeDtypeStruct((rows, cols), out_dtype),
        grid_spec=pltpu.PrefetchScalarGridSpec(
            num_scalar_prefetch=0,
            grid=grid,
            in_specs=[
                pl.BlockSpec(memory_space=pltpu.SMEM),               # scalar param
                pl.BlockSpec((block_rows, cols), lambda i: (i, 0)),
            ],
            out_specs=pl.BlockSpec((block_rows, cols), lambda i: (i, 0)),
        ),
        compiler_params=pltpu.CompilerParams(
            dimension_semantics=("parallel",),       # megacore split on v7x
            vmem_limit_bytes=_VMEM_LIMIT_BYTES,
        ),
    )(scalar_f32, x2d)


def scale_by_param(x, scalar):
    """out = x * scalar  (scalar: shape-(1,) learnable parameter)."""
    orig_shape = x.shape
    out_dtype = jnp.result_type(x.dtype, scalar.dtype)
    n = x.size

    # Fast paths: tiny tensors (launch overhead dominates), ragged sizes
    # (n % 128 != 0: XLA's fused multiply is already 1-read/1-write optimal,
    # strictly better than any pad/slice/concat around a kernel), and integer
    # inputs (preserve exact promotion; kernel path multiplies in f32).
    # TODO(synk): cover the ragged tail in-kernel with a masked pltpu.store if
    # a Pallas-only path for non-128-multiple sizes is ever required.
    if (n < _SMALL_N or n % _LANE != 0
            or not jnp.issubdtype(x.dtype, jnp.floating)):
        return (x * scalar.reshape(())).astype(out_dtype).reshape(orig_shape)

    # Zero-copy: metadata-only reshape of the flat tensor to a lane-dense
    # (rows, cols) slab with the widest column width that divides n.
    cols = _LANE
    for c in (1024, 512, 256):
        if n % c == 0:
            cols = c
            break
    rows = n // cols

    scalar_f32 = scalar.reshape((1,)).astype(jnp.float32)
    out2d = _scale_2d(x.reshape(rows, cols), scalar_f32, out_dtype)
    return out2d.reshape(orig_shape)


if __name__ == "__main__":
    key = jax.random.PRNGKey(0)

    # Deterministic parameter init, matching nn.Parameter(torch.ones(1)).
    scalar = jnp.ones((1,), dtype=jnp.float32)

    # Primary small NCHW input consistent with a conv-style pipeline
    # (takes the small-tensor fast path by design).
    x = jax.random.normal(key, (2, 4, 16, 16), dtype=jnp.float32)
    out = jax.block_until_ready(scale_by_param(x, scalar))
    ref = x * scalar
    assert out.shape == x.shape and out.dtype == ref.dtype
    assert jnp.allclose(out, ref, atol=1e-6), "mismatch vs reference (small)"

    # Large 128-aligned input: exercises the pipelined Pallas kernel with a
    # multi-block grid (grid=(2,), partial final block).
    k1, k2 = jax.random.split(key)
    x_big = jax.random.normal(k1, (16, 64, 32, 32), dtype=jnp.float32)
    s_half = scalar * 0.5
    out_big = jax.block_until_ready(scale_by_param(x_big, s_half))
    assert out_big.shape == x_big.shape
    assert jnp.allclose(out_big, x_big * s_half, atol=1e-6), \
        "mismatch vs reference (tiled kernel)"

    # Ragged size: routed to the fused-XLA fallback; semantics preserved.
    x_odd = jax.random.normal(k2, (2, 5, 19, 17), dtype=jnp.float32)
    s_two = scalar * 2.0
    out_odd = jax.block_until_ready(scale_by_param(x_odd, s_two))
    assert jnp.allclose(out_odd, x_odd * s_two, atol=1e-6), \
        "mismatch vs reference (ragged fallback)"

    print("KERNEL_OK")
</pallas_src>

<mosaic_0001>
module attributes {stable_mosaic.version = 11 : i64} {
  func.func @_scale_kernel(%arg0: i32, %arg1: memref<1xf32, #tpu.memory_space<smem>>, %arg2: memref<768x1024xf32, #tpu.memory_space<vmem>>, %arg3: memref<768x1024xf32, #tpu.memory_space<vmem>>) attributes {dimension_semantics = [#tpu.dimension_semantics<parallel>], iteration_bounds = array<i64: 2>, scalar_prefetch = 0 : i64, scratch_operands = 0 : i64, tpu.core_type = #tpu.core_type<tc>, window_params = [{transform_indices = @transform_0, window_bounds = array<i64: 1>}, {transform_indices = @transform_1, window_bounds = array<i64: 768, 1024>}, {transform_indices = @transform_2, window_bounds = array<i64: 768, 1024>}]} {
    %c0 = arith.constant 0 : index
    %0 = memref.load %arg1[%c0] : memref<1xf32, #tpu.memory_space<smem>>
    %c0_0 = arith.constant 0 : index
    %c0_1 = arith.constant 0 : index
    %1 = vector.load %arg2[%c0_0, %c0_1] : memref<768x1024xf32, #tpu.memory_space<vmem>>, vector<768x1024xf32>
    %2 = vector.broadcast %0 : f32 to vector<768x1024xf32>
    %3 = arith.mulf %1, %2 : vector<768x1024xf32>
    %c0_2 = arith.constant 0 : index
    %c0_3 = arith.constant 0 : index
    %4 = vector.load %arg3[%c0_2, %c0_3] : memref<768x1024xf32, #tpu.memory_space<vmem>>, vector<768x1024xf32>
    tpu.vector_store %arg3[%c0_2, %c0_3], %3 {strides = array<i32>} : memref<768x1024xf32, #tpu.memory_space<vmem>>, vector<768x1024xf32>,
    return
  }
  func.func @transform_0(%arg0: i32) -> i32 {
    %c0_i32 = arith.constant 0 : i32
    %c0_i32_0 = arith.constant 0 : i32
    return %c0_i32 : i32
  }
  func.func @transform_1(%arg0: i32) -> (i32, i32) {
    %c0_i32 = arith.constant 0 : i32
    %c0_i32_0 = arith.constant 0 : i32
    return %arg0, %c0_i32 : i32, i32
  }
  func.func @transform_2(%arg0: i32) -> (i32, i32) {
    %c0_i32 = arith.constant 0 : i32
    %c0_i32_0 = arith.constant 0 : i32
    return %arg0, %c0_i32 : i32, i32
  }
}

</mosaic_0001>

<bundles_post_ra>
// kernel: tpu_custom_call.1
= control target key start
LH: loop header
LB: loop body
LE: loop exit
PB: predicated region body
PF: predicated region fallthrough
CT: control target
= control target key end

     0   :  { %s5289_s0 = inlined_call_operand.<no memory space> [shape: f32[1], index: 0, kind: input, shape index: {}]   ;;  %s5290_s1 = inlined_call_operand.hbm [shape: f32[1024,1024], index: 1, kind: input, shape index: {}]   ;;  %s5291_s2 = inlined_call_operand.hbm [shape: f32[1024,1024], index: 2, kind: output, shape index: {}]  }
   0x1   :  { %7 = sst [smem:[#allocation2]] %s5289_s0 }
   0x2   :  { %8 = vsyncpa [#allocation4], 0 }
   0x3   :  { %10 = vsyncpa [#allocation4 + $0x1], 0 }
   0x4   :  { %11 = vsyncpa [#allocation5], 0 }
   0x5   :  { %13 = vsyncpa [#allocation5 + $0x1], 0  ;;  %s2805_s11 = smov 0   ;;  %s2807_s12 = smov 0  }
   0x6   :  { %s2809_s13 = smov 0   ;;  %s2811_s14 = smov 0  }
   0x7 LB: > { %s2826_s0 = sadd.s32 4294967295, %s2779_s14   ;;  %s2590_s15 = sadd.s32 4294967294, %s2779_s14   ;;  %s2779_s14 = sphi %s2811_s14, %s5302_s14   ;;  %s2775_s13 = sphi %s2809_s13, %s5301_s13   ;;  %s2771_s12 = sphi %s2807_s12, %s5300_s12   ;;  %s2767_s11 = sphi %s2805_s11, %s5299_s11  }
   0x8   : > { %s2830_s16 = sadd.s32 1, %s2779_s14   ;;  %s47_s17 = sadd.s32 1, %s2775_s13 }
   0x9   : > { %s44_s18 = ssub.s32 %s2779_s14, %s2830_s16  ;;  %p54_p0 = scmp.ne.s32.totalorder %s2775_s13, %s2771_s12 }
   0xa   : > { %p45_p1 = scmp.eq.s32.totalorder %s44_s18, 0  ;;  %p55_p2 = scmp.eq.s32.totalorder %s2779_s14, 0 }
   0xb   : > { %p60_p3 = scmp.ne.s32.totalorder %s2771_s12, %s2767_s11  ;;  %p61_p4 = scmp.eq.s32.totalorder %s2826_s0, 0 }
   0xc   : > { %s2842_s19 = scalar_select %p45_p1, %s2775_s13, %s47_s17  }
   0xd   : > { %p56_p5 = por %p55_p2, %p54_p0  ;;  %p2844_p6 = por %p61_p4, %p60_p3 }
   0xe   : > { %p84_p7 = scmp.eq.s32.totalorder %s2826_s0, 1  ;;  %p90_p8 = scmp.eq.s32.totalorder %s2590_s15, 1 }
   0xf   : > { %p5292_p11 = scmp.ge.s32.totalorder %s2779_s14, 2 }
  0x10   : > { %p2849_p9 = por %p84_p7, %p54_p0  ;;  %p2853_p10 = por %p90_p8, %p60_p3 }
  0x11   : > { %109 = sbr.rel (%p5292_p11) target bundleno = 60 (0x3c), region = 20 }
  0x16   : > { %112 = sbr.rel (!%p56_p5) target bundleno = 60 (0x3c), region = 24  ;;  %s113_s23 = sand.u32 (%p56_p5), 1, %s2775_s13  }
  0x17   : > { %s118_s24 = smul.u32 (%p56_p5), 96, %s2779_s14  ;;  %s2865_s30 = scalar_lea.sflag (%p56_p5), [#allocation4], %s113_s23 }
  0x18   : > { %s2618_s25 = smul.u32 (%p56_p5), 6144, %s113_s23 }
  0x19   : > { %s119_s26 = ssub.s32 (%p56_p5), 128, %s118_s24 }
  0x1a   : > { %p120_p12 = scmp.lt.s32.totalorder (%p56_p5), %s119_s26, 96  ;;  %s117_s3 = scalar_lea.vmem (%p56_p5), [#allocation3], %s2618_s25 }
  0x1c   : > { %s5304_s26 = smov (!%p120_p12, %s119_s26), 96 }
  0x1d   : > { %s2610_s27 = sshll.u32 %s5304_s26, 6 }
  0x1e   : > { %s124_s28 = ssub.s32 6144, %s2610_s27 }
  0x1f   : > { %s125_s29 = sshll.u32 %s124_s28, 4 }
  0x20   : > { %126 = vsyncadd %s2865_s30, %s125_s29  ;;  %p2868_p13 = scmp.ne.s32.totalorder %s2610_s27, 0  ;;  %s2616_s5 = smul.u32 6144, %s2779_s14 }
  0x21   : > { %s2873_s6 = sshll.u32 %s117_s3, 4  ;;  %s2599_s7 = sshll.u32 %s5304_s26, 10  ;;  %s135_s6 = int_to_ptr.vmem [resolvable:$true] %s2873_s6 }
  0x22   : > { %s130_s10 = scalar_lea.hbm %s5290_s1, %s2616_s5  ;;  %s2665_s18 = sshrl.u32 %s2599_s7, 4 }
  0x23   : > { %s132_s15 = sshll.u32 %s130_s10, 4  ;;  %s2674_s27 = scalar_lea.hbm %s5290_s1, 8192  ;;  %s2880_s15 = int_to_ptr.hbm [resolvable:$true] %s132_s15 }
  0x24   : > { %s2663_s17 = sshra.s32 %s2880_s15, 4  ;;  %s2664_s17 = int_to_ptr.hbm [resolvable:$true] %s2663_s17 }
  0x25   : > { %s2670_s23 = scalar_lea.hbm %s2664_s17, %s2665_s18  ;;  %p2675_p3 = scmp.lt.s32.totalorder %s2664_s17, %s5290_s1 }
  0x26   : > { %p2671_p0 = scmp.ne.s32.totalorder %s2664_s17, %s2670_s23  ;;  %p2676_p4 = scmp.lt.s32.totalorder %s2674_s27, %s2670_s23 }
  0x28   : > { %p2672_p1 = pnand %p2671_p0, %p2868_p13  ;;  %p2677_p5 = por %p2676_p4, %p2675_p3 }
  0x2a   : > { %p2673_p2 = pneg %p2672_p1 }
  0x2c   : > { %p2678_p7 = pnand %p2677_p5, %p2673_p2 }
  0x2e   : > { %2681 = shalt.err (!%p2678_p7)
}
  0x2f   : > { %s2682_s3 = sshra.s32 %s135_s6, 4  ;;  %s2781_s8 = smov [#allocation3]   ;;  %s2683_s3 = int_to_ptr.vmem [resolvable:$true] %s2682_s3 }
  0x30   : > { %s2689_s5 = scalar_lea.vmem %s2683_s3, %s2665_s18  ;;  %s2693_s9 = scalar_lea.vmem %s2781_s8, 12288 }
  0x31   : > { %p2690_p8 = scmp.ne.s32.totalorder %s2683_s3, %s2689_s5  ;;  %p2695_p1 = scmp.lt.s32.totalorder %s2693_s9, %s2689_s5 }
  0x33   : > { %p2691_p12 = pnand %p2690_p8, %p2868_p13 }
  0x35   : > { %p2692_p0 = pneg %p2691_p12 }
  0x37   : > { %p2697_p11 = pnand %p2695_p1, %p2692_p0 }
  0x39   : > { %2700 = shalt.err (!%p2697_p11)
}
  0x3a   : > { %s2782_s10 = smov 1024   ;;  %s2783_s17 = smov 64  }
  0x3b   : > { %140 = dma.hbm_to_vmem [thread:$0]  (%p2868_p13), %s2880_s15, %s2599_s7, %s135_s6, %s2865_s30, %s2782_s10, %s2782_s10, %s2783_s17  }
  0x3c PF: > { %p2600_p2 = scmp.ge.s32.totalorder %s2779_s14, 1  ;;  %p142_p3 = scmp.lt.s32.totalorder %s2779_s14, 3 }
  0x3e   : > { %p143_p4 = pnand %p2600_p2, %p142_p3 }
  0x3f   : > { %s2908_s18 = sand.u32 (!%p143_p4), 1, %s2771_s12  }
  0x40   : > { %146 = sbr.rel (%p143_p4) target bundleno = 878 (0x36e), region = 28  ;;  %s149_s24 = scalar_lea.sflag (!%p143_p4), [#allocation4], %s2908_s18 }
  0x41   : > { %s2619_s23 = smul.u32 (!%p143_p4), 6144, %s2908_s18 }
  0x43   : > { %s2912_s4 = scalar_lea.vmem (!%p143_p4), [#allocation3], %s2619_s23 }
  0x45   : > { %2758 = dma.done.wait (%p2844_p6), %s149_s24, 98304  }
  0x46   : > { %2760 = vsyncadd (%p2844_p6), %s149_s24, 4294868992  ;;  %s186_s26 = sld [smem:[#allocation2]]  ;;  %v187_v0 = vld [vmem:[%s2912_s4] sm:$0xff]  ;;  %v188_v2 = vld [vmem:[%s2912_s4 + $0x8] sm:$0xff]  ;;  %s2931_s20 = scalar_lea.vmem [#allocation6], %s2619_s23 }
  0x47   : > { %v189_v3 = vld [vmem:[%s2912_s4 + $0x10] sm:$0xff]  ;;  %v190_v7 = vld [vmem:[%s2912_s4 + $0x18] sm:$0xff]  ;;  %v191_v8 = vld [vmem:[%s2912_s4 + $0x20] sm:$0xff]  ;;  %s2493_s30 = scalar_lea.sflag [#allocation5], %s2908_s18  ;;  %s2500_s6 = smul.u32 (%p2849_p9), 96, %s2826_s0 }
  0x48   : > { %v192_v9 = vld [vmem:[%s2912_s4 + $0x28] sm:$0xff]  ;;  %v193_v11 = vld [vmem:[%s2912_s4 + $0x30] sm:$0xff]  ;;  %v194_v13 = vld [vmem:[%s2912_s4 + $0x38] sm:$0xff] }
  0x49   : > { %v195_v15 = vld [vmem:[%s2912_s4 + $0x40] sm:$0xff]  ;;  %v196_v17 = vld [vmem:[%s2912_s4 + $0x48] sm:$0xff]  ;;  %v197_v19 = vld [vmem:[%s2912_s4 + $0x50] sm:$0xff]  ;;  %s2501_s7 = ssub.s32 (%p2849_p9), 128, %s2500_s6 }
  0x4a   : > { %v198_v21 = vld [vmem:[%s2912_s4 + $0x58] sm:$0xff]  ;;  %v199_v23 = vld [vmem:[%s2912_s4 + $0x60] sm:$0xff]  ;;  %v200_v25 = vld [vmem:[%s2912_s4 + $0x68] sm:$0xff]  ;;  %p2502_p6 = scmp.lt.s32.totalorder (%p2849_p9), %s2501_s7, 96 }
  0x4b   : > { %v201_v27 = vld [vmem:[%s2912_s4 + $0x70] sm:$0xff]  ;;  %v202_v29 = vld [vmem:[%s2912_s4 + $0x78] sm:$0xff]  ;;  %v203_v31 = vld [vmem:[%s2912_s4 + $0x80] sm:$0xff] }
  0x4c   : > { %v2919_v1 = vstv %s186_s26  ;;  %v204_v33 = vld [vmem:[%s2912_s4 + $0x88] sm:$0xff]  ;;  %v205_v35 = vld [vmem:[%s2912_s4 + $0x90] sm:$0xff]  ;;  %v206_v37 = vld [vmem:[%s2912_s4 + $0x98] sm:$0xff] }
  0x4d   : > { %v956_v4 = vmul.f32 %v2919_v1, %v187_v0  ;;  %v957_v5 = vmul.f32 %v2919_v1, %v188_v2  ;;  %v958_v6 = vmul.f32 %v2919_v1, %v189_v3  ;;  %v959_v10 = vmul.f32 %v2919_v1, %v190_v7  ;;  %v207_v39 = vld [vmem:[%s2912_s4 + $0xa0] sm:$0xff]  ;;  %v208_v41 = vld [vmem:[%s2912_s4 + $0xa8] sm:$0xff]  ;;  %v209_v43 = vld [vmem:[%s2912_s4 + $0xb0] sm:$0xff] }
  0x4e   : > { %v960_v12 = vmul.f32 %v2919_v1, %v191_v8  ;;  %v961_v14 = vmul.f32 %v2919_v1, %v192_v9  ;;  %v962_v16 = vmul.f32 %v2919_v1, %v193_v11  ;;  %v963_v18 = vmul.f32 %v2919_v1, %v194_v13  ;;  %v210_v45 = vld [vmem:[%s2912_s4 + $0xb8] sm:$0xff]  ;;  %v211_v47 = vld [vmem:[%s2912_s4 + $0xc0] sm:$0xff]  ;;  %v212_v49 = vld [vmem:[%s2912_s4 + $0xc8] sm:$0xff] }
  0x4f   : > { %1724 = vst [vmem:[%s2931_s20] sm:$0xff] %v956_v4  ;;  %v964_v20 = vmul.f32 %v2919_v1, %v195_v15  ;;  %v965_v22 = vmul.f32 %v2919_v1, %v196_v17  ;;  %v966_v24 = vmul.f32 %v2919_v1, %v197_v19  ;;  %v967_v26 = vmul.f32 %v2919_v1, %v198_v21  ;;  %v213_v51 = vld [vmem:[%s2912_s4 + $0xd0] sm:$0xff]  ;;  %v214_v53 = vld [vmem:[%s2912_s4 + $0xd8] sm:$0xff]  ;;  %v215_v55 = vld [vmem:[%s2912_s4 + $0xe0] sm:$0xff] }
  0x50   : > { %1725 = vst [vmem:[%s2931_s20 + $0x8] sm:$0xff] %v957_v5  ;;  %v968_v28 = vmul.f32 %v2919_v1, %v199_v23  ;;  %v969_v30 = vmul.f32 %v2919_v1, %v200_v25  ;;  %v970_v32 = vmul.f32 %v2919_v1, %v201_v27  ;;  %v971_v34 = vmul.f32 %v2919_v1, %v202_v29  ;;  %v216_v57 = vld [vmem:[%s2912_s4 + $0xe8] sm:$0xff]  ;;  %v217_v59 = vld [vmem:[%s2912_s4 + $0xf0] sm:$0xff]  ;;  %v218_v61 = vld [vmem:[%s2912_s4 + $0xf8] sm:$0xff] }
  0x51   : > { %1726 = vst [vmem:[%s2931_s20 + $0x10] sm:$0xff] %v958_v6  ;;  %v972_v36 = vmul.f32 %v2919_v1, %v203_v31  ;;  %v973_v38 = vmul.f32 %v2919_v1, %v204_v33  ;;  %v974_v40 = vmul.f32 %v2919_v1, %v205_v35  ;;  %v975_v42 = vmul.f32 %v2919_v1, %v206_v37  ;;  %v219_v63 = vld [vmem:[%s2912_s4 + $0x100] sm:$0xff]  ;;  %v220_v2 = vld [vmem:[%s2912_s4 + $0x108] sm:$0xff]  ;;  %v221_v4 = vld [vmem:[%s2912_s4 + $0x110] sm:$0xff] }
  0x52   : > { %1727 = vst [vmem:[%s2931_s20 + $0x18] sm:$0xff] %v959_v10  ;;  %v976_v44 = vmul.f32 %v2919_v1, %v207_v39  ;;  %v977_v46 = vmul.f32 %v2919_v1, %v208_v41  ;;  %v978_v48 = vmul.f32 %v2919_v1, %v209_v43  ;;  %v979_v50 = vmul.f32 %v2919_v1, %v210_v45  ;;  %v222_v6 = vld [vmem:[%s2912_s4 + $0x118] sm:$0xff]  ;;  %v223_v8 = vld [vmem:[%s2912_s4 + $0x120] sm:$0xff]  ;;  %v224_v10 = vld [vmem:[%s2912_s4 + $0x128] sm:$0xff] }
  0x53   : > { %1728 = vst [vmem:[%s2931_s20 + $0x20] sm:$0xff] %v960_v12  ;;  %v980_v52 = vmul.f32 %v2919_v1, %v211_v47  ;;  %v981_v54 = vmul.f32 %v2919_v1, %v212_v49  ;;  %v982_v56 = vmul.f32 %v2919_v1, %v213_v51  ;;  %v983_v58 = vmul.f32 %v2919_v1, %v214_v53  ;;  %v225_v12 = vld [vmem:[%s2912_s4 + $0x130] sm:$0xff] }
  0x54   : > { %1729 = vst [vmem:[%s2931_s20 + $0x28] sm:$0xff] %v961_v14  ;;  %v984_v60 = vmul.f32 %v2919_v1, %v215_v55  ;;  %v985_v62 = vmul.f32 %v2919_v1, %v216_v57  ;;  %v986_v0 = vmul.f32 %v2919_v1, %v217_v59  ;;  %v987_v3 = vmul.f32 %v2919_v1, %v218_v61  ;;  %v226_v14 = vld [vmem:[%s2912_s4 + $0x138] sm:$0xff] }
  0x55   : > { %1730 = vst [vmem:[%s2931_s20 + $0x30] sm:$0xff] %v962_v16  ;;  %v988_v5 = vmul.f32 %v2919_v1, %v219_v63  ;;  %v989_v7 = vmul.f32 %v2919_v1, %v220_v2  ;;  %v990_v9 = vmul.f32 %v2919_v1, %v221_v4  ;;  %v991_v11 = vmul.f32 %v2919_v1, %v222_v6  ;;  %v227_v16 = vld [vmem:[%s2912_s4 + $0x140] sm:$0xff] }
  0x56   : > { %1731 = vst [vmem:[%s2931_s20 + $0x38] sm:$0xff] %v963_v18  ;;  %v992_v13 = vmul.f32 %v2919_v1, %v223_v8  ;;  %v993_v15 = vmul.f32 %v2919_v1, %v224_v10  ;;  %v994_v17 = vmul.f32 %v2919_v1, %v225_v12  ;;  %v228_v18 = vld [vmem:[%s2912_s4 + $0x148] sm:$0xff]  ;;  %v995_v19 = vmul.f32 %v2919_v1, %v226_v14 }
  0x57   : > { %1732 = vst [vmem:[%s2931_s20 + $0x40] sm:$0xff] %v964_v20  ;;  %v229_v20 = vld [vmem:[%s2912_s4 + $0x150] sm:$0xff]  ;;  %v996_v21 = vmul.f32 %v2919_v1, %v227_v16  ;;  %v997_v23 = vmul.f32 %v2919_v1, %v228_v18 }
  0x58   : > { %1733 = vst [vmem:[%s2931_s20 + $0x48] sm:$0xff] %v965_v22  ;;  %v230_v22 = vld [vmem:[%s2912_s4 + $0x158] sm:$0xff]  ;;  %v998_v25 = vmul.f32 %v2919_v1, %v229_v20 }
  0x59   : > { %1734 = vst [vmem:[%s2931_s20 + $0x50] sm:$0xff] %v966_v24  ;;  %v231_v24 = vld [vmem:[%s2912_s4 + $0x160] sm:$0xff]  ;;  %v999_v27 = vmul.f32 %v2919_v1, %v230_v22 }
  0x5a   : > { %1735 = vst [vmem:[%s2931_s20 + $0x58] sm:$0xff] %v967_v26  ;;  %v232_v26 = vld [vmem:[%s2912_s4 + $0x168] sm:$0xff]  ;;  %v1000_v29 = vmul.f32 %v2919_v1, %v231_v24 }
  0x5b   : > { %1736 = vst [vmem:[%s2931_s20 + $0x60] sm:$0xff] %v968_v28  ;;  %v233_v28 = vld [vmem:[%s2912_s4 + $0x170] sm:$0xff]  ;;  %v1001_v31 = vmul.f32 %v2919_v1, %v232_v26 }
  0x5c   : > { %1737 = vst [vmem:[%s2931_s20 + $0x68] sm:$0xff] %v969_v30  ;;  %v234_v30 = vld [vmem:[%s2912_s4 + $0x178] sm:$0xff]  ;;  %v1002_v33 = vmul.f32 %v2919_v1, %v233_v28 }
  0x5d   : > { %1738 = vst [vmem:[%s2931_s20 + $0x70] sm:$0xff] %v970_v32  ;;  %v235_v32 = vld [vmem:[%s2912_s4 + $0x180] sm:$0xff]  ;;  %v1003_v35 = vmul.f32 %v2919_v1, %v234_v30 }
  0x5e   : > { %1739 = vst [vmem:[%s2931_s20 + $0x78] sm:$0xff] %v971_v34  ;;  %v236_v34 = vld [vmem:[%s2912_s4 + $0x188] sm:$0xff]  ;;  %v1004_v37 = vmul.f32 %v2919_v1, %v235_v32 }
  0x5f   : > { %1740 = vst [vmem:[%s2931_s20 + $0x80] sm:$0xff] %v972_v36  ;;  %v237_v36 = vld [vmem:[%s2912_s4 + $0x190] sm:$0xff]  ;;  %v1005_v39 = vmul.f32 %v2919_v1, %v236_v34 }
  0x60   : > { %1741 = vst [vmem:[%s2931_s20 + $0x88] sm:$0xff] %v973_v38  ;;  %v238_v38 = vld [vmem:[%s2912_s4 + $0x198] sm:$0xff]  ;;  %v1006_v41 = vmul.f32 %v2919_v1, %v237_v36 }
  0x61   : > { %1742 = vst [vmem:[%s2931_s20 + $0x90] sm:$0xff] %v974_v40  ;;  %v239_v40 = vld [vmem:[%s2912_s4 + $0x1a0] sm:$0xff]  ;;  %v1007_v43 = vmul.f32 %v2919_v1, %v238_v38 }
  0x62   : > { %1743 = vst [vmem:[%s2931_s20 + $0x98] sm:$0xff] %v975_v42  ;;  %v240_v42 = vld [vmem:[%s2912_s4 + $0x1a8] sm:$0xff]  ;;  %v1008_v45 = vmul.f32 %v2919_v1, %v239_v40 }
  0x63   : > { %1744 = vst [vmem:[%s2931_s20 + $0xa0] sm:$0xff] %v976_v44  ;;  %v241_v44 = vld [vmem:[%s2912_s4 + $0x1b0] sm:$0xff]  ;;  %v1009_v47 = vmul.f32 %v2919_v1, %v240_v42 }
  0x64   : > { %1745 = vst [vmem:[%s2931_s20 + $0xa8] sm:$0xff] %v977_v46  ;;  %v242_v46 = vld [vmem:[%s2912_s4 + $0x1b8] sm:$0xff]  ;;  %v1010_v49 = vmul.f32 %v2919_v1, %v241_v44 }
  0x65   : > { %1746 = vst [vmem:[%s2931_s20 + $0xb0] sm:$0xff] %v978_v48  ;;  %v243_v48 = vld [vmem:[%s2912_s4 + $0x1c0] sm:$0xff]  ;;  %v1011_v51 = vmul.f32 %v2919_v1, %v242_v46 }
  0x66   : > { %1747 = vst [vmem:[%s2931_s20 + $0xb8] sm:$0xff] %v979_v50  ;;  %v244_v50 = vld [vmem:[%s2912_s4 + $0x1c8] sm:$0xff]  ;;  %v1012_v53 = vmul.f32 %v2919_v1, %v243_v48 }
  0x67   : > { %1748 = vst [vmem:[%s2931_s20 + $0xc0] sm:$0xff] %v980_v52  ;;  %v245_v52 = vld [vmem:[%s2912_s4 + $0x1d0] sm:$0xff]  ;;  %v1013_v55 = vmul.f32 %v2919_v1, %v244_v50 }
  0x68   : > { %1749 = vst [vmem:[%s2931_s20 + $0xc8] sm:$0xff] %v981_v54  ;;  %v246_v54 = vld [vmem:[%s2912_s4 + $0x1d8] sm:$0xff]  ;;  %v1014_v57 = vmul.f32 %v2919_v1, %v245_v52 }
  0x69   : > { %1750 = vst [vmem:[%s2931_s20 + $0xd0] sm:$0xff] %v982_v56  ;;  %v247_v56 = vld [vmem:[%s2912_s4 + $0x1e0] sm:$0xff]  ;;  %v1015_v59 = vmul.f32 %v2919_v1, %v246_v54 }
  0x6a   : > { %1751 = vst [vmem:[%s2931_s20 + $0xd8] sm:$0xff] %v983_v58  ;;  %v248_v58 = vld [vmem:[%s2912_s4 + $0x1e8] sm:$0xff]  ;;  %v1016_v61 = vmul.f32 %v2919_v1, %v247_v56 }
  0x6b   : > { %1752 = vst [vmem:[%s2931_s20 + $0xe0] sm:$0xff] %v984_v60  ;;  %v249_v60 = vld [vmem:[%s2912_s4 + $0x1f0] sm:$0xff]  ;;  %v1017_v63 = vmul.f32 %v2919_v1, %v248_v58 }
  0x6c   : > { %1753 = vst [vmem:[%s2931_s20 + $0xe8] sm:$0xff] %v985_v62  ;;  %v250_v62 = vld [vmem:[%s2912_s4 + $0x1f8] sm:$0xff]  ;;  %v1018_v2 = vmul.f32 %v2919_v1, %v249_v60 }
  0x6d   : > { %1754 = vst [vmem:[%s2931_s20 + $0xf0] sm:$0xff] %v986_v0  ;;  %v251_v0 = vld [vmem:[%s2912_s4 + $0x200] sm:$0xff]  ;;  %v1019_v4 = vmul.f32 %v2919_v1, %v250_v62 }
  0x6e   : > { %1755 = vst [vmem:[%s2931_s20 + $0xf8] sm:$0xff] %v987_v3  ;;  %v252_v3 = vld [vmem:[%s2912_s4 + $0x208] sm:$0xff]  ;;  %v1020_v6 = vmul.f32 %v2919_v1, %v251_v0 }
  0x6f   : > { %1756 = vst [vmem:[%s2931_s20 + $0x100] sm:$0xff] %v988_v5  ;;  %v253_v5 = vld [vmem:[%s2912_s4 + $0x210] sm:$0xff]  ;;  %v1021_v8 = vmul.f32 %v2919_v1, %v252_v3 }
  0x70   : > { %1757 = vst [vmem:[%s2931_s20 + $0x108] sm:$0xff] %v989_v7  ;;  %v254_v7 = vld [vmem:[%s2912_s4 + $0x218] sm:$0xff]  ;;  %v1022_v10 = vmul.f32 %v2919_v1, %v253_v5 }
  0x71   : > { %1758 = vst [vmem:[%s2931_s20 + $0x110] sm:$0xff] %v990_v9  ;;  %v255_v9 = vld [vmem:[%s2912_s4 + $0x220] sm:$0xff]  ;;  %v1023_v12 = vmul.f32 %v2919_v1, %v254_v7 }
  0x72   : > { %1759 = vst [vmem:[%s2931_s20 + $0x118] sm:$0xff] %v991_v11  ;;  %v256_v11 = vld [vmem:[%s2912_s4 + $0x228] sm:$0xff]  ;;  %v1024_v14 = vmul.f32 %v2919_v1, %v255_v9 }
  0x73   : > { %1760 = vst [vmem:[%s2931_s20 + $0x120] sm:$0xff] %v992_v13  ;;  %v257_v13 = vld [vmem:[%s2912_s4 + $0x230] sm:$0xff]  ;;  %v1025_v16 = vmul.f32 %v2919_v1, %v256_v11 }
  0x74   : > { %1761 = vst [vmem:[%s2931_s20 + $0x128] sm:$0xff] %v993_v15  ;;  %v258_v15 = vld [vmem:[%s2912_s4 + $0x238] sm:$0xff]  ;;  %v1026_v18 = vmul.f32 %v2919_v1, %v257_v13 }
  0x75   : > { %1762 = vst [vmem:[%s2931_s20 + $0x130] sm:$0xff] %v994_v17  ;;  %v259_v17 = vld [vmem:[%s2912_s4 + $0x240] sm:$0xff]  ;;  %v1027_v20 = vmul.f32 %v2919_v1, %v258_v15 }
  0x76   : > { %1763 = vst [vmem:[%s2931_s20 + $0x138] sm:$0xff] %v995_v19  ;;  %v260_v19 = vld [vmem:[%s2912_s4 + $0x248] sm:$0xff]  ;;  %v1028_v22 = vmul.f32 %v2919_v1, %v259_v17 }
  0x77   : > { %1764 = vst [vmem:[%s2931_s20 + $0x140] sm:$0xff] %v996_v21  ;;  %v261_v21 = vld [vmem:[%s2912_s4 + $0x250] sm:$0xff]  ;;  %v1029_v24 = vmul.f32 %v2919_v1, %v260_v19 }
  0x78   : > { %1765 = vst [vmem:[%s2931_s20 + $0x148] sm:$0xff] %v997_v23  ;;  %v262_v23 = vld [vmem:[%s2912_s4 + $0x258] sm:$0xff]  ;;  %v1030_v26 = vmul.f32 %v2919_v1, %v261_v21 }
  0x79   : > { %1766 = vst [vmem:[%s2931_s20 + $0x150] sm:$0xff] %v998_v25  ;;  %v263_v25 = vld [vmem:[%s2912_s4 + $0x260] sm:$0xff]  ;;  %v1031_v28 = vmul.f32 %v2919_v1, %v262_v23 }
  0x7a   : > { %1767 = vst [vmem:[%s2931_s20 + $0x158] sm:$0xff] %v999_v27  ;;  %v264_v27 = vld [vmem:[%s2912_s4 + $0x268] sm:$0xff]  ;;  %v1032_v30 = vmul.f32 %v2919_v1, %v263_v25 }
  0x7b   : > { %1768 = vst [vmem:[%s2931_s20 + $0x160] sm:$0xff] %v1000_v29  ;;  %v265_v29 = vld [vmem:[%s2912_s4 + $0x270] sm:$0xff]  ;;  %v1033_v32 = vmul.f32 %v2919_v1, %v264_v27 }
  0x7c   : > { %1769 = vst [vmem:[%s2931_s20 + $0x168] sm:$0xff] %v1001_v31  ;;  %v266_v31 = vld [vmem:[%s2912_s4 + $0x278] sm:$0xff]  ;;  %v1034_v34 = vmul.f32 %v2919_v1, %v265_v29 }
  0x7d   : > { %1770 = vst [vmem:[%s2931_s20 + $0x170] sm:$0xff] %v1002_v33  ;;  %v267_v33 = vld [vmem:[%s2912_s4 + $0x280] sm:$0xff]  ;;  %v1035_v36 = vmul.f32 %v2919_v1, %v266_v31 }
  0x7e   : > { %1771 = vst [vmem:[%s2931_s20 + $0x178] sm:$0xff] %v1003_v35  ;;  %v268_v35 = vld [vmem:[%s2912_s4 + $0x288] sm:$0xff]  ;;  %v1036_v38 = vmul.f32 %v2919_v1, %v267_v33 }
  0x7f   : > { %1772 = vst [vmem:[%s2931_s20 + $0x180] sm:$0xff] %v1004_v37  ;;  %v269_v37 = vld [vmem:[%s2912_s4 + $0x290] sm:$0xff]  ;;  %v1037_v40 = vmul.f32 %v2919_v1, %v268_v35 }
  0x80   : > { %1773 = vst [vmem:[%s2931_s20 + $0x188] sm:$0xff] %v1005_v39  ;;  %v270_v39 = vld [vmem:[%s2912_s4 + $0x298] sm:$0xff]  ;;  %v1038_v42 = vmul.f32 %v2919_v1, %v269_v37 }
  0x81   : > { %1774 = vst [vmem:[%s2931_s20 + $0x190] sm:$0xff] %v1006_v41  ;;  %v271_v41 = vld [vmem:[%s2912_s4 + $0x2a0] sm:$0xff]  ;;  %v1039_v44 = vmul.f32 %v2919_v1, %v270_v39 }
  0x82   : > { %1775 = vst [vmem:[%s2931_s20 + $0x198] sm:$0xff] %v1007_v43  ;;  %v272_v43 = vld [vmem:[%s2912_s4 + $0x2a8] sm:$0xff]  ;;  %v1040_v46 = vmul.f32 %v2919_v1, %v271_v41 }
  0x83   : > { %1776 = vst [vmem:[%s2931_s20 + $0x1a0] sm:$0xff] %v1008_v45  ;;  %v273_v45 = vld [vmem:[%s2912_s4 + $0x2b0] sm:$0xff]  ;;  %v1041_v48 = vmul.f32 %v2919_v1, %v272_v43 }
  0x84   : > { %1777 = vst [vmem:[%s2931_s20 + $0x1a8] sm:$0xff] %v1009_v47  ;;  %v274_v47 = vld [vmem:[%s2912_s4 + $0x2b8] sm:$0xff]  ;;  %v1042_v50 = vmul.f32 %v2919_v1, %v273_v45 }
  0x85   : > { %1778 = vst [vmem:[%s2931_s20 + $0x1b0] sm:$0xff] %v1010_v49  ;;  %v275_v49 = vld [vmem:[%s2912_s4 + $0x2c0] sm:$0xff]  ;;  %v1043_v52 = vmul.f32 %v2919_v1, %v274_v47 }
  0x86   : > { %1779 = vst [vmem:[%s2931_s20 + $0x1b8] sm:$0xff] %v1011_v51  ;;  %v276_v51 = vld [vmem:[%s2912_s4 + $0x2c8] sm:$0xff]  ;;  %v1044_v54 = vmul.f32 %v2919_v1, %v275_v49 }
  0x87   : > { %1780 = vst [vmem:[%s2931_s20 + $0x1c0] sm:$0xff] %v1012_v53  ;;  %v277_v53 = vld [vmem:[%s2912_s4 + $0x2d0] sm:$0xff]  ;;  %v1045_v56 = vmul.f32 %v2919_v1, %v276_v51 }
  0x88   : > { %1781 = vst [vmem:[%s2931_s20 + $0x1c8] sm:$0xff] %v1013_v55  ;;  %v278_v55 = vld [vmem:[%s2912_s4 + $0x2d8] sm:$0xff]  ;;  %v1046_v58 = vmul.f32 %v2919_v1, %v277_v53 }
  0x89   : > { %1782 = vst [vmem:[%s2931_s20 + $0x1d0] sm:$0xff] %v1014_v57  ;;  %v279_v57 = vld [vmem:[%s2912_s4 + $0x2e0] sm:$0xff]  ;;  %v1047_v60 = vmul.f32 %v2919_v1, %v278_v55 }
  0x8a   : > { %1783 = vst [vmem:[%s2931_s20 + $0x1d8] sm:$0xff] %v1015_v59  ;;  %v280_v59 = vld [vmem:[%s2912_s4 + $0x2e8] sm:$0xff]  ;;  %v1048_v62 = vmul.f32 %v2919_v1, %v279_v57 }
  0x8b   : > { %1784 = vst [vmem:[%s2931_s20 + $0x1e0] sm:$0xff] %v1016_v61  ;;  %v281_v61 = vld [vmem:[%s2912_s4 + $0x2f0] sm:$0xff]  ;;  %v1049_v0 = vmul.f32 %v2919_v1, %v280_v59 }
  0x8c   : > { %1785 = vst [vmem:[%s2931_s20 + $0x1e8] sm:$0xff] %v1017_v63  ;;  %v282_v63 = vld [vmem:[%s2912_s4 + $0x2f8] sm:$0xff]  ;;  %v1050_v3 = vmul.f32 %v2919_v1, %v281_v61 }
  0x8d   : > { %1786 = vst [vmem:[%s2931_s20 + $0x1f0] sm:$0xff] %v1018_v2  ;;  %v283_v2 = vld [vmem:[%s2912_s4 + $0x300] sm:$0xff]  ;;  %v1051_v5 = vmul.f32 %v2919_v1, %v282_v63 }
  0x8e   : > { %1787 = vst [vmem:[%s2931_s20 + $0x1f8] sm:$0xff] %v1019_v4  ;;  %v284_v4 = vld [vmem:[%s2912_s4 + $0x308] sm:$0xff]  ;;  %v1052_v7 = vmul.f32 %v2919_v1, %v283_v2 }
  0x8f   : > { %1788 = vst [vmem:[%s2931_s20 + $0x200] sm:$0xff] %v1020_v6  ;;  %v285_v6 = vld [vmem:[%s2912_s4 + $0x310] sm:$0xff]  ;;  %v1053_v9 = vmul.f32 %v2919_v1, %v284_v4 }
  0x90   : > { %1789 = vst [vmem:[%s2931_s20 + $0x208] sm:$0xff] %v1021_v8  ;;  %v286_v8 = vld [vmem:[%s2912_s4 + $0x318] sm:$0xff]  ;;  %v1054_v11 = vmul.f32 %v2919_v1, %v285_v6 }
  0x91   : > { %1790 = vst [vmem:[%s2931_s20 + $0x210] sm:$0xff] %v1022_v10  ;;  %v287_v10 = vld [vmem:[%s2912_s4 + $0x320] sm:$0xff]  ;;  %v1055_v13 = vmul.f32 %v2919_v1, %v286_v8 }
  0x92   : > { %1791 = vst [vmem:[%s2931_s20 + $0x218] sm:$0xff] %v1023_v12  ;;  %v288_v12 = vld [vmem:[%s2912_s4 + $0x328] sm:$0xff]  ;;  %v1056_v15 = vmul.f32 %v2919_v1, %v287_v10 }
  0x93   : > { %1792 = vst [vmem:[%s2931_s20 + $0x220] sm:$0xff] %v1024_v14  ;;  %v289_v14 = vld [vmem:[%s2912_s4 + $0x330] sm:$0xff]  ;;  %v1057_v17 = vmul.f32 %v2919_v1, %v288_v12 }
  0x94   : > { %1793 = vst [vmem:[%s2931_s20 + $0x228] sm:$0xff] %v1025_v16  ;;  %v290_v16 = vld [vmem:[%s2912_s4 + $0x338] sm:$0xff]  ;;  %v1058_v19 = vmul.f32 %v2919_v1, %v289_v14 }
  0x95   : > { %1794 = vst [vmem:[%s2931_s20 + $0x230] sm:$0xff] %v1026_v18  ;;  %v291_v18 = vld [vmem:[%s2912_s4 + $0x340] sm:$0xff]  ;;  %v1059_v21 = vmul.f32 %v2919_v1, %v290_v16 }
  0x96   : > { %1795 = vst [vmem:[%s2931_s20 + $0x238] sm:$0xff] %v1027_v20  ;;  %v292_v20 = vld [vmem:[%s2912_s4 + $0x348] sm:$0xff]  ;;  %v1060_v23 = vmul.f32 %v2919_v1, %v291_v18 }
  0x97   : > { %1796 = vst [vmem:[%s2931_s20 + $0x240] sm:$0xff] %v1028_v22  ;;  %v293_v22 = vld [vmem:[%s2912_s4 + $0x350] sm:$0xff]  ;;  %v1061_v25 = vmul.f32 %v2919_v1, %v292_v20 }
  0x98   : > { %1797 = vst [vmem:[%s2931_s20 + $0x248] sm:$0xff] %v1029_v24  ;;  %v294_v24 = vld [vmem:[%s2912_s4 + $0x358] sm:$0xff]  ;;  %v1062_v27 = vmul.f32 %v2919_v1, %v293_v22 }
  0x99   : > { %1798 = vst [vmem:[%s2931_s20 + $0x250] sm:$0xff] %v1030_v26  ;;  %v295_v26 = vld [vmem:[%s2912_s4 + $0x360] sm:$0xff]  ;;  %v1063_v29 = vmul.f32 %v2919_v1, %v294_v24 }
  0x9a   : > { %1799 = vst [vmem:[%s2931_s20 + $0x258] sm:$0xff] %v1031_v28  ;;  %v296_v28 = vld [vmem:[%s2912_s4 + $0x368] sm:$0xff]  ;;  %v1064_v31 = vmul.f32 %v2919_v1, %v295_v26 }
  0x9b   : > { %1800 = vst [vmem:[%s2931_s20 + $0x260] sm:$0xff] %v1032_v30  ;;  %v297_v30 = vld [vmem:[%s2912_s4 + $0x370] sm:$0xff]  ;;  %v1065_v33 = vmul.f32 %v2919_v1, %v296_v28 }
  0x9c   : > { %1801 = vst [vmem:[%s2931_s20 + $0x268] sm:$0xff] %v1033_v32  ;;  %v298_v32 = vld [vmem:[%s2912_s4 + $0x378] sm:$0xff]  ;;  %v1066_v35 = vmul.f32 %v2919_v1, %v297_v30 }
  0x9d   : > { %1802 = vst [vmem:[%s2931_s20 + $0x270] sm:$0xff] %v1034_v34  ;;  %v299_v34 = vld [vmem:[%s2912_s4 + $0x380] sm:$0xff]  ;;  %v1067_v37 = vmul.f32 %v2919_v1, %v298_v32 }
  0x9e   : > { %1803 = vst [vmem:[%s2931_s20 + $0x278] sm:$0xff] %v1035_v36  ;;  %v300_v36 = vld [vmem:[%s2912_s4 + $0x388] sm:$0xff]  ;;  %v1068_v39 = vmul.f32 %v2919_v1, %v299_v34 }
  0x9f   : > { %1804 = vst [vmem:[%s2931_s20 + $0x280] sm:$0xff] %v1036_v38  ;;  %v301_v38 = vld [vmem:[%s2912_s4 + $0x390] sm:$0xff]  ;;  %v1069_v41 = vmul.f32 %v2919_v1, %v300_v36 }
  0xa0   : > { %1805 = vst [vmem:[%s2931_s20 + $0x288] sm:$0xff] %v1037_v40  ;;  %v302_v40 = vld [vmem:[%s2912_s4 + $0x398] sm:$0xff]  ;;  %v1070_v43 = vmul.f32 %v2919_v1, %v301_v38 }
  0xa1   : > { %1806 = vst [vmem:[%s2931_s20 + $0x290] sm:$0xff] %v1038_v42  ;;  %v303_v42 = vld [vmem:[%s2912_s4 + $0x3a0] sm:$0xff]  ;;  %v1071_v45 = vmul.f32 %v2919_v1, %v302_v40 }
  0xa2   : > { %1807 = vst [vmem:[%s2931_s20 + $0x298] sm:$0xff] %v1039_v44  ;;  %v304_v44 = vld [vmem:[%s2912_s4 + $0x3a8] sm:$0xff]  ;;  %v1072_v47 = vmul.f32 %v2919_v1, %v303_v42 }
  0xa3   : > { %1808 = vst [vmem:[%s2931_s20 + $0x2a0] sm:$0xff] %v1040_v46  ;;  %v305_v46 = vld [vmem:[%s2912_s4 + $0x3b0] sm:$0xff]  ;;  %v1073_v49 = vmul.f32 %v2919_v1, %v304_v44 }
  0xa4   : > { %1809 = vst [vmem:[%s2931_s20 + $0x2a8] sm:$0xff] %v1041_v48  ;;  %v306_v48 = vld [vmem:[%s2912_s4 + $0x3b8] sm:$0xff]  ;;  %v1074_v51 = vmul.f32 %v2919_v1, %v305_v46 }
  0xa5   : > { %1810 = vst [vmem:[%s2931_s20 + $0x2b0] sm:$0xff] %v1042_v50  ;;  %v307_v50 = vld [vmem:[%s2912_s4 + $0x3c0] sm:$0xff]  ;;  %v1075_v53 = vmul.f32 %v2919_v1, %v306_v48 }
  0xa6   : > { %1811 = vst [vmem:[%s2931_s20 + $0x2b8] sm:$0xff] %v1043_v52  ;;  %v308_v52 = vld [vmem:[%s2912_s4 + $0x3c8] sm:$0xff]  ;;  %v1076_v55 = vmul.f32 %v2919_v1, %v307_v50 }
  0xa7   : > { %1812 = vst [vmem:[%s2931_s20 + $0x2c0] sm:$0xff] %v1044_v54  ;;  %v309_v54 = vld [vmem:[%s2912_s4 + $0x3d0] sm:$0xff]  ;;  %v1077_v57 = vmul.f32 %v2919_v1, %v308_v52 }
  0xa8   : > { %1813 = vst [vmem:[%s2931_s20 + $0x2c8] sm:$0xff] %v1045_v56  ;;  %v310_v56 = vld [vmem:[%s2912_s4 + $0x3d8] sm:$0xff]  ;;  %v1078_v59 = vmul.f32 %v2919_v1, %v309_v54 }
  0xa9   : > { %1814 = vst [vmem:[%s2931_s20 + $0x2d0] sm:$0xff] %v1046_v58  ;;  %v311_v58 = vld [vmem:[%s2912_s4 + $0x3e0] sm:$0xff]  ;;  %v1079_v61 = vmul.f32 %v2919_v1, %v310_v56 }
  0xaa   : > { %1815 = vst [vmem:[%s2931_s20 + $0x2d8] sm:$0xff] %v1047_v60  ;;  %v312_v60 = vld [vmem:[%s2912_s4 + $0x3e8] sm:$0xff]  ;;  %v1080_v63 = vmul.f32 %v2919_v1, %v311_v58 }
  0xab   : > { %1816 = vst [vmem:[%s2931_s20 + $0x2e0] sm:$0xff] %v1048_v62  ;;  %v313_v62 = vld [vmem:[%s2912_s4 + $0x3f0] sm:$0xff]  ;;  %v1081_v2 = vmul.f32 %v2919_v1, %v312_v60 }
  0xac   : > { %1817 = vst [vmem:[%s2931_s20 + $0x2e8] sm:$0xff] %v1049_v0  ;;  %v314_v0 = vld [vmem:[%s2912_s4 + $0x3f8] sm:$0xff]  ;;  %v1082_v4 = vmul.f32 %v2919_v1, %v313_v62 }
  0xad   : > { %1818 = vst [vmem:[%s2931_s20 + $0x2f0] sm:$0xff] %v1050_v3  ;;  %v315_v3 = vld [vmem:[%s2912_s4 + $0x400] sm:$0xff]  ;;  %v1083_v6 = vmul.f32 %v2919_v1, %v314_v0 }
  0xae   : > { %1819 = vst [vmem:[%s2931_s20 + $0x2f8] sm:$0xff] %v1051_v5  ;;  %v316_v5 = vld [vmem:[%s2912_s4 + $0x408] sm:$0xff]  ;;  %v1084_v8 = vmul.f32 %v2919_v1, %v315_v3 }
  0xaf   : > { %1820 = vst [vmem:[%s2931_s20 + $0x300] sm:$0xff] %v1052_v7  ;;  %v317_v7 = vld [vmem:[%s2912_s4 + $0x410] sm:$0xff]  ;;  %v1085_v10 = vmul.f32 %v2919_v1, %v316_v5 }
  0xb0   : > { %1821 = vst [vmem:[%s2931_s20 + $0x308] sm:$0xff] %v1053_v9  ;;  %v318_v9 = vld [vmem:[%s2912_s4 + $0x418] sm:$0xff]  ;;  %v1086_v12 = vmul.f32 %v2919_v1, %v317_v7 }
  0xb1   : > { %1822 = vst [vmem:[%s2931_s20 + $0x310] sm:$0xff] %v1054_v11  ;;  %v319_v11 = vld [vmem:[%s2912_s4 + $0x420] sm:$0xff]  ;;  %v1087_v14 = vmul.f32 %v2919_v1, %v318_v9 }
  0xb2   : > { %1823 = vst [vmem:[%s2931_s20 + $0x318] sm:$0xff] %v1055_v13  ;;  %v320_v13 = vld [vmem:[%s2912_s4 + $0x428] sm:$0xff]  ;;  %v1088_v16 = vmul.f32 %v2919_v1, %v319_v11 }
  0xb3   : > { %1824 = vst [vmem:[%s2931_s20 + $0x320] sm:$0xff] %v1056_v15  ;;  %v321_v15 = vld [vmem:[%s2912_s4 + $0x430] sm:$0xff]  ;;  %v1089_v18 = vmul.f32 %v2919_v1, %v320_v13 }
  0xb4   : > { %1825 = vst [vmem:[%s2931_s20 + $0x328] sm:$0xff] %v1057_v17  ;;  %v322_v17 = vld [vmem:[%s2912_s4 + $0x438] sm:$0xff]  ;;  %v1090_v20 = vmul.f32 %v2919_v1, %v321_v15 }
  0xb5   : > { %1826 = vst [vmem:[%s2931_s20 + $0x330] sm:$0xff] %v1058_v19  ;;  %v323_v19 = vld [vmem:[%s2912_s4 + $0x440] sm:$0xff]  ;;  %v1091_v22 = vmul.f32 %v2919_v1, %v322_v17 }
  0xb6   : > { %1827 = vst [vmem:[%s2931_s20 + $0x338] sm:$0xff] %v1059_v21  ;;  %v324_v21 = vld [vmem:[%s2912_s4 + $0x448] sm:$0xff]  ;;  %v1092_v24 = vmul.f32 %v2919_v1, %v323_v19 }
  0xb7   : > { %1828 = vst [vmem:[%s2931_s20 + $0x340] sm:$0xff] %v1060_v23  ;;  %v325_v23 = vld [vmem:[%s2912_s4 + $0x450] sm:$0xff]  ;;  %v1093_v26 = vmul.f32 %v2919_v1, %v324_v21 }
  0xb8   : > { %1829 = vst [vmem:[%s2931_s20 + $0x348] sm:$0xff] %v1061_v25  ;;  %v326_v25 = vld [vmem:[%s2912_s4 + $0x458] sm:$0xff]  ;;  %v1094_v28 = vmul.f32 %v2919_v1, %v325_v23 }
  0xb9   : > { %1830 = vst [vmem:[%s2931_s20 + $0x350] sm:$0xff] %v1062_v27  ;;  %v327_v27 = vld [vmem:[%s2912_s4 + $0x460] sm:$0xff]  ;;  %v1095_v30 = vmul.f32 %v2919_v1, %v326_v25 }
  0xba   : > { %1831 = vst [vmem:[%s2931_s20 + $0x358] sm:$0xff] %v1063_v29  ;;  %v328_v29 = vld [vmem:[%s2912_s4 + $0x468] sm:$0xff]  ;;  %v1096_v32 = vmul.f32 %v2919_v1, %v327_v27 }
  0xbb   : > { %1832 = vst [vmem:[%s2931_s20 + $0x360] sm:$0xff] %v1064_v31  ;;  %v329_v31 = vld [vmem:[%s2912_s4 + $0x470] sm:$0xff]  ;;  %v1097_v34 = vmul.f32 %v2919_v1, %v328_v29 }
  0xbc   : > { %1833 = vst [vmem:[%s2931_s20 + $0x368] sm:$0xff] %v1065_v33  ;;  %v330_v33 = vld [vmem:[%s2912_s4 + $0x478] sm:$0xff]  ;;  %v1098_v36 = vmul.f32 %v2919_v1, %v329_v31 }
  0xbd   : > { %1834 = vst [vmem:[%s2931_s20 + $0x370] sm:$0xff] %v1066_v35  ;;  %v331_v35 = vld [vmem:[%s2912_s4 + $0x480] sm:$0xff]  ;;  %v1099_v38 = vmul.f32 %v2919_v1, %v330_v33 }
  0xbe   : > { %1835 = vst [vmem:[%s2931_s20 + $0x378] sm:$0xff] %v1067_v37  ;;  %v332_v37 = vld [vmem:[%s2912_s4 + $0x488] sm:$0xff]  ;;  %v1100_v40 = vmul.f32 %v2919_v1, %v331_v35 }
  0xbf   : > { %1836 = vst [vmem:[%s2931_s20 + $0x380] sm:$0xff] %v1068_v39  ;;  %v333_v39 = vld [vmem:[%s2912_s4 + $0x490] sm:$0xff]  ;;  %v1101_v42 = vmul.f32 %v2919_v1, %v332_v37 }
  0xc0   : > { %1837 = vst [vmem:[%s2931_s20 + $0x388] sm:$0xff] %v1069_v41  ;;  %v334_v41 = vld [vmem:[%s2912_s4 + $0x498] sm:$0xff]  ;;  %v1102_v44 = vmul.f32 %v2919_v1, %v333_v39 }
  0xc1   : > { %1838 = vst [vmem:[%s2931_s20 + $0x390] sm:$0xff] %v1070_v43  ;;  %v335_v43 = vld [vmem:[%s2912_s4 + $0x4a0] sm:$0xff]  ;;  %v1103_v46 = vmul.f32 %v2919_v1, %v334_v41 }
  0xc2   : > { %1839 = vst [vmem:[%s2931_s20 + $0x398] sm:$0xff] %v1071_v45  ;;  %v336_v45 = vld [vmem:[%s2912_s4 + $0x4a8] sm:$0xff]  ;;  %v1104_v48 = vmul.f32 %v2919_v1, %v335_v43 }
  0xc3   : > { %1840 = vst [vmem:[%s2931_s20 + $0x3a0] sm:$0xff] %v1072_v47  ;;  %v337_v47 = vld [vmem:[%s2912_s4 + $0x4b0] sm:$0xff]  ;;  %v1105_v50 = vmul.f32 %v2919_v1, %v336_v45 }
  0xc4   : > { %1841 = vst [vmem:[%s2931_s20 + $0x3a8] sm:$0xff] %v1073_v49  ;;  %v338_v49 = vld [vmem:[%s2912_s4 + $0x4b8] sm:$0xff]  ;;  %v1106_v52 = vmul.f32 %v2919_v1, %v337_v47 }
  0xc5   : > { %1842 = vst [vmem:[%s2931_s20 + $0x3b0] sm:$0xff] %v1074_v51  ;;  %v339_v51 = vld [vmem:[%s2912_s4 + $0x4c0] sm:$0xff]  ;;  %v1107_v54 = vmul.f32 %v2919_v1, %v338_v49 }
  0xc6   : > { %1843 = vst [vmem:[%s2931_s20 + $0x3b8] sm:$0xff] %v1075_v53  ;;  %v340_v53 = vld [vmem:[%s2912_s4 + $0x4c8] sm:$0xff]  ;;  %v1108_v56 = vmul.f32 %v2919_v1, %v339_v51 }
  0xc7   : > { %1844 = vst [vmem:[%s2931_s20 + $0x3c0] sm:$0xff] %v1076_v55  ;;  %v341_v55 = vld [vmem:[%s2912_s4 + $0x4d0] sm:$0xff]  ;;  %v1109_v58 = vmul.f32 %v2919_v1, %v340_v53 }
  0xc8   : > { %1845 = vst [vmem:[%s2931_s20 + $0x3c8] sm:$0xff] %v1077_v57  ;;  %v342_v57 = vld [vmem:[%s2912_s4 + $0x4d8] sm:$0xff]  ;;  %v1110_v60 = vmul.f32 %v2919_v1, %v341_v55 }
  0xc9   : > { %1846 = vst [vmem:[%s2931_s20 + $0x3d0] sm:$0xff] %v1078_v59  ;;  %v343_v59 = vld [vmem:[%s2912_s4 + $0x4e0] sm:$0xff]  ;;  %v1111_v62 = vmul.f32 %v2919_v1, %v342_v57 }
  0xca   : > { %1847 = vst [vmem:[%s2931_s20 + $0x3d8] sm:$0xff] %v1079_v61  ;;  %v344_v61 = vld [vmem:[%s2912_s4 + $0x4e8] sm:$0xff]  ;;  %v1112_v0 = vmul.f32 %v2919_v1, %v343_v59 }
  0xcb   : > { %1848 = vst [vmem:[%s2931_s20 + $0x3e0] sm:$0xff] %v1080_v63  ;;  %v345_v63 = vld [vmem:[%s2912_s4 + $0x4f0] sm:$0xff]  ;;  %v1113_v3 = vmul.f32 %v2919_v1, %v344_v61 }
  0xcc   : > { %1849 = vst [vmem:[%s2931_s20 + $0x3e8] sm:$0xff] %v1081_v2  ;;  %v346_v2 = vld [vmem:[%s2912_s4 + $0x4f8] sm:$0xff]  ;;  %v1114_v5 = vmul.f32 %v2919_v1, %v345_v63 }
  0xcd   : > { %1850 = vst [vmem:[%s2931_s20 + $0x3f0] sm:$0xff] %v1082_v4  ;;  %v347_v4 = vld [vmem:[%s2912_s4 + $0x500] sm:$0xff]  ;;  %v1115_v7 = vmul.f32 %v2919_v1, %v346_v2 }
  0xce   : > { %1851 = vst [vmem:[%s2931_s20 + $0x3f8] sm:$0xff] %v1083_v6  ;;  %v348_v6 = vld [vmem:[%s2912_s4 + $0x508] sm:$0xff]  ;;  %v1116_v9 = vmul.f32 %v2919_v1, %v347_v4 }
  0xcf   : > { %1852 = vst [vmem:[%s2931_s20 + $0x400] sm:$0xff] %v1084_v8  ;;  %v349_v8 = vld [vmem:[%s2912_s4 + $0x510] sm:$0xff]  ;;  %v1117_v11 = vmul.f32 %v2919_v1, %v348_v6 }
  0xd0   : > { %1853 = vst [vmem:[%s2931_s20 + $0x408] sm:$0xff] %v1085_v10  ;;  %v350_v10 = vld [vmem:[%s2912_s4 + $0x518] sm:$0xff]  ;;  %v1118_v13 = vmul.f32 %v2919_v1, %v349_v8 }
  0xd1   : > { %1854 = vst [vmem:[%s2931_s20 + $0x410] sm:$0xff] %v1086_v12  ;;  %v351_v12 = vld [vmem:[%s2912_s4 + $0x520] sm:$0xff]  ;;  %v1119_v15 = vmul.f32 %v2919_v1, %v350_v10 }
  0xd2   : > { %1855 = vst [vmem:[%s2931_s20 + $0x418] sm:$0xff] %v1087_v14  ;;  %v352_v14 = vld [vmem:[%s2912_s4 + $0x528] sm:$0xff]  ;;  %v1120_v17 = vmul.f32 %v2919_v1, %v351_v12 }
  0xd3   : > { %1856 = vst [vmem:[%s2931_s20 + $0x420] sm:$0xff] %v1088_v16  ;;  %v353_v16 = vld [vmem:[%s2912_s4 + $0x530] sm:$0xff]  ;;  %v1121_v19 = vmul.f32 %v2919_v1, %v352_v14 }
  0xd4   : > { %1857 = vst [vmem:[%s2931_s20 + $0x428] sm:$0xff] %v1089_v18  ;;  %v354_v18 = vld [vmem:[%s2912_s4 + $0x538] sm:$0xff]  ;;  %v1122_v21 = vmul.f32 %v2919_v1, %v353_v16 }
  0xd5   : > { %1858 = vst [vmem:[%s2931_s20 + $0x430] sm:$0xff] %v1090_v20  ;;  %v355_v20 = vld [vmem:[%s2912_s4 + $0x540] sm:$0xff]  ;;  %v1123_v23 = vmul.f32 %v2919_v1, %v354_v18 }
  0xd6   : > { %1859 = vst [vmem:[%s2931_s20 + $0x438] sm:$0xff] %v1091_v22  ;;  %v356_v22 = vld [vmem:[%s2912_s4 + $0x548] sm:$0xff]  ;;  %v1124_v25 = vmul.f32 %v2919_v1, %v355_v20 }
  0xd7   : > { %1860 = vst [vmem:[%s2931_s20 + $0x440] sm:$0xff] %v1092_v24  ;;  %v357_v24 = vld [vmem:[%s2912_s4 + $0x550] sm:$0xff]  ;;  %v1125_v27 = vmul.f32 %v2919_v1, %v356_v22 }
  0xd8   : > { %1861 = vst [vmem:[%s2931_s20 + $0x448] sm:$0xff] %v1093_v26  ;;  %v358_v26 = vld [vmem:[%s2912_s4 + $0x558] sm:$0xff]  ;;  %v1126_v29 = vmul.f32 %v2919_v1, %v357_v24 }
  0xd9   : > { %1862 = vst [vmem:[%s2931_s20 + $0x450] sm:$0xff] %v1094_v28  ;;  %v359_v28 = vld [vmem:[%s2912_s4 + $0x560] sm:$0xff]  ;;  %v1127_v31 = vmul.f32 %v2919_v1, %v358_v26 }
  0xda   : > { %1863 = vst [vmem:[%s2931_s20 + $0x458] sm:$0xff] %v1095_v30  ;;  %v360_v30 = vld [vmem:[%s2912_s4 + $0x568] sm:$0xff]  ;;  %v1128_v33 = vmul.f32 %v2919_v1, %v359_v28 }
  0xdb   : > { %1864 = vst [vmem:[%s2931_s20 + $0x460] sm:$0xff] %v1096_v32  ;;  %v361_v32 = vld [vmem:[%s2912_s4 + $0x570] sm:$0xff]  ;;  %v1129_v35 = vmul.f32 %v2919_v1, %v360_v30 }
  0xdc   : > { %1865 = vst [vmem:[%s2931_s20 + $0x468] sm:$0xff] %v1097_v34  ;;  %v362_v34 = vld [vmem:[%s2912_s4 + $0x578] sm:$0xff]  ;;  %v1130_v37 = vmul.f32 %v2919_v1, %v361_v32 }
  0xdd   : > { %1866 = vst [vmem:[%s2931_s20 + $0x470] sm:$0xff] %v1098_v36  ;;  %v363_v36 = vld [vmem:[%s2912_s4 + $0x580] sm:$0xff]  ;;  %v1131_v39 = vmul.f32 %v2919_v1, %v362_v34 }
  0xde   : > { %1867 = vst [vmem:[%s2931_s20 + $0x478] sm:$0xff] %v1099_v38  ;;  %v364_v38 = vld [vmem:[%s2912_s4 + $0x588] sm:$0xff]  ;;  %v1132_v41 = vmul.f32 %v2919_v1, %v363_v36 }
  0xdf   : > { %1868 = vst [vmem:[%s2931_s20 + $0x480] sm:$0xff] %v1100_v40  ;;  %v365_v40 = vld [vmem:[%s2912_s4 + $0x590] sm:$0xff]  ;;  %v1133_v43 = vmul.f32 %v2919_v1, %v364_v38 }
  0xe0   : > { %1869 = vst [vmem:[%s2931_s20 + $0x488] sm:$0xff] %v1101_v42  ;;  %v366_v42 = vld [vmem:[%s2912_s4 + $0x598] sm:$0xff]  ;;  %v1134_v45 = vmul.f32 %v2919_v1, %v365_v40 }
  0xe1   : > { %1870 = vst [vmem:[%s2931_s20 + $0x490] sm:$0xff] %v1102_v44  ;;  %v367_v44 = vld [vmem:[%s2912_s4 + $0x5a0] sm:$0xff]  ;;  %v1135_v47 = vmul.f32 %v2919_v1, %v366_v42 }
  0xe2   : > { %1871 = vst [vmem:[%s2931_s20 + $0x498] sm:$0xff] %v1103_v46  ;;  %v368_v46 = vld [vmem:[%s2912_s4 + $0x5a8] sm:$0xff]  ;;  %v1136_v49 = vmul.f32 %v2919_v1, %v367_v44 }
  0xe3   : > { %1872 = vst [vmem:[%s2931_s20 + $0x4a0] sm:$0xff] %v1104_v48  ;;  %v369_v48 = vld [vmem:[%s2912_s4 + $0x5b0] sm:$0xff]  ;;  %v1137_v51 = vmul.f32 %v2919_v1, %v368_v46 }
  0xe4   : > { %1873 = vst [vmem:[%s2931_s20 + $0x4a8] sm:$0xff] %v1105_v50  ;;  %v370_v50 = vld [vmem:[%s2912_s4 + $0x5b8] sm:$0xff]  ;;  %v1138_v53 = vmul.f32 %v2919_v1, %v369_v48 }
  0xe5   : > { %1874 = vst [vmem:[%s2931_s20 + $0x4b0] sm:$0xff] %v1106_v52  ;;  %v371_v52 = vld [vmem:[%s2912_s4 + $0x5c0] sm:$0xff]  ;;  %v1139_v55 = vmul.f32 %v2919_v1, %v370_v50 }
  0xe6   : > { %1875 = vst [vmem:[%s2931_s20 + $0x4b8] sm:$0xff] %v1107_v54  ;;  %v372_v54 = vld [vmem:[%s2912_s4 + $0x5c8] sm:$0xff]  ;;  %v1140_v57 = vmul.f32 %v2919_v1, %v371_v52 }
  0xe7   : > { %1876 = vst [vmem:[%s2931_s20 + $0x4c0] sm:$0xff] %v1108_v56  ;;  %v373_v56 = vld [vmem:[%s2912_s4 + $0x5d0] sm:$0xff]  ;;  %v1141_v59 = vmul.f32 %v2919_v1, %v372_v54 }
  0xe8   : > { %1877 = vst [vmem:[%s2931_s20 + $0x4c8] sm:$0xff] %v1109_v58  ;;  %v374_v58 = vld [vmem:[%s2912_s4 + $0x5d8] sm:$0xff]  ;;  %v1142_v61 = vmul.f32 %v2919_v1, %v373_v56 }
  0xe9   : > { %1878 = vst [vmem:[%s2931_s20 + $0x4d0] sm:$0xff] %v1110_v60  ;;  %v375_v60 = vld [vmem:[%s2912_s4 + $0x5e0] sm:$0xff]  ;;  %v1143_v63 = vmul.f32 %v2919_v1, %v374_v58 }
  0xea   : > { %1879 = vst [vmem:[%s2931_s20 + $0x4d8] sm:$0xff] %v1111_v62  ;;  %v376_v62 = vld [vmem:[%s2912_s4 + $0x5e8] sm:$0xff]  ;;  %v1144_v2 = vmul.f32 %v2919_v1, %v375_v60 }
  0xeb   : > { %1880 = vst [vmem:[%s2931_s20 + $0x4e0] sm:$0xff] %v1112_v0  ;;  %v377_v0 = vld [vmem:[%s2912_s4 + $0x5f0] sm:$0xff]  ;;  %v1145_v4 = vmul.f32 %v2919_v1, %v376_v62 }
  0xec   : > { %1881 = vst [vmem:[%s2931_s20 + $0x4e8] sm:$0xff] %v1113_v3  ;;  %v378_v3 = vld [vmem:[%s2912_s4 + $0x5f8] sm:$0xff]  ;;  %v1146_v6 = vmul.f32 %v2919_v1, %v377_v0 }
  0xed   : > { %1882 = vst [vmem:[%s2931_s20 + $0x4f0] sm:$0xff] %v1114_v5  ;;  %v379_v5 = vld [vmem:[%s2912_s4 + $0x600] sm:$0xff]  ;;  %v1147_v8 = vmul.f32 %v2919_v1, %v378_v3 }
  0xee   : > { %1883 = vst [vmem:[%s2931_s20 + $0x4f8] sm:$0xff] %v1115_v7  ;;  %v380_v7 = vld [vmem:[%s2912_s4 + $0x608] sm:$0xff]  ;;  %v1148_v10 = vmul.f32 %v2919_v1, %v379_v5 }
  0xef   : > { %1884 = vst [vmem:[%s2931_s20 + $0x500] sm:$0xff] %v1116_v9  ;;  %v381_v9 = vld [vmem:[%s2912_s4 + $0x610] sm:$0xff]  ;;  %v1149_v12 = vmul.f32 %v2919_v1, %v380_v7 }
  0xf0   : > { %1885 = vst [vmem:[%s2931_s20 + $0x508] sm:$0xff] %v1117_v11  ;;  %v382_v11 = vld [vmem:[%s2912_s4 + $0x618] sm:$0xff]  ;;  %v1150_v14 = vmul.f32 %v2919_v1, %v381_v9 }
  0xf1   : > { %1886 = vst [vmem:[%s2931_s20 + $0x510] sm:$0xff] %v1118_v13  ;;  %v383_v13 = vld [vmem:[%s2912_s4 + $0x620] sm:$0xff]  ;;  %v1151_v16 = vmul.f32 %v2919_v1, %v382_v11 }
  0xf2   : > { %1887 = vst [vmem:[%s2931_s20 + $0x518] sm:$0xff] %v1119_v15  ;;  %v384_v15 = vld [vmem:[%s2912_s4 + $0x628] sm:$0xff]  ;;  %v1152_v18 = vmul.f32 %v2919_v1, %v383_v13 }
  0xf3   : > { %1888 = vst [vmem:[%s2931_s20 + $0x520] sm:$0xff] %v1120_v17  ;;  %v385_v17 = vld [vmem:[%s2912_s4 + $0x630] sm:$0xff]  ;;  %v1153_v20 = vmul.f32 %v2919_v1, %v384_v15 }
  0xf4   : > { %1889 = vst [vmem:[%s2931_s20 + $0x528] sm:$0xff] %v1121_v19  ;;  %v386_v19 = vld [vmem:[%s2912_s4 + $0x638] sm:$0xff]  ;;  %v1154_v22 = vmul.f32 %v2919_v1, %v385_v17 }
  0xf5   : > { %1890 = vst [vmem:[%s2931_s20 + $0x530] sm:$0xff] %v1122_v21  ;;  %v387_v21 = vld [vmem:[%s2912_s4 + $0x640] sm:$0xff]  ;;  %v1155_v24 = vmul.f32 %v2919_v1, %v386_v19 }
  0xf6   : > { %1891 = vst [vmem:[%s2931_s20 + $0x538] sm:$0xff] %v1123_v23  ;;  %v388_v23 = vld [vmem:[%s2912_s4 + $0x648] sm:$0xff]  ;;  %v1156_v26 = vmul.f32 %v2919_v1, %v387_v21 }
  0xf7   : > { %1892 = vst [vmem:[%s2931_s20 + $0x540] sm:$0xff] %v1124_v25  ;;  %v389_v25 = vld [vmem:[%s2912_s4 + $0x650] sm:$0xff]  ;;  %v1157_v28 = vmul.f32 %v2919_v1, %v388_v23 }
  0xf8   : > { %1893 = vst [vmem:[%s2931_s20 + $0x548] sm:$0xff] %v1125_v27  ;;  %v390_v27 = vld [vmem:[%s2912_s4 + $0x658] sm:$0xff]  ;;  %v1158_v30 = vmul.f32 %v2919_v1, %v389_v25 }
  0xf9   : > { %1894 = vst [vmem:[%s2931_s20 + $0x550] sm:$0xff] %v1126_v29  ;;  %v391_v29 = vld [vmem:[%s2912_s4 + $0x660] sm:$0xff]  ;;  %v1159_v32 = vmul.f32 %v2919_v1, %v390_v27 }
  0xfa   : > { %1895 = vst [vmem:[%s2931_s20 + $0x558] sm:$0xff] %v1127_v31  ;;  %v392_v31 = vld [vmem:[%s2912_s4 + $0x668] sm:$0xff]  ;;  %v1160_v34 = vmul.f32 %v2919_v1, %v391_v29 }
  0xfb   : > { %1896 = vst [vmem:[%s2931_s20 + $0x560] sm:$0xff] %v1128_v33  ;;  %v393_v33 = vld [vmem:[%s2912_s4 + $0x670] sm:$0xff]  ;;  %v1161_v36 = vmul.f32 %v2919_v1, %v392_v31 }
  0xfc   : > { %1897 = vst [vmem:[%s2931_s20 + $0x568] sm:$0xff] %v1129_v35  ;;  %v394_v35 = vld [vmem:[%s2912_s4 + $0x678] sm:$0xff]  ;;  %v1162_v38 = vmul.f32 %v2919_v1, %v393_v33 }
  0xfd   : > { %1898 = vst [vmem:[%s2931_s20 + $0x570] sm:$0xff] %v1130_v37  ;;  %v395_v37 = vld [vmem:[%s2912_s4 + $0x680] sm:$0xff]  ;;  %v1163_v40 = vmul.f32 %v2919_v1, %v394_v35 }
  0xfe   : > { %1899 = vst [vmem:[%s2931_s20 + $0x578] sm:$0xff] %v1131_v39  ;;  %v396_v39 = vld [vmem:[%s2912_s4 + $0x688] sm:$0xff]  ;;  %v1164_v42 = vmul.f32 %v2919_v1, %v395_v37 }
  0xff   : > { %1900 = vst [vmem:[%s2931_s20 + $0x580] sm:$0xff] %v1132_v41  ;;  %v397_v41 = vld [vmem:[%s2912_s4 + $0x690] sm:$0xff]  ;;  %v1165_v44 = vmul.f32 %v2919_v1, %v396_v39 }
 0x100   : > { %1901 = vst [vmem:[%s2931_s20 + $0x588] sm:$0xff] %v1133_v43  ;;  %v398_v43 = vld [vmem:[%s2912_s4 + $0x698] sm:$0xff]  ;;  %v1166_v46 = vmul.f32 %v2919_v1, %v397_v41 }
 0x101   : > { %1902 = vst [vmem:[%s2931_s20 + $0x590] sm:$0xff] %v1134_v45  ;;  %v399_v45 = vld [vmem:[%s2912_s4 + $0x6a0] sm:$0xff]  ;;  %v1167_v48 = vmul.f32 %v2919_v1, %v398_v43 }
 0x102   : > { %1903 = vst [vmem:[%s2931_s20 + $0x598] sm:$0xff] %v1135_v47  ;;  %v400_v47 = vld [vmem:[%s2912_s4 + $0x6a8] sm:$0xff]  ;;  %v1168_v50 = vmul.f32 %v2919_v1, %v399_v45 }
 0x103   : > { %1904 = vst [vmem:[%s2931_s20 + $0x5a0] sm:$0xff] %v1136_v49  ;;  %v401_v49 = vld [vmem:[%s2912_s4 + $0x6b0] sm:$0xff]  ;;  %v1169_v52 = vmul.f32 %v2919_v1, %v400_v47 }
 0x104   : > { %1905 = vst [vmem:[%s2931_s20 + $0x5a8] sm:$0xff] %v1137_v51  ;;  %v402_v51 = vld [vmem:[%s2912_s4 + $0x6b8] sm:$0xff]  ;;  %v1170_v54 = vmul.f32 %v2919_v1, %v401_v49 }
 0x105   : > { %1906 = vst [vmem:[%s2931_s20 + $0x5b0] sm:$0xff] %v1138_v53  ;;  %v403_v53 = vld [vmem:[%s2912_s4 + $0x6c0] sm:$0xff]  ;;  %v1171_v56 = vmul.f32 %v2919_v1, %v402_v51 }
 0x106   : > { %1907 = vst [vmem:[%s2931_s20 + $0x5b8] sm:$0xff] %v1139_v55  ;;  %v404_v55 = vld [vmem:[%s2912_s4 + $0x6c8] sm:$0xff]  ;;  %v1172_v58 = vmul.f32 %v2919_v1, %v403_v53 }
 0x107   : > { %1908 = vst [vmem:[%s2931_s20 + $0x5c0] sm:$0xff] %v1140_v57  ;;  %v405_v57 = vld [vmem:[%s2912_s4 + $0x6d0] sm:$0xff]  ;;  %v1173_v60 = vmul.f32 %v2919_v1, %v404_v55 }
 0x108   : > { %1909 = vst [vmem:[%s2931_s20 + $0x5c8] sm:$0xff] %v1141_v59  ;;  %v406_v59 = vld [vmem:[%s2912_s4 + $0x6d8] sm:$0xff]  ;;  %v1174_v62 = vmul.f32 %v2919_v1, %v405_v57 }
 0x109   : > { %1910 = vst [vmem:[%s2931_s20 + $0x5d0] sm:$0xff] %v1142_v61  ;;  %v407_v61 = vld [vmem:[%s2912_s4 + $0x6e0] sm:$0xff]  ;;  %v1175_v0 = vmul.f32 %v2919_v1, %v406_v59 }
 0x10a   : > { %1911 = vst [vmem:[%s2931_s20 + $0x5d8] sm:$0xff] %v1143_v63  ;;  %v408_v63 = vld [vmem:[%s2912_s4 + $0x6e8] sm:$0xff]  ;;  %v1176_v3 = vmul.f32 %v2919_v1, %v407_v61 }
 0x10b   : > { %1912 = vst [vmem:[%s2931_s20 + $0x5e0] sm:$0xff] %v1144_v2  ;;  %v409_v2 = vld [vmem:[%s2912_s4 + $0x6f0] sm:$0xff]  ;;  %v1177_v5 = vmul.f32 %v2919_v1, %v408_v63 }
 0x10c   : > { %1913 = vst [vmem:[%s2931_s20 + $0x5e8] sm:$0xff] %v1145_v4  ;;  %v410_v4 = vld [vmem:[%s2912_s4 + $0x6f8] sm:$0xff]  ;;  %v1178_v7 = vmul.f32 %v2919_v1, %v409_v2 }
 0x10d   : > { %1914 = vst [vmem:[%s2931_s20 + $0x5f0] sm:$0xff] %v1146_v6  ;;  %v411_v6 = vld [vmem:[%s2912_s4 + $0x700] sm:$0xff]  ;;  %v1179_v9 = vmul.f32 %v2919_v1, %v410_v4 }
 0x10e   : > { %1915 = vst [vmem:[%s2931_s20 + $0x5f8] sm:$0xff] %v1147_v8  ;;  %v412_v8 = vld [vmem:[%s2912_s4 + $0x708] sm:$0xff]  ;;  %v1180_v11 = vmul.f32 %v2919_v1, %v411_v6 }
 0x10f   : > { %1916 = vst [vmem:[%s2931_s20 + $0x600] sm:$0xff] %v1148_v10  ;;  %v413_v10 = vld [vmem:[%s2912_s4 + $0x710] sm:$0xff]  ;;  %v1181_v13 = vmul.f32 %v2919_v1, %v412_v8 }
 0x110   : > { %1917 = vst [vmem:[%s2931_s20 + $0x608] sm:$0xff] %v1149_v12  ;;  %v414_v12 = vld [vmem:[%s2912_s4 + $0x718] sm:$0xff]  ;;  %v1182_v15 = vmul.f32 %v2919_v1, %v413_v10 }
 0x111   : > { %1918 = vst [vmem:[%s2931_s20 + $0x610] sm:$0xff] %v1150_v14  ;;  %v415_v14 = vld [vmem:[%s2912_s4 + $0x720] sm:$0xff]  ;;  %v1183_v17 = vmul.f32 %v2919_v1, %v414_v12 }
 0x112   : > { %1919 = vst [vmem:[%s2931_s20 + $0x618] sm:$0xff] %v1151_v16  ;;  %v416_v16 = vld [vmem:[%s2912_s4 + $0x728] sm:$0xff]  ;;  %v1184_v19 = vmul.f32 %v2919_v1, %v415_v14 }
 0x113   : > { %1920 = vst [vmem:[%s2931_s20 + $0x620] sm:$0xff] %v1152_v18  ;;  %v417_v18 = vld [vmem:[%s2912_s4 + $0x730] sm:$0xff]  ;;  %v1185_v21 = vmul.f32 %v2919_v1, %v416_v16 }
 0x114   : > { %1921 = vst [vmem:[%s2931_s20 + $0x628] sm:$0xff] %v1153_v20  ;;  %v418_v20 = vld [vmem:[%s2912_s4 + $0x738] sm:$0xff]  ;;  %v1186_v23 = vmul.f32 %v2919_v1, %v417_v18 }
 0x115   : > { %1922 = vst [vmem:[%s2931_s20 + $0x630] sm:$0xff] %v1154_v22  ;;  %v419_v22 = vld [vmem:[%s2912_s4 + $0x740] sm:$0xff]  ;;  %v1187_v25 = vmul.f32 %v2919_v1, %v418_v20 }
 0x116   : > { %1923 = vst [vmem:[%s2931_s20 + $0x638] sm:$0xff] %v1155_v24  ;;  %v420_v24 = vld [vmem:[%s2912_s4 + $0x748] sm:$0xff]  ;;  %v1188_v27 = vmul.f32 %v2919_v1, %v419_v22 }
 0x117   : > { %1924 = vst [vmem:[%s2931_s20 + $0x640] sm:$0xff] %v1156_v26  ;;  %v421_v26 = vld [vmem:[%s2912_s4 + $0x750] sm:$0xff]  ;;  %v1189_v29 = vmul.f32 %v2919_v1, %v420_v24 }
 0x118   : > { %1925 = vst [vmem:[%s2931_s20 + $0x648] sm:$0xff] %v1157_v28  ;;  %v422_v28 = vld [vmem:[%s2912_s4 + $0x758] sm:$0xff]  ;;  %v1190_v31 = vmul.f32 %v2919_v1, %v421_v26 }
 0x119   : > { %1926 = vst [vmem:[%s2931_s20 + $0x650] sm:$0xff] %v1158_v30  ;;  %v423_v30 = vld [vmem:[%s2912_s4 + $0x760] sm:$0xff]  ;;  %v1191_v33 = vmul.f32 %v2919_v1, %v422_v28 }
 0x11a   : > { %1927 = vst [vmem:[%s2931_s20 + $0x658] sm:$0xff] %v1159_v32  ;;  %v424_v32 = vld [vmem:[%s2912_s4 + $0x768] sm:$0xff]  ;;  %v1192_v35 = vmul.f32 %v2919_v1, %v423_v30 }
 0x11b   : > { %1928 = vst [vmem:[%s2931_s20 + $0x660] sm:$0xff] %v1160_v34  ;;  %v425_v34 = vld [vmem:[%s2912_s4 + $0x770] sm:$0xff]  ;;  %v1193_v37 = vmul.f32 %v2919_v1, %v424_v32 }
 0x11c   : > { %1929 = vst [vmem:[%s2931_s20 + $0x668] sm:$0xff] %v1161_v36  ;;  %v426_v36 = vld [vmem:[%s2912_s4 + $0x778] sm:$0xff]  ;;  %v1194_v39 = vmul.f32 %v2919_v1, %v425_v34 }
 0x11d   : > { %1930 = vst [vmem:[%s2931_s20 + $0x670] sm:$0xff] %v1162_v38  ;;  %v427_v38 = vld [vmem:[%s2912_s4 + $0x780] sm:$0xff]  ;;  %v1195_v41 = vmul.f32 %v2919_v1, %v426_v36 }
 0x11e   : > { %1931 = vst [vmem:[%s2931_s20 + $0x678] sm:$0xff] %v1163_v40  ;;  %v428_v40 = vld [vmem:[%s2912_s4 + $0x788] sm:$0xff]  ;;  %v1196_v43 = vmul.f32 %v2919_v1, %v427_v38 }
 0x11f   : > { %1932 = vst [vmem:[%s2931_s20 + $0x680] sm:$0xff] %v1164_v42  ;;  %v429_v42 = vld [vmem:[%s2912_s4 + $0x790] sm:$0xff]  ;;  %v1197_v45 = vmul.f32 %v2919_v1, %v428_v40 }
 0x120   : > { %1933 = vst [vmem:[%s2931_s20 + $0x688] sm:$0xff] %v1165_v44  ;;  %v430_v44 = vld [vmem:[%s2912_s4 + $0x798] sm:$0xff]  ;;  %v1198_v47 = vmul.f32 %v2919_v1, %v429_v42 }
 0x121   : > { %1934 = vst [vmem:[%s2931_s20 + $0x690] sm:$0xff] %v1166_v46  ;;  %v431_v46 = vld [vmem:[%s2912_s4 + $0x7a0] sm:$0xff]  ;;  %v1199_v49 = vmul.f32 %v2919_v1, %v430_v44 }
 0x122   : > { %1935 = vst [vmem:[%s2931_s20 + $0x698] sm:$0xff] %v1167_v48  ;;  %v432_v48 = vld [vmem:[%s2912_s4 + $0x7a8] sm:$0xff]  ;;  %v1200_v51 = vmul.f32 %v2919_v1, %v431_v46 }
 0x123   : > { %1936 = vst [vmem:[%s2931_s20 + $0x6a0] sm:$0xff] %v1168_v50  ;;  %v433_v50 = vld [vmem:[%s2912_s4 + $0x7b0] sm:$0xff]  ;;  %v1201_v53 = vmul.f32 %v2919_v1, %v432_v48 }
 0x124   : > { %1937 = vst [vmem:[%s2931_s20 + $0x6a8] sm:$0xff] %v1169_v52  ;;  %v434_v52 = vld [vmem:[%s2912_s4 + $0x7b8] sm:$0xff]  ;;  %v1202_v55 = vmul.f32 %v2919_v1, %v433_v50 }
 0x125   : > { %1938 = vst [vmem:[%s2931_s20 + $0x6b0] sm:$0xff] %v1170_v54  ;;  %v435_v54 = vld [vmem:[%s2912_s4 + $0x7c0] sm:$0xff]  ;;  %v1203_v57 = vmul.f32 %v2919_v1, %v434_v52 }
 0x126   : > { %1939 = vst [vmem:[%s2931_s20 + $0x6b8] sm:$0xff] %v1171_v56  ;;  %v436_v56 = vld [vmem:[%s2912_s4 + $0x7c8] sm:$0xff]  ;;  %v1204_v59 = vmul.f32 %v2919_v1, %v435_v54 }
 0x127   : > { %1940 = vst [vmem:[%s2931_s20 + $0x6c0] sm:$0xff] %v1172_v58  ;;  %v437_v58 = vld [vmem:[%s2912_s4 + $0x7d0] sm:$0xff]  ;;  %v1205_v61 = vmul.f32 %v2919_v1, %v436_v56 }
 0x128   : > { %1941 = vst [vmem:[%s2931_s20 + $0x6c8] sm:$0xff] %v1173_v60  ;;  %v438_v60 = vld [vmem:[%s2912_s4 + $0x7d8] sm:$0xff]  ;;  %v1206_v63 = vmul.f32 %v2919_v1, %v437_v58 }
 0x129   : > { %1942 = vst [vmem:[%s2931_s20 + $0x6d0] sm:$0xff] %v1174_v62  ;;  %v439_v62 = vld [vmem:[%s2912_s4 + $0x7e0] sm:$0xff]  ;;  %v1207_v2 = vmul.f32 %v2919_v1, %v438_v60 }
 0x12a   : > { %1943 = vst [vmem:[%s2931_s20 + $0x6d8] sm:$0xff] %v1175_v0  ;;  %v440_v0 = vld [vmem:[%s2912_s4 + $0x7e8] sm:$0xff]  ;;  %v1208_v4 = vmul.f32 %v2919_v1, %v439_v62 }
 0x12b   : > { %1944 = vst [vmem:[%s2931_s20 + $0x6e0] sm:$0xff] %v1176_v3  ;;  %v441_v3 = vld [vmem:[%s2912_s4 + $0x7f0] sm:$0xff]  ;;  %v1209_v6 = vmul.f32 %v2919_v1, %v440_v0 }
 0x12c   : > { %1945 = vst [vmem:[%s2931_s20 + $0x6e8] sm:$0xff] %v1177_v5  ;;  %v442_v5 = vld [vmem:[%s2912_s4 + $0x7f8] sm:$0xff]  ;;  %v1210_v8 = vmul.f32 %v2919_v1, %v441_v3 }
 0x12d   : > { %1946 = vst [vmem:[%s2931_s20 + $0x6f0] sm:$0xff] %v1178_v7  ;;  %v443_v7 = vld [vmem:[%s2912_s4 + $0x800] sm:$0xff]  ;;  %v1211_v10 = vmul.f32 %v2919_v1, %v442_v5 }
 0x12e   : > { %1947 = vst [vmem:[%s2931_s20 + $0x6f8] sm:$0xff] %v1179_v9  ;;  %v444_v9 = vld [vmem:[%s2912_s4 + $0x808] sm:$0xff]  ;;  %v1212_v12 = vmul.f32 %v2919_v1, %v443_v7 }
 0x12f   : > { %1948 = vst [vmem:[%s2931_s20 + $0x700] sm:$0xff] %v1180_v11  ;;  %v445_v11 = vld [vmem:[%s2912_s4 + $0x810] sm:$0xff]  ;;  %v1213_v14 = vmul.f32 %v2919_v1, %v444_v9 }
 0x130   : > { %1949 = vst [vmem:[%s2931_s20 + $0x708] sm:$0xff] %v1181_v13  ;;  %v446_v13 = vld [vmem:[%s2912_s4 + $0x818] sm:$0xff]  ;;  %v1214_v16 = vmul.f32 %v2919_v1, %v445_v11 }
 0x131   : > { %1950 = vst [vmem:[%s2931_s20 + $0x710] sm:$0xff] %v1182_v15  ;;  %v447_v15 = vld [vmem:[%s2912_s4 + $0x820] sm:$0xff]  ;;  %v1215_v18 = vmul.f32 %v2919_v1, %v446_v13 }
 0x132   : > { %1951 = vst [vmem:[%s2931_s20 + $0x718] sm:$0xff] %v1183_v17  ;;  %v448_v17 = vld [vmem:[%s2912_s4 + $0x828] sm:$0xff]  ;;  %v1216_v20 = vmul.f32 %v2919_v1, %v447_v15 }
 0x133   : > { %1952 = vst [vmem:[%s2931_s20 + $0x720] sm:$0xff] %v1184_v19  ;;  %v449_v19 = vld [vmem:[%s2912_s4 + $0x830] sm:$0xff]  ;;  %v1217_v22 = vmul.f32 %v2919_v1, %v448_v17 }
 0x134   : > { %1953 = vst [vmem:[%s2931_s20 + $0x728] sm:$0xff] %v1185_v21  ;;  %v450_v21 = vld [vmem:[%s2912_s4 + $0x838] sm:$0xff]  ;;  %v1218_v24 = vmul.f32 %v2919_v1, %v449_v19 }
 0x135   : > { %1954 = vst [vmem:[%s2931_s20 + $0x730] sm:$0xff] %v1186_v23  ;;  %v451_v23 = vld [vmem:[%s2912_s4 + $0x840] sm:$0xff]  ;;  %v1219_v26 = vmul.f32 %v2919_v1, %v450_v21 }
 0x136   : > { %1955 = vst [vmem:[%s2931_s20 + $0x738] sm:$0xff] %v1187_v25  ;;  %v452_v25 = vld [vmem:[%s2912_s4 + $0x848] sm:$0xff]  ;;  %v1220_v28 = vmul.f32 %v2919_v1, %v451_v23 }
 0x137   : > { %1956 = vst [vmem:[%s2931_s20 + $0x740] sm:$0xff] %v1188_v27  ;;  %v453_v27 = vld [vmem:[%s2912_s4 + $0x850] sm:$0xff]  ;;  %v1221_v30 = vmul.f32 %v2919_v1, %v452_v25 }
 0x138   : > { %1957 = vst [vmem:[%s2931_s20 + $0x748] sm:$0xff] %v1189_v29  ;;  %v454_v29 = vld [vmem:[%s2912_s4 + $0x858] sm:$0xff]  ;;  %v1222_v32 = vmul.f32 %v2919_v1, %v453_v27 }
 0x139   : > { %1958 = vst [vmem:[%s2931_s20 + $0x750] sm:$0xff] %v1190_v31  ;;  %v455_v31 = vld [vmem:[%s2912_s4 + $0x860] sm:$0xff]  ;;  %v1223_v34 = vmul.f32 %v2919_v1, %v454_v29 }
 0x13a   : > { %1959 = vst [vmem:[%s2931_s20 + $0x758] sm:$0xff] %v1191_v33  ;;  %v456_v33 = vld [vmem:[%s2912_s4 + $0x868] sm:$0xff]  ;;  %v1224_v36 = vmul.f32 %v2919_v1, %v455_v31 }
 0x13b   : > { %1960 = vst [vmem:[%s2931_s20 + $0x760] sm:$0xff] %v1192_v35  ;;  %v457_v35 = vld [vmem:[%s2912_s4 + $0x870] sm:$0xff]  ;;  %v1225_v38 = vmul.f32 %v2919_v1, %v456_v33 }
 0x13c   : > { %1961 = vst [vmem:[%s2931_s20 + $0x768] sm:$0xff] %v1193_v37  ;;  %v458_v37 = vld [vmem:[%s2912_s4 + $0x878] sm:$0xff]  ;;  %v1226_v40 = vmul.f32 %v2919_v1, %v457_v35 }
 0x13d   : > { %1962 = vst [vmem:[%s2931_s20 + $0x770] sm:$0xff] %v1194_v39  ;;  %v459_v39 = vld [vmem:[%s2912_s4 + $0x880] sm:$0xff]  ;;  %v1227_v42 = vmul.f32 %v2919_v1, %v458_v37 }
 0x13e   : > { %1963 = vst [vmem:[%s2931_s20 + $0x778] sm:$0xff] %v1195_v41  ;;  %v460_v41 = vld [vmem:[%s2912_s4 + $0x888] sm:$0xff]  ;;  %v1228_v44 = vmul.f32 %v2919_v1, %v459_v39 }
 0x13f   : > { %1964 = vst [vmem:[%s2931_s20 + $0x780] sm:$0xff] %v1196_v43  ;;  %v461_v43 = vld [vmem:[%s2912_s4 + $0x890] sm:$0xff]  ;;  %v1229_v46 = vmul.f32 %v2919_v1, %v460_v41 }
 0x140   : > { %1965 = vst [vmem:[%s2931_s20 + $0x788] sm:$0xff] %v1197_v45  ;;  %v462_v45 = vld [vmem:[%s2912_s4 + $0x898] sm:$0xff]  ;;  %v1230_v48 = vmul.f32 %v2919_v1, %v461_v43 }
 0x141   : > { %1966 = vst [vmem:[%s2931_s20 + $0x790] sm:$0xff] %v1198_v47  ;;  %v463_v47 = vld [vmem:[%s2912_s4 + $0x8a0] sm:$0xff]  ;;  %v1231_v50 = vmul.f32 %v2919_v1, %v462_v45 }
 0x142   : > { %1967 = vst [vmem:[%s2931_s20 + $0x798] sm:$0xff] %v1199_v49  ;;  %v464_v49 = vld [vmem:[%s2912_s4 + $0x8a8] sm:$0xff]  ;;  %v1232_v52 = vmul.f32 %v2919_v1, %v463_v47 }
 0x143   : > { %1968 = vst [vmem:[%s2931_s20 + $0x7a0] sm:$0xff] %v1200_v51  ;;  %v465_v51 = vld [vmem:[%s2912_s4 + $0x8b0] sm:$0xff]  ;;  %v1233_v54 = vmul.f32 %v2919_v1, %v464_v49 }
 0x144   : > { %1969 = vst [vmem:[%s2931_s20 + $0x7a8] sm:$0xff] %v1201_v53  ;;  %v466_v53 = vld [vmem:[%s2912_s4 + $0x8b8] sm:$0xff]  ;;  %v1234_v56 = vmul.f32 %v2919_v1, %v465_v51 }
 0x145   : > { %1970 = vst [vmem:[%s2931_s20 + $0x7b0] sm:$0xff] %v1202_v55  ;;  %v467_v55 = vld [vmem:[%s2912_s4 + $0x8c0] sm:$0xff]  ;;  %v1235_v58 = vmul.f32 %v2919_v1, %v466_v53 }
 0x146   : > { %1971 = vst [vmem:[%s2931_s20 + $0x7b8] sm:$0xff] %v1203_v57  ;;  %v468_v57 = vld [vmem:[%s2912_s4 + $0x8c8] sm:$0xff]  ;;  %v1236_v60 = vmul.f32 %v2919_v1, %v467_v55 }
 0x147   : > { %1972 = vst [vmem:[%s2931_s20 + $0x7c0] sm:$0xff] %v1204_v59  ;;  %v469_v59 = vld [vmem:[%s2912_s4 + $0x8d0] sm:$0xff]  ;;  %v1237_v62 = vmul.f32 %v2919_v1, %v468_v57 }
 0x148   : > { %1973 = vst [vmem:[%s2931_s20 + $0x7c8] sm:$0xff] %v1205_v61  ;;  %v470_v61 = vld [vmem:[%s2912_s4 + $0x8d8] sm:$0xff]  ;;  %v1238_v0 = vmul.f32 %v2919_v1, %v469_v59 }
 0x149   : > { %1974 = vst [vmem:[%s2931_s20 + $0x7d0] sm:$0xff] %v1206_v63  ;;  %v471_v63 = vld [vmem:[%s2912_s4 + $0x8e0] sm:$0xff]  ;;  %v1239_v3 = vmul.f32 %v2919_v1, %v470_v61 }
 0x14a   : > { %1975 = vst [vmem:[%s2931_s20 + $0x7d8] sm:$0xff] %v1207_v2  ;;  %v472_v2 = vld [vmem:[%s2912_s4 + $0x8e8] sm:$0xff]  ;;  %v1240_v5 = vmul.f32 %v2919_v1, %v471_v63 }
 0x14b   : > { %1976 = vst [vmem:[%s2931_s20 + $0x7e0] sm:$0xff] %v1208_v4  ;;  %v473_v4 = vld [vmem:[%s2912_s4 + $0x8f0] sm:$0xff]  ;;  %v1241_v7 = vmul.f32 %v2919_v1, %v472_v2 }
 0x14c   : > { %1977 = vst [vmem:[%s2931_s20 + $0x7e8] sm:$0xff] %v1209_v6  ;;  %v474_v6 = vld [vmem:[%s2912_s4 + $0x8f8] sm:$0xff]  ;;  %v1242_v9 = vmul.f32 %v2919_v1, %v473_v4 }
 0x14d   : > { %1978 = vst [vmem:[%s2931_s20 + $0x7f0] sm:$0xff] %v1210_v8  ;;  %v475_v8 = vld [vmem:[%s2912_s4 + $0x900] sm:$0xff]  ;;  %v1243_v11 = vmul.f32 %v2919_v1, %v474_v6 }
 0x14e   : > { %1979 = vst [vmem:[%s2931_s20 + $0x7f8] sm:$0xff] %v1211_v10  ;;  %v476_v10 = vld [vmem:[%s2912_s4 + $0x908] sm:$0xff]  ;;  %v1244_v13 = vmul.f32 %v2919_v1, %v475_v8 }
 0x14f   : > { %1980 = vst [vmem:[%s2931_s20 + $0x800] sm:$0xff] %v1212_v12  ;;  %v477_v12 = vld [vmem:[%s2912_s4 + $0x910] sm:$0xff]  ;;  %v1245_v15 = vmul.f32 %v2919_v1, %v476_v10 }
 0x150   : > { %1981 = vst [vmem:[%s2931_s20 + $0x808] sm:$0xff] %v1213_v14  ;;  %v478_v14 = vld [vmem:[%s2912_s4 + $0x918] sm:$0xff]  ;;  %v1246_v17 = vmul.f32 %v2919_v1, %v477_v12 }
 0x151   : > { %1982 = vst [vmem:[%s2931_s20 + $0x810] sm:$0xff] %v1214_v16  ;;  %v479_v16 = vld [vmem:[%s2912_s4 + $0x920] sm:$0xff]  ;;  %v1247_v19 = vmul.f32 %v2919_v1, %v478_v14 }
 0x152   : > { %1983 = vst [vmem:[%s2931_s20 + $0x818] sm:$0xff] %v1215_v18  ;;  %v480_v18 = vld [vmem:[%s2912_s4 + $0x928] sm:$0xff]  ;;  %v1248_v21 = vmul.f32 %v2919_v1, %v479_v16 }
 0x153   : > { %1984 = vst [vmem:[%s2931_s20 + $0x820] sm:$0xff] %v1216_v20  ;;  %v481_v20 = vld [vmem:[%s2912_s4 + $0x930] sm:$0xff]  ;;  %v1249_v23 = vmul.f32 %v2919_v1, %v480_v18 }
 0x154   : > { %1985 = vst [vmem:[%s2931_s20 + $0x828] sm:$0xff] %v1217_v22  ;;  %v482_v22 = vld [vmem:[%s2912_s4 + $0x938] sm:$0xff]  ;;  %v1250_v25 = vmul.f32 %v2919_v1, %v481_v20 }
 0x155   : > { %1986 = vst [vmem:[%s2931_s20 + $0x830] sm:$0xff] %v1218_v24  ;;  %v483_v24 = vld [vmem:[%s2912_s4 + $0x940] sm:$0xff]  ;;  %v1251_v27 = vmul.f32 %v2919_v1, %v482_v22 }
 0x156   : > { %1987 = vst [vmem:[%s2931_s20 + $0x838] sm:$0xff] %v1219_v26  ;;  %v484_v26 = vld [vmem:[%s2912_s4 + $0x948] sm:$0xff]  ;;  %v1252_v29 = vmul.f32 %v2919_v1, %v483_v24 }
 0x157   : > { %1988 = vst [vmem:[%s2931_s20 + $0x840] sm:$0xff] %v1220_v28  ;;  %v485_v28 = vld [vmem:[%s2912_s4 + $0x950] sm:$0xff]  ;;  %v1253_v31 = vmul.f32 %v2919_v1, %v484_v26 }
 0x158   : > { %1989 = vst [vmem:[%s2931_s20 + $0x848] sm:$0xff] %v1221_v30  ;;  %v486_v30 = vld [vmem:[%s2912_s4 + $0x958] sm:$0xff]  ;;  %v1254_v33 = vmul.f32 %v2919_v1, %v485_v28 }
 0x159   : > { %1990 = vst [vmem:[%s2931_s20 + $0x850] sm:$0xff] %v1222_v32  ;;  %v487_v32 = vld [vmem:[%s2912_s4 + $0x960] sm:$0xff]  ;;  %v1255_v35 = vmul.f32 %v2919_v1, %v486_v30 }
 0x15a   : > { %1991 = vst [vmem:[%s2931_s20 + $0x858] sm:$0xff] %v1223_v34  ;;  %v488_v34 = vld [vmem:[%s2912_s4 + $0x968] sm:$0xff]  ;;  %v1256_v37 = vmul.f32 %v2919_v1, %v487_v32 }
 0x15b   : > { %1992 = vst [vmem:[%s2931_s20 + $0x860] sm:$0xff] %v1224_v36  ;;  %v489_v36 = vld [vmem:[%s2912_s4 + $0x970] sm:$0xff]  ;;  %v1257_v39 = vmul.f32 %v2919_v1, %v488_v34 }
 0x15c   : > { %1993 = vst [vmem:[%s2931_s20 + $0x868] sm:$0xff] %v1225_v38  ;;  %v490_v38 = vld [vmem:[%s2912_s4 + $0x978] sm:$0xff]  ;;  %v1258_v41 = vmul.f32 %v2919_v1, %v489_v36 }
 0x15d   : > { %1994 = vst [vmem:[%s2931_s20 + $0x870] sm:$0xff] %v1226_v40  ;;  %v491_v40 = vld [vmem:[%s2912_s4 + $0x980] sm:$0xff]  ;;  %v1259_v43 = vmul.f32 %v2919_v1, %v490_v38 }
 0x15e   : > { %1995 = vst [vmem:[%s2931_s20 + $0x878] sm:$0xff] %v1227_v42  ;;  %v492_v42 = vld [vmem:[%s2912_s4 + $0x988] sm:$0xff]  ;;  %v1260_v45 = vmul.f32 %v2919_v1, %v491_v40 }
 0x15f   : > { %1996 = vst [vmem:[%s2931_s20 + $0x880] sm:$0xff] %v1228_v44  ;;  %v493_v44 = vld [vmem:[%s2912_s4 + $0x990] sm:$0xff]  ;;  %v1261_v47 = vmul.f32 %v2919_v1, %v492_v42 }
 0x160   : > { %1997 = vst [vmem:[%s2931_s20 + $0x888] sm:$0xff] %v1229_v46  ;;  %v494_v46 = vld [vmem:[%s2912_s4 + $0x998] sm:$0xff]  ;;  %v1262_v49 = vmul.f32 %v2919_v1, %v493_v44 }
 0x161   : > { %1998 = vst [vmem:[%s2931_s20 + $0x890] sm:$0xff] %v1230_v48  ;;  %v495_v48 = vld [vmem:[%s2912_s4 + $0x9a0] sm:$0xff]  ;;  %v1263_v51 = vmul.f32 %v2919_v1, %v494_v46 }
 0x162   : > { %1999 = vst [vmem:[%s2931_s20 + $0x898] sm:$0xff] %v1231_v50  ;;  %v496_v50 = vld [vmem:[%s2912_s4 + $0x9a8] sm:$0xff]  ;;  %v1264_v53 = vmul.f32 %v2919_v1, %v495_v48 }
 0x163   : > { %2000 = vst [vmem:[%s2931_s20 + $0x8a0] sm:$0xff] %v1232_v52  ;;  %v497_v52 = vld [vmem:[%s2912_s4 + $0x9b0] sm:$0xff]  ;;  %v1265_v55 = vmul.f32 %v2919_v1, %v496_v50 }
 0x164   : > { %2001 = vst [vmem:[%s2931_s20 + $0x8a8] sm:$0xff] %v1233_v54  ;;  %v498_v54 = vld [vmem:[%s2912_s4 + $0x9b8] sm:$0xff]  ;;  %v1266_v57 = vmul.f32 %v2919_v1, %v497_v52 }
 0x165   : > { %2002 = vst [vmem:[%s2931_s20 + $0x8b0] sm:$0xff] %v1234_v56  ;;  %v499_v56 = vld [vmem:[%s2912_s4 + $0x9c0] sm:$0xff]  ;;  %v1267_v59 = vmul.f32 %v2919_v1, %v498_v54 }
 0x166   : > { %2003 = vst [vmem:[%s2931_s20 + $0x8b8] sm:$0xff] %v1235_v58  ;;  %v500_v58 = vld [vmem:[%s2912_s4 + $0x9c8] sm:$0xff]  ;;  %v1268_v61 = vmul.f32 %v2919_v1, %v499_v56 }
 0x167   : > { %2004 = vst [vmem:[%s2931_s20 + $0x8c0] sm:$0xff] %v1236_v60  ;;  %v501_v60 = vld [vmem:[%s2912_s4 + $0x9d0] sm:$0xff]  ;;  %v1269_v63 = vmul.f32 %v2919_v1, %v500_v58 }
 0x168   : > { %2005 = vst [vmem:[%s2931_s20 + $0x8c8] sm:$0xff] %v1237_v62  ;;  %v502_v62 = vld [vmem:[%s2912_s4 + $0x9d8] sm:$0xff]  ;;  %v1270_v2 = vmul.f32 %v2919_v1, %v501_v60 }
 0x169   : > { %2006 = vst [vmem:[%s2931_s20 + $0x8d0] sm:$0xff] %v1238_v0  ;;  %v503_v0 = vld [vmem:[%s2912_s4 + $0x9e0] sm:$0xff]  ;;  %v1271_v4 = vmul.f32 %v2919_v1, %v502_v62 }
 0x16a   : > { %2007 = vst [vmem:[%s2931_s20 + $0x8d8] sm:$0xff] %v1239_v3  ;;  %v504_v3 = vld [vmem:[%s2912_s4 + $0x9e8] sm:$0xff]  ;;  %v1272_v6 = vmul.f32 %v2919_v1, %v503_v0 }
 0x16b   : > { %2008 = vst [vmem:[%s2931_s20 + $0x8e0] sm:$0xff] %v1240_v5  ;;  %v505_v5 = vld [vmem:[%s2912_s4 + $0x9f0] sm:$0xff]  ;;  %v1273_v8 = vmul.f32 %v2919_v1, %v504_v3 }
 0x16c   : > { %2009 = vst [vmem:[%s2931_s20 + $0x8e8] sm:$0xff] %v1241_v7  ;;  %v506_v7 = vld [vmem:[%s2912_s4 + $0x9f8] sm:$0xff]  ;;  %v1274_v10 = vmul.f32 %v2919_v1, %v505_v5 }
 0x16d   : > { %2010 = vst [vmem:[%s2931_s20 + $0x8f0] sm:$0xff] %v1242_v9  ;;  %v507_v9 = vld [vmem:[%s2912_s4 + $0xa00] sm:$0xff]  ;;  %v1275_v12 = vmul.f32 %v2919_v1, %v506_v7 }
 0x16e   : > { %2011 = vst [vmem:[%s2931_s20 + $0x8f8] sm:$0xff] %v1243_v11  ;;  %v508_v11 = vld [vmem:[%s2912_s4 + $0xa08] sm:$0xff]  ;;  %v1276_v14 = vmul.f32 %v2919_v1, %v507_v9 }
 0x16f   : > { %2012 = vst [vmem:[%s2931_s20 + $0x900] sm:$0xff] %v1244_v13  ;;  %v509_v13 = vld [vmem:[%s2912_s4 + $0xa10] sm:$0xff]  ;;  %v1277_v16 = vmul.f32 %v2919_v1, %v508_v11 }
 0x170   : > { %2013 = vst [vmem:[%s2931_s20 + $0x908] sm:$0xff] %v1245_v15  ;;  %v510_v15 = vld [vmem:[%s2912_s4 + $0xa18] sm:$0xff]  ;;  %v1278_v18 = vmul.f32 %v2919_v1, %v509_v13 }
 0x171   : > { %2014 = vst [vmem:[%s2931_s20 + $0x910] sm:$0xff] %v1246_v17  ;;  %v511_v17 = vld [vmem:[%s2912_s4 + $0xa20] sm:$0xff]  ;;  %v1279_v20 = vmul.f32 %v2919_v1, %v510_v15 }
 0x172   : > { %2015 = vst [vmem:[%s2931_s20 + $0x918] sm:$0xff] %v1247_v19  ;;  %v512_v19 = vld [vmem:[%s2912_s4 + $0xa28] sm:$0xff]  ;;  %v1280_v22 = vmul.f32 %v2919_v1, %v511_v17 }
 0x173   : > { %2016 = vst [vmem:[%s2931_s20 + $0x920] sm:$0xff] %v1248_v21  ;;  %v513_v21 = vld [vmem:[%s2912_s4 + $0xa30] sm:$0xff]  ;;  %v1281_v24 = vmul.f32 %v2919_v1, %v512_v19 }
 0x174   : > { %2017 = vst [vmem:[%s2931_s20 + $0x928] sm:$0xff] %v1249_v23  ;;  %v514_v23 = vld [vmem:[%s2912_s4 + $0xa38] sm:$0xff]  ;;  %v1282_v26 = vmul.f32 %v2919_v1, %v513_v21 }
 0x175   : > { %2018 = vst [vmem:[%s2931_s20 + $0x930] sm:$0xff] %v1250_v25  ;;  %v515_v25 = vld [vmem:[%s2912_s4 + $0xa40] sm:$0xff]  ;;  %v1283_v28 = vmul.f32 %v2919_v1, %v514_v23 }
 0x176   : > { %2019 = vst [vmem:[%s2931_s20 + $0x938] sm:$0xff] %v1251_v27  ;;  %v516_v27 = vld [vmem:[%s2912_s4 + $0xa48] sm:$0xff]  ;;  %v1284_v30 = vmul.f32 %v2919_v1, %v515_v25 }
 0x177   : > { %2020 = vst [vmem:[%s2931_s20 + $0x940] sm:$0xff] %v1252_v29  ;;  %v517_v29 = vld [vmem:[%s2912_s4 + $0xa50] sm:$0xff]  ;;  %v1285_v32 = vmul.f32 %v2919_v1, %v516_v27 }
 0x178   : > { %2021 = vst [vmem:[%s2931_s20 + $0x948] sm:$0xff] %v1253_v31  ;;  %v518_v31 = vld [vmem:[%s2912_s4 + $0xa58] sm:$0xff]  ;;  %v1286_v34 = vmul.f32 %v2919_v1, %v517_v29 }
 0x179   : > { %2022 = vst [vmem:[%s2931_s20 + $0x950] sm:$0xff] %v1254_v33  ;;  %v519_v33 = vld [vmem:[%s2912_s4 + $0xa60] sm:$0xff]  ;;  %v1287_v36 = vmul.f32 %v2919_v1, %v518_v31 }
 0x17a   : > { %2023 = vst [vmem:[%s2931_s20 + $0x958] sm:$0xff] %v1255_v35  ;;  %v520_v35 = vld [vmem:[%s2912_s4 + $0xa68] sm:$0xff]  ;;  %v1288_v38 = vmul.f32 %v2919_v1, %v519_v33 }
 0x17b   : > { %2024 = vst [vmem:[%s2931_s20 + $0x960] sm:$0xff] %v1256_v37  ;;  %v521_v37 = vld [vmem:[%s2912_s4 + $0xa70] sm:$0xff]  ;;  %v1289_v40 = vmul.f32 %v2919_v1, %v520_v35 }
 0x17c   : > { %2025 = vst [vmem:[%s2931_s20 + $0x968] sm:$0xff] %v1257_v39  ;;  %v522_v39 = vld [vmem:[%s2912_s4 + $0xa78] sm:$0xff]  ;;  %v1290_v42 = vmul.f32 %v2919_v1, %v521_v37 }
 0x17d   : > { %2026 = vst [vmem:[%s2931_s20 + $0x970] sm:$0xff] %v1258_v41  ;;  %v523_v41 = vld [vmem:[%s2912_s4 + $0xa80] sm:$0xff]  ;;  %v1291_v44 = vmul.f32 %v2919_v1, %v522_v39 }
 0x17e   : > { %2027 = vst [vmem:[%s2931_s20 + $0x978] sm:$0xff] %v1259_v43  ;;  %v524_v43 = vld [vmem:[%s2912_s4 + $0xa88] sm:$0xff]  ;;  %v1292_v46 = vmul.f32 %v2919_v1, %v523_v41 }
 0x17f   : > { %2028 = vst [vmem:[%s2931_s20 + $0x980] sm:$0xff] %v1260_v45  ;;  %v525_v45 = vld [vmem:[%s2912_s4 + $0xa90] sm:$0xff]  ;;  %v1293_v48 = vmul.f32 %v2919_v1, %v524_v43 }
 0x180   : > { %2029 = vst [vmem:[%s2931_s20 + $0x988] sm:$0xff] %v1261_v47  ;;  %v526_v47 = vld [vmem:[%s2912_s4 + $0xa98] sm:$0xff]  ;;  %v1294_v50 = vmul.f32 %v2919_v1, %v525_v45 }
 0x181   : > { %2030 = vst [vmem:[%s2931_s20 + $0x990] sm:$0xff] %v1262_v49  ;;  %v527_v49 = vld [vmem:[%s2912_s4 + $0xaa0] sm:$0xff]  ;;  %v1295_v52 = vmul.f32 %v2919_v1, %v526_v47 }
 0x182   : > { %2031 = vst [vmem:[%s2931_s20 + $0x998] sm:$0xff] %v1263_v51  ;;  %v528_v51 = vld [vmem:[%s2912_s4 + $0xaa8] sm:$0xff]  ;;  %v1296_v54 = vmul.f32 %v2919_v1, %v527_v49 }
 0x183   : > { %2032 = vst [vmem:[%s2931_s20 + $0x9a0] sm:$0xff] %v1264_v53  ;;  %v529_v53 = vld [vmem:[%s2912_s4 + $0xab0] sm:$0xff]  ;;  %v1297_v56 = vmul.f32 %v2919_v1, %v528_v51 }
 0x184   : > { %2033 = vst [vmem:[%s2931_s20 + $0x9a8] sm:$0xff] %v1265_v55  ;;  %v530_v55 = vld [vmem:[%s2912_s4 + $0xab8] sm:$0xff]  ;;  %v1298_v58 = vmul.f32 %v2919_v1, %v529_v53 }
 0x185   : > { %2034 = vst [vmem:[%s2931_s20 + $0x9b0] sm:$0xff] %v1266_v57  ;;  %v531_v57 = vld [vmem:[%s2912_s4 + $0xac0] sm:$0xff]  ;;  %v1299_v60 = vmul.f32 %v2919_v1, %v530_v55 }
 0x186   : > { %2035 = vst [vmem:[%s2931_s20 + $0x9b8] sm:$0xff] %v1267_v59  ;;  %v532_v59 = vld [vmem:[%s2912_s4 + $0xac8] sm:$0xff]  ;;  %v1300_v62 = vmul.f32 %v2919_v1, %v531_v57 }
 0x187   : > { %2036 = vst [vmem:[%s2931_s20 + $0x9c0] sm:$0xff] %v1268_v61  ;;  %v533_v61 = vld [vmem:[%s2912_s4 + $0xad0] sm:$0xff]  ;;  %v1301_v0 = vmul.f32 %v2919_v1, %v532_v59 }
 0x188   : > { %2037 = vst [vmem:[%s2931_s20 + $0x9c8] sm:$0xff] %v1269_v63  ;;  %v534_v63 = vld [vmem:[%s2912_s4 + $0xad8] sm:$0xff]  ;;  %v1302_v3 = vmul.f32 %v2919_v1, %v533_v61 }
 0x189   : > { %2038 = vst [vmem:[%s2931_s20 + $0x9d0] sm:$0xff] %v1270_v2  ;;  %v535_v2 = vld [vmem:[%s2912_s4 + $0xae0] sm:$0xff]  ;;  %v1303_v5 = vmul.f32 %v2919_v1, %v534_v63 }
 0x18a   : > { %2039 = vst [vmem:[%s2931_s20 + $0x9d8] sm:$0xff] %v1271_v4  ;;  %v536_v4 = vld [vmem:[%s2912_s4 + $0xae8] sm:$0xff]  ;;  %v1304_v7 = vmul.f32 %v2919_v1, %v535_v2 }
 0x18b   : > { %2040 = vst [vmem:[%s2931_s20 + $0x9e0] sm:$0xff] %v1272_v6  ;;  %v537_v6 = vld [vmem:[%s2912_s4 + $0xaf0] sm:$0xff]  ;;  %v1305_v9 = vmul.f32 %v2919_v1, %v536_v4 }
 0x18c   : > { %2041 = vst [vmem:[%s2931_s20 + $0x9e8] sm:$0xff] %v1273_v8  ;;  %v538_v8 = vld [vmem:[%s2912_s4 + $0xaf8] sm:$0xff]  ;;  %v1306_v11 = vmul.f32 %v2919_v1, %v537_v6 }
 0x18d   : > { %2042 = vst [vmem:[%s2931_s20 + $0x9f0] sm:$0xff] %v1274_v10  ;;  %v539_v10 = vld [vmem:[%s2912_s4 + $0xb00] sm:$0xff]  ;;  %v1307_v13 = vmul.f32 %v2919_v1, %v538_v8 }
 0x18e   : > { %2043 = vst [vmem:[%s2931_s20 + $0x9f8] sm:$0xff] %v1275_v12  ;;  %v540_v12 = vld [vmem:[%s2912_s4 + $0xb08] sm:$0xff]  ;;  %v1308_v15 = vmul.f32 %v2919_v1, %v539_v10 }
 0x18f   : > { %2044 = vst [vmem:[%s2931_s20 + $0xa00] sm:$0xff] %v1276_v14  ;;  %v541_v14 = vld [vmem:[%s2912_s4 + $0xb10] sm:$0xff]  ;;  %v1309_v17 = vmul.f32 %v2919_v1, %v540_v12 }
 0x190   : > { %2045 = vst [vmem:[%s2931_s20 + $0xa08] sm:$0xff] %v1277_v16  ;;  %v542_v16 = vld [vmem:[%s2912_s4 + $0xb18] sm:$0xff]  ;;  %v1310_v19 = vmul.f32 %v2919_v1, %v541_v14 }
 0x191   : > { %2046 = vst [vmem:[%s2931_s20 + $0xa10] sm:$0xff] %v1278_v18  ;;  %v543_v18 = vld [vmem:[%s2912_s4 + $0xb20] sm:$0xff]  ;;  %v1311_v21 = vmul.f32 %v2919_v1, %v542_v16 }
 0x192   : > { %2047 = vst [vmem:[%s2931_s20 + $0xa18] sm:$0xff] %v1279_v20  ;;  %v544_v20 = vld [vmem:[%s2912_s4 + $0xb28] sm:$0xff]  ;;  %v1312_v23 = vmul.f32 %v2919_v1, %v543_v18 }
 0x193   : > { %2048 = vst [vmem:[%s2931_s20 + $0xa20] sm:$0xff] %v1280_v22  ;;  %v545_v22 = vld [vmem:[%s2912_s4 + $0xb30] sm:$0xff]  ;;  %v1313_v25 = vmul.f32 %v2919_v1, %v544_v20 }
 0x194   : > { %2049 = vst [vmem:[%s2931_s20 + $0xa28] sm:$0xff] %v1281_v24  ;;  %v546_v24 = vld [vmem:[%s2912_s4 + $0xb38] sm:$0xff]  ;;  %v1314_v27 = vmul.f32 %v2919_v1, %v545_v22 }
 0x195   : > { %2050 = vst [vmem:[%s2931_s20 + $0xa30] sm:$0xff] %v1282_v26  ;;  %v547_v26 = vld [vmem:[%s2912_s4 + $0xb40] sm:$0xff]  ;;  %v1315_v29 = vmul.f32 %v2919_v1, %v546_v24 }
 0x196   : > { %2051 = vst [vmem:[%s2931_s20 + $0xa38] sm:$0xff] %v1283_v28  ;;  %v548_v28 = vld [vmem:[%s2912_s4 + $0xb48] sm:$0xff]  ;;  %v1316_v31 = vmul.f32 %v2919_v1, %v547_v26 }
 0x197   : > { %2052 = vst [vmem:[%s2931_s20 + $0xa40] sm:$0xff] %v1284_v30  ;;  %v549_v30 = vld [vmem:[%s2912_s4 + $0xb50] sm:$0xff]  ;;  %v1317_v33 = vmul.f32 %v2919_v1, %v548_v28 }
 0x198   : > { %2053 = vst [vmem:[%s2931_s20 + $0xa48] sm:$0xff] %v1285_v32  ;;  %v550_v32 = vld [vmem:[%s2912_s4 + $0xb58] sm:$0xff]  ;;  %v1318_v35 = vmul.f32 %v2919_v1, %v549_v30 }
 0x199   : > { %2054 = vst [vmem:[%s2931_s20 + $0xa50] sm:$0xff] %v1286_v34  ;;  %v551_v34 = vld [vmem:[%s2912_s4 + $0xb60] sm:$0xff]  ;;  %v1319_v37 = vmul.f32 %v2919_v1, %v550_v32 }
 0x19a   : > { %2055 = vst [vmem:[%s2931_s20 + $0xa58] sm:$0xff] %v1287_v36  ;;  %v552_v36 = vld [vmem:[%s2912_s4 + $0xb68] sm:$0xff]  ;;  %v1320_v39 = vmul.f32 %v2919_v1, %v551_v34 }
 0x19b   : > { %2056 = vst [vmem:[%s2931_s20 + $0xa60] sm:$0xff] %v1288_v38  ;;  %v553_v38 = vld [vmem:[%s2912_s4 + $0xb70] sm:$0xff]  ;;  %v1321_v41 = vmul.f32 %v2919_v1, %v552_v36 }
 0x19c   : > { %2057 = vst [vmem:[%s2931_s20 + $0xa68] sm:$0xff] %v1289_v40  ;;  %v554_v40 = vld [vmem:[%s2912_s4 + $0xb78] sm:$0xff]  ;;  %v1322_v43 = vmul.f32 %v2919_v1, %v553_v38 }
 0x19d   : > { %2058 = vst [vmem:[%s2931_s20 + $0xa70] sm:$0xff] %v1290_v42  ;;  %v555_v42 = vld [vmem:[%s2912_s4 + $0xb80] sm:$0xff]  ;;  %v1323_v45 = vmul.f32 %v2919_v1, %v554_v40 }
 0x19e   : > { %2059 = vst [vmem:[%s2931_s20 + $0xa78] sm:$0xff] %v1291_v44  ;;  %v556_v44 = vld [vmem:[%s2912_s4 + $0xb88] sm:$0xff]  ;;  %v1324_v47 = vmul.f32 %v2919_v1, %v555_v42 }
 0x19f   : > { %2060 = vst [vmem:[%s2931_s20 + $0xa80] sm:$0xff] %v1292_v46  ;;  %v557_v46 = vld [vmem:[%s2912_s4 + $0xb90] sm:$0xff]  ;;  %v1325_v49 = vmul.f32 %v2919_v1, %v556_v44 }
 0x1a0   : > { %2061 = vst [vmem:[%s2931_s20 + $0xa88] sm:$0xff] %v1293_v48  ;;  %v558_v48 = vld [vmem:[%s2912_s4 + $0xb98] sm:$0xff]  ;;  %v1326_v51 = vmul.f32 %v2919_v1, %v557_v46 }
 0x1a1   : > { %2062 = vst [vmem:[%s2931_s20 + $0xa90] sm:$0xff] %v1294_v50  ;;  %v559_v50 = vld [vmem:[%s2912_s4 + $0xba0] sm:$0xff]  ;;  %v1327_v53 = vmul.f32 %v2919_v1, %v558_v48 }
 0x1a2   : > { %2063 = vst [vmem:[%s2931_s20 + $0xa98] sm:$0xff] %v1295_v52  ;;  %v560_v52 = vld [vmem:[%s2912_s4 + $0xba8] sm:$0xff]  ;;  %v1328_v55 = vmul.f32 %v2919_v1, %v559_v50 }
 0x1a3   : > { %2064 = vst [vmem:[%s2931_s20 + $0xaa0] sm:$0xff] %v1296_v54  ;;  %v561_v54 = vld [vmem:[%s2912_s4 + $0xbb0] sm:$0xff]  ;;  %v1329_v57 = vmul.f32 %v2919_v1, %v560_v52 }
 0x1a4   : > { %2065 = vst [vmem:[%s2931_s20 + $0xaa8] sm:$0xff] %v1297_v56  ;;  %v562_v56 = vld [vmem:[%s2912_s4 + $0xbb8] sm:$0xff]  ;;  %v1330_v59 = vmul.f32 %v2919_v1, %v561_v54 }
 0x1a5   : > { %2066 = vst [vmem:[%s2931_s20 + $0xab0] sm:$0xff] %v1298_v58  ;;  %v563_v58 = vld [vmem:[%s2912_s4 + $0xbc0] sm:$0xff]  ;;  %v1331_v61 = vmul.f32 %v2919_v1, %v562_v56 }
 0x1a6   : > { %2067 = vst [vmem:[%s2931_s20 + $0xab8] sm:$0xff] %v1299_v60  ;;  %v564_v60 = vld [vmem:[%s2912_s4 + $0xbc8] sm:$0xff]  ;;  %v1332_v63 = vmul.f32 %v2919_v1, %v563_v58 }
 0x1a7   : > { %2068 = vst [vmem:[%s2931_s20 + $0xac0] sm:$0xff] %v1300_v62  ;;  %v565_v62 = vld [vmem:[%s2912_s4 + $0xbd0] sm:$0xff]  ;;  %v1333_v2 = vmul.f32 %v2919_v1, %v564_v60 }
 0x1a8   : > { %2069 = vst [vmem:[%s2931_s20 + $0xac8] sm:$0xff] %v1301_v0  ;;  %v566_v0 = vld [vmem:[%s2912_s4 + $0xbd8] sm:$0xff]  ;;  %v1334_v4 = vmul.f32 %v2919_v1, %v565_v62 }
 0x1a9   : > { %2070 = vst [vmem:[%s2931_s20 + $0xad0] sm:$0xff] %v1302_v3  ;;  %v567_v3 = vld [vmem:[%s2912_s4 + $0xbe0] sm:$0xff]  ;;  %v1335_v6 = vmul.f32 %v2919_v1, %v566_v0 }
 0x1aa   : > { %2071 = vst [vmem:[%s2931_s20 + $0xad8] sm:$0xff] %v1303_v5  ;;  %v568_v5 = vld [vmem:[%s2912_s4 + $0xbe8] sm:$0xff]  ;;  %v1336_v8 = vmul.f32 %v2919_v1, %v567_v3 }
 0x1ab   : > { %2072 = vst [vmem:[%s2931_s20 + $0xae0] sm:$0xff] %v1304_v7  ;;  %v569_v7 = vld [vmem:[%s2912_s4 + $0xbf0] sm:$0xff]  ;;  %v1337_v10 = vmul.f32 %v2919_v1, %v568_v5 }
 0x1ac   : > { %2073 = vst [vmem:[%s2931_s20 + $0xae8] sm:$0xff] %v1305_v9  ;;  %v570_v9 = vld [vmem:[%s2912_s4 + $0xbf8] sm:$0xff]  ;;  %v1338_v12 = vmul.f32 %v2919_v1, %v569_v7 }
 0x1ad   : > { %2074 = vst [vmem:[%s2931_s20 + $0xaf0] sm:$0xff] %v1306_v11  ;;  %v571_v11 = vld [vmem:[%s2912_s4 + $0xc00] sm:$0xff]  ;;  %v1339_v14 = vmul.f32 %v2919_v1, %v570_v9 }
 0x1ae   : > { %2075 = vst [vmem:[%s2931_s20 + $0xaf8] sm:$0xff] %v1307_v13  ;;  %v572_v13 = vld [vmem:[%s2912_s4 + $0xc08] sm:$0xff]  ;;  %v1340_v16 = vmul.f32 %v2919_v1, %v571_v11 }
 0x1af   : > { %2076 = vst [vmem:[%s2931_s20 + $0xb00] sm:$0xff] %v1308_v15  ;;  %v573_v15 = vld [vmem:[%s2912_s4 + $0xc10] sm:$0xff]  ;;  %v1341_v18 = vmul.f32 %v2919_v1, %v572_v13 }
 0x1b0   : > { %2077 = vst [vmem:[%s2931_s20 + $0xb08] sm:$0xff] %v1309_v17  ;;  %v574_v17 = vld [vmem:[%s2912_s4 + $0xc18] sm:$0xff]  ;;  %v1342_v20 = vmul.f32 %v2919_v1, %v573_v15 }
 0x1b1   : > { %2078 = vst [vmem:[%s2931_s20 + $0xb10] sm:$0xff] %v1310_v19  ;;  %v575_v19 = vld [vmem:[%s2912_s4 + $0xc20] sm:$0xff]  ;;  %v1343_v22 = vmul.f32 %v2919_v1, %v574_v17 }
 0x1b2   : > { %2079 = vst [vmem:[%s2931_s20 + $0xb18] sm:$0xff] %v1311_v21  ;;  %v576_v21 = vld [vmem:[%s2912_s4 + $0xc28] sm:$0xff]  ;;  %v1344_v24 = vmul.f32 %v2919_v1, %v575_v19 }
 0x1b3   : > { %2080 = vst [vmem:[%s2931_s20 + $0xb20] sm:$0xff] %v1312_v23  ;;  %v577_v23 = vld [vmem:[%s2912_s4 + $0xc30] sm:$0xff]  ;;  %v1345_v26 = vmul.f32 %v2919_v1, %v576_v21 }
 0x1b4   : > { %2081 = vst [vmem:[%s2931_s20 + $0xb28] sm:$0xff] %v1313_v25  ;;  %v578_v25 = vld [vmem:[%s2912_s4 + $0xc38] sm:$0xff]  ;;  %v1346_v28 = vmul.f32 %v2919_v1, %v577_v23 }
 0x1b5   : > { %2082 = vst [vmem:[%s2931_s20 + $0xb30] sm:$0xff] %v1314_v27  ;;  %v579_v27 = vld [vmem:[%s2912_s4 + $0xc40] sm:$0xff]  ;;  %v1347_v30 = vmul.f32 %v2919_v1, %v578_v25 }
 0x1b6   : > { %2083 = vst [vmem:[%s2931_s20 + $0xb38] sm:$0xff] %v1315_v29  ;;  %v580_v29 = vld [vmem:[%s2912_s4 + $0xc48] sm:$0xff]  ;;  %v1348_v32 = vmul.f32 %v2919_v1, %v579_v27 }
 0x1b7   : > { %2084 = vst [vmem:[%s2931_s20 + $0xb40] sm:$0xff] %v1316_v31  ;;  %v581_v31 = vld [vmem:[%s2912_s4 + $0xc50] sm:$0xff]  ;;  %v1349_v34 = vmul.f32 %v2919_v1, %v580_v29 }
 0x1b8   : > { %2085 = vst [vmem:[%s2931_s20 + $0xb48] sm:$0xff] %v1317_v33  ;;  %v582_v33 = vld [vmem:[%s2912_s4 + $0xc58] sm:$0xff]  ;;  %v1350_v36 = vmul.f32 %v2919_v1, %v581_v31 }
 0x1b9   : > { %2086 = vst [vmem:[%s2931_s20 + $0xb50] sm:$0xff] %v1318_v35  ;;  %v583_v35 = vld [vmem:[%s2912_s4 + $0xc60] sm:$0xff]  ;;  %v1351_v38 = vmul.f32 %v2919_v1, %v582_v33 }
 0x1ba   : > { %2087 = vst [vmem:[%s2931_s20 + $0xb58] sm:$0xff] %v1319_v37  ;;  %v584_v37 = vld [vmem:[%s2912_s4 + $0xc68] sm:$0xff]  ;;  %v1352_v40 = vmul.f32 %v2919_v1, %v583_v35 }
 0x1bb   : > { %2088 = vst [vmem:[%s2931_s20 + $0xb60] sm:$0xff] %v1320_v39  ;;  %v585_v39 = vld [vmem:[%s2912_s4 + $0xc70] sm:$0xff]  ;;  %v1353_v42 = vmul.f32 %v2919_v1, %v584_v37 }
 0x1bc   : > { %2089 = vst [vmem:[%s2931_s20 + $0xb68] sm:$0xff] %v1321_v41  ;;  %v586_v41 = vld [vmem:[%s2912_s4 + $0xc78] sm:$0xff]  ;;  %v1354_v44 = vmul.f32 %v2919_v1, %v585_v39 }
 0x1bd   : > { %2090 = vst [vmem:[%s2931_s20 + $0xb70] sm:$0xff] %v1322_v43  ;;  %v587_v43 = vld [vmem:[%s2912_s4 + $0xc80] sm:$0xff]  ;;  %v1355_v46 = vmul.f32 %v2919_v1, %v586_v41 }
 0x1be   : > { %2091 = vst [vmem:[%s2931_s20 + $0xb78] sm:$0xff] %v1323_v45  ;;  %v588_v45 = vld [vmem:[%s2912_s4 + $0xc88] sm:$0xff]  ;;  %v1356_v48 = vmul.f32 %v2919_v1, %v587_v43 }
 0x1bf   : > { %2092 = vst [vmem:[%s2931_s20 + $0xb80] sm:$0xff] %v1324_v47  ;;  %v589_v47 = vld [vmem:[%s2912_s4 + $0xc90] sm:$0xff]  ;;  %v1357_v50 = vmul.f32 %v2919_v1, %v588_v45 }
 0x1c0   : > { %2093 = vst [vmem:[%s2931_s20 + $0xb88] sm:$0xff] %v1325_v49  ;;  %v590_v49 = vld [vmem:[%s2912_s4 + $0xc98] sm:$0xff]  ;;  %v1358_v52 = vmul.f32 %v2919_v1, %v589_v47 }
 0x1c1   : > { %2094 = vst [vmem:[%s2931_s20 + $0xb90] sm:$0xff] %v1326_v51  ;;  %v591_v51 = vld [vmem:[%s2912_s4 + $0xca0] sm:$0xff]  ;;  %v1359_v54 = vmul.f32 %v2919_v1, %v590_v49 }
 0x1c2   : > { %2095 = vst [vmem:[%s2931_s20 + $0xb98] sm:$0xff] %v1327_v53  ;;  %v592_v53 = vld [vmem:[%s2912_s4 + $0xca8] sm:$0xff]  ;;  %v1360_v56 = vmul.f32 %v2919_v1, %v591_v51 }
 0x1c3   : > { %2096 = vst [vmem:[%s2931_s20 + $0xba0] sm:$0xff] %v1328_v55  ;;  %v593_v55 = vld [vmem:[%s2912_s4 + $0xcb0] sm:$0xff]  ;;  %v1361_v58 = vmul.f32 %v2919_v1, %v592_v53 }
 0x1c4   : > { %2097 = vst [vmem:[%s2931_s20 + $0xba8] sm:$0xff] %v1329_v57  ;;  %v594_v57 = vld [vmem:[%s2912_s4 + $0xcb8] sm:$0xff]  ;;  %v1362_v60 = vmul.f32 %v2919_v1, %v593_v55 }
 0x1c5   : > { %2098 = vst [vmem:[%s2931_s20 + $0xbb0] sm:$0xff] %v1330_v59  ;;  %v595_v59 = vld [vmem:[%s2912_s4 + $0xcc0] sm:$0xff]  ;;  %v1363_v62 = vmul.f32 %v2919_v1, %v594_v57 }
 0x1c6   : > { %2099 = vst [vmem:[%s2931_s20 + $0xbb8] sm:$0xff] %v1331_v61  ;;  %v596_v61 = vld [vmem:[%s2912_s4 + $0xcc8] sm:$0xff]  ;;  %v1364_v0 = vmul.f32 %v2919_v1, %v595_v59 }
 0x1c7   : > { %2100 = vst [vmem:[%s2931_s20 + $0xbc0] sm:$0xff] %v1332_v63  ;;  %v597_v63 = vld [vmem:[%s2912_s4 + $0xcd0] sm:$0xff]  ;;  %v1365_v3 = vmul.f32 %v2919_v1, %v596_v61 }
 0x1c8   : > { %2101 = vst [vmem:[%s2931_s20 + $0xbc8] sm:$0xff] %v1333_v2  ;;  %v598_v2 = vld [vmem:[%s2912_s4 + $0xcd8] sm:$0xff]  ;;  %v1366_v5 = vmul.f32 %v2919_v1, %v597_v63 }
 0x1c9   : > { %2102 = vst [vmem:[%s2931_s20 + $0xbd0] sm:$0xff] %v1334_v4  ;;  %v599_v4 = vld [vmem:[%s2912_s4 + $0xce0] sm:$0xff]  ;;  %v1367_v7 = vmul.f32 %v2919_v1, %v598_v2 }
 0x1ca   : > { %2103 = vst [vmem:[%s2931_s20 + $0xbd8] sm:$0xff] %v1335_v6  ;;  %v600_v6 = vld [vmem:[%s2912_s4 + $0xce8] sm:$0xff]  ;;  %v1368_v9 = vmul.f32 %v2919_v1, %v599_v4 }
 0x1cb   : > { %2104 = vst [vmem:[%s2931_s20 + $0xbe0] sm:$0xff] %v1336_v8  ;;  %v601_v8 = vld [vmem:[%s2912_s4 + $0xcf0] sm:$0xff]  ;;  %v1369_v11 = vmul.f32 %v2919_v1, %v600_v6 }
 0x1cc   : > { %2105 = vst [vmem:[%s2931_s20 + $0xbe8] sm:$0xff] %v1337_v10  ;;  %v602_v10 = vld [vmem:[%s2912_s4 + $0xcf8] sm:$0xff]  ;;  %v1370_v13 = vmul.f32 %v2919_v1, %v601_v8 }
 0x1cd   : > { %2106 = vst [vmem:[%s2931_s20 + $0xbf0] sm:$0xff] %v1338_v12  ;;  %v603_v12 = vld [vmem:[%s2912_s4 + $0xd00] sm:$0xff]  ;;  %v1371_v15 = vmul.f32 %v2919_v1, %v602_v10 }
 0x1ce   : > { %2107 = vst [vmem:[%s2931_s20 + $0xbf8] sm:$0xff] %v1339_v14  ;;  %v604_v14 = vld [vmem:[%s2912_s4 + $0xd08] sm:$0xff]  ;;  %v1372_v17 = vmul.f32 %v2919_v1, %v603_v12 }
 0x1cf   : > { %2108 = vst [vmem:[%s2931_s20 + $0xc00] sm:$0xff] %v1340_v16  ;;  %v605_v16 = vld [vmem:[%s2912_s4 + $0xd10] sm:$0xff]  ;;  %v1373_v19 = vmul.f32 %v2919_v1, %v604_v14 }
 0x1d0   : > { %2109 = vst [vmem:[%s2931_s20 + $0xc08] sm:$0xff] %v1341_v18  ;;  %v606_v18 = vld [vmem:[%s2912_s4 + $0xd18] sm:$0xff]  ;;  %v1374_v21 = vmul.f32 %v2919_v1, %v605_v16 }
 0x1d1   : > { %2110 = vst [vmem:[%s2931_s20 + $0xc10] sm:$0xff] %v1342_v20  ;;  %v607_v20 = vld [vmem:[%s2912_s4 + $0xd20] sm:$0xff]  ;;  %v1375_v23 = vmul.f32 %v2919_v1, %v606_v18 }
 0x1d2   : > { %2111 = vst [vmem:[%s2931_s20 + $0xc18] sm:$0xff] %v1343_v22  ;;  %v608_v22 = vld [vmem:[%s2912_s4 + $0xd28] sm:$0xff]  ;;  %v1376_v25 = vmul.f32 %v2919_v1, %v607_v20 }
 0x1d3   : > { %2112 = vst [vmem:[%s2931_s20 + $0xc20] sm:$0xff] %v1344_v24  ;;  %v609_v24 = vld [vmem:[%s2912_s4 + $0xd30] sm:$0xff]  ;;  %v1377_v27 = vmul.f32 %v2919_v1, %v608_v22 }
 0x1d4   : > { %2113 = vst [vmem:[%s2931_s20 + $0xc28] sm:$0xff] %v1345_v26  ;;  %v610_v26 = vld [vmem:[%s2912_s4 + $0xd38] sm:$0xff]  ;;  %v1378_v29 = vmul.f32 %v2919_v1, %v609_v24 }
 0x1d5   : > { %2114 = vst [vmem:[%s2931_s20 + $0xc30] sm:$0xff] %v1346_v28  ;;  %v611_v28 = vld [vmem:[%s2912_s4 + $0xd40] sm:$0xff]  ;;  %v1379_v31 = vmul.f32 %v2919_v1, %v610_v26 }
 0x1d6   : > { %2115 = vst [vmem:[%s2931_s20 + $0xc38] sm:$0xff] %v1347_v30  ;;  %v612_v30 = vld [vmem:[%s2912_s4 + $0xd48] sm:$0xff]  ;;  %v1380_v33 = vmul.f32 %v2919_v1, %v611_v28 }
 0x1d7   : > { %2116 = vst [vmem:[%s2931_s20 + $0xc40] sm:$0xff] %v1348_v32  ;;  %v613_v32 = vld [vmem:[%s2912_s4 + $0xd50] sm:$0xff]  ;;  %v1381_v35 = vmul.f32 %v2919_v1, %v612_v30 }
 0x1d8   : > { %2117 = vst [vmem:[%s2931_s20 + $0xc48] sm:$0xff] %v1349_v34  ;;  %v614_v34 = vld [vmem:[%s2912_s4 + $0xd58] sm:$0xff]  ;;  %v1382_v37 = vmul.f32 %v2919_v1, %v613_v32 }
 0x1d9   : > { %2118 = vst [vmem:[%s2931_s20 + $0xc50] sm:$0xff] %v1350_v36  ;;  %v615_v36 = vld [vmem:[%s2912_s4 + $0xd60] sm:$0xff]  ;;  %v1383_v39 = vmul.f32 %v2919_v1, %v614_v34 }
 0x1da   : > { %2119 = vst [vmem:[%s2931_s20 + $0xc58] sm:$0xff] %v1351_v38  ;;  %v616_v38 = vld [vmem:[%s2912_s4 + $0xd68] sm:$0xff]  ;;  %v1384_v41 = vmul.f32 %v2919_v1, %v615_v36 }
 0x1db   : > { %2120 = vst [vmem:[%s2931_s20 + $0xc60] sm:$0xff] %v1352_v40  ;;  %v617_v40 = vld [vmem:[%s2912_s4 + $0xd70] sm:$0xff]  ;;  %v1385_v43 = vmul.f32 %v2919_v1, %v616_v38 }
 0x1dc   : > { %2121 = vst [vmem:[%s2931_s20 + $0xc68] sm:$0xff] %v1353_v42  ;;  %v618_v42 = vld [vmem:[%s2912_s4 + $0xd78] sm:$0xff]  ;;  %v1386_v45 = vmul.f32 %v2919_v1, %v617_v40 }
 0x1dd   : > { %2122 = vst [vmem:[%s2931_s20 + $0xc70] sm:$0xff] %v1354_v44  ;;  %v619_v44 = vld [vmem:[%s2912_s4 + $0xd80] sm:$0xff]  ;;  %v1387_v47 = vmul.f32 %v2919_v1, %v618_v42 }
 0x1de   : > { %2123 = vst [vmem:[%s2931_s20 + $0xc78] sm:$0xff] %v1355_v46  ;;  %v620_v46 = vld [vmem:[%s2912_s4 + $0xd88] sm:$0xff]  ;;  %v1388_v49 = vmul.f32 %v2919_v1, %v619_v44 }
 0x1df   : > { %2124 = vst [vmem:[%s2931_s20 + $0xc80] sm:$0xff] %v1356_v48  ;;  %v621_v48 = vld [vmem:[%s2912_s4 + $0xd90] sm:$0xff]  ;;  %v1389_v51 = vmul.f32 %v2919_v1, %v620_v46 }
 0x1e0   : > { %2125 = vst [vmem:[%s2931_s20 + $0xc88] sm:$0xff] %v1357_v50  ;;  %v622_v50 = vld [vmem:[%s2912_s4 + $0xd98] sm:$0xff]  ;;  %v1390_v53 = vmul.f32 %v2919_v1, %v621_v48 }
 0x1e1   : > { %2126 = vst [vmem:[%s2931_s20 + $0xc90] sm:$0xff] %v1358_v52  ;;  %v623_v52 = vld [vmem:[%s2912_s4 + $0xda0] sm:$0xff]  ;;  %v1391_v55 = vmul.f32 %v2919_v1, %v622_v50 }
 0x1e2   : > { %2127 = vst [vmem:[%s2931_s20 + $0xc98] sm:$0xff] %v1359_v54  ;;  %v624_v54 = vld [vmem:[%s2912_s4 + $0xda8] sm:$0xff]  ;;  %v1392_v57 = vmul.f32 %v2919_v1, %v623_v52 }
 0x1e3   : > { %2128 = vst [vmem:[%s2931_s20 + $0xca0] sm:$0xff] %v1360_v56  ;;  %v625_v56 = vld [vmem:[%s2912_s4 + $0xdb0] sm:$0xff]  ;;  %v1393_v59 = vmul.f32 %v2919_v1, %v624_v54 }
 0x1e4   : > { %2129 = vst [vmem:[%s2931_s20 + $0xca8] sm:$0xff] %v1361_v58  ;;  %v626_v58 = vld [vmem:[%s2912_s4 + $0xdb8] sm:$0xff]  ;;  %v1394_v61 = vmul.f32 %v2919_v1, %v625_v56 }
 0x1e5   : > { %2130 = vst [vmem:[%s2931_s20 + $0xcb0] sm:$0xff] %v1362_v60  ;;  %v627_v60 = vld [vmem:[%s2912_s4 + $0xdc0] sm:$0xff]  ;;  %v1395_v63 = vmul.f32 %v2919_v1, %v626_v58 }
 0x1e6   : > { %2131 = vst [vmem:[%s2931_s20 + $0xcb8] sm:$0xff] %v1363_v62  ;;  %v628_v62 = vld [vmem:[%s2912_s4 + $0xdc8] sm:$0xff]  ;;  %v1396_v2 = vmul.f32 %v2919_v1, %v627_v60 }
 0x1e7   : > { %2132 = vst [vmem:[%s2931_s20 + $0xcc0] sm:$0xff] %v1364_v0  ;;  %v629_v0 = vld [vmem:[%s2912_s4 + $0xdd0] sm:$0xff]  ;;  %v1397_v4 = vmul.f32 %v2919_v1, %v628_v62 }
 0x1e8   : > { %2133 = vst [vmem:[%s2931_s20 + $0xcc8] sm:$0xff] %v1365_v3  ;;  %v630_v3 = vld [vmem:[%s2912_s4 + $0xdd8] sm:$0xff]  ;;  %v1398_v6 = vmul.f32 %v2919_v1, %v629_v0 }
 0x1e9   : > { %2134 = vst [vmem:[%s2931_s20 + $0xcd0] sm:$0xff] %v1366_v5  ;;  %v631_v5 = vld [vmem:[%s2912_s4 + $0xde0] sm:$0xff]  ;;  %v1399_v8 = vmul.f32 %v2919_v1, %v630_v3 }
 0x1ea   : > { %2135 = vst [vmem:[%s2931_s20 + $0xcd8] sm:$0xff] %v1367_v7  ;;  %v632_v7 = vld [vmem:[%s2912_s4 + $0xde8] sm:$0xff]  ;;  %v1400_v10 = vmul.f32 %v2919_v1, %v631_v5 }
 0x1eb   : > { %2136 = vst [vmem:[%s2931_s20 + $0xce0] sm:$0xff] %v1368_v9  ;;  %v633_v9 = vld [vmem:[%s2912_s4 + $0xdf0] sm:$0xff]  ;;  %v1401_v12 = vmul.f32 %v2919_v1, %v632_v7 }
 0x1ec   : > { %2137 = vst [vmem:[%s2931_s20 + $0xce8] sm:$0xff] %v1369_v11  ;;  %v634_v11 = vld [vmem:[%s2912_s4 + $0xdf8] sm:$0xff]  ;;  %v1402_v14 = vmul.f32 %v2919_v1, %v633_v9 }
 0x1ed   : > { %2138 = vst [vmem:[%s2931_s20 + $0xcf0] sm:$0xff] %v1370_v13  ;;  %v635_v13 = vld [vmem:[%s2912_s4 + $0xe00] sm:$0xff]  ;;  %v1403_v16 = vmul.f32 %v2919_v1, %v634_v11 }
 0x1ee   : > { %2139 = vst [vmem:[%s2931_s20 + $0xcf8] sm:$0xff] %v1371_v15  ;;  %v636_v15 = vld [vmem:[%s2912_s4 + $0xe08] sm:$0xff]  ;;  %v1404_v18 = vmul.f32 %v2919_v1, %v635_v13 }
 0x1ef   : > { %2140 = vst [vmem:[%s2931_s20 + $0xd00] sm:$0xff] %v1372_v17  ;;  %v637_v17 = vld [vmem:[%s2912_s4 + $0xe10] sm:$0xff]  ;;  %v1405_v20 = vmul.f32 %v2919_v1, %v636_v15 }
 0x1f0   : > { %2141 = vst [vmem:[%s2931_s20 + $0xd08] sm:$0xff] %v1373_v19  ;;  %v638_v19 = vld [vmem:[%s2912_s4 + $0xe18] sm:$0xff]  ;;  %v1406_v22 = vmul.f32 %v2919_v1, %v637_v17 }
 0x1f1   : > { %2142 = vst [vmem:[%s2931_s20 + $0xd10] sm:$0xff] %v1374_v21  ;;  %v639_v21 = vld [vmem:[%s2912_s4 + $0xe20] sm:$0xff]  ;;  %v1407_v24 = vmul.f32 %v2919_v1, %v638_v19 }
 0x1f2   : > { %2143 = vst [vmem:[%s2931_s20 + $0xd18] sm:$0xff] %v1375_v23  ;;  %v640_v23 = vld [vmem:[%s2912_s4 + $0xe28] sm:$0xff]  ;;  %v1408_v26 = vmul.f32 %v2919_v1, %v639_v21 }
 0x1f3   : > { %2144 = vst [vmem:[%s2931_s20 + $0xd20] sm:$0xff] %v1376_v25  ;;  %v641_v25 = vld [vmem:[%s2912_s4 + $0xe30] sm:$0xff]  ;;  %v1409_v28 = vmul.f32 %v2919_v1, %v640_v23 }
 0x1f4   : > { %2145 = vst [vmem:[%s2931_s20 + $0xd28] sm:$0xff] %v1377_v27  ;;  %v642_v27 = vld [vmem:[%s2912_s4 + $0xe38] sm:$0xff]  ;;  %v1410_v30 = vmul.f32 %v2919_v1, %v641_v25 }
 0x1f5   : > { %2146 = vst [vmem:[%s2931_s20 + $0xd30] sm:$0xff] %v1378_v29  ;;  %v643_v29 = vld [vmem:[%s2912_s4 + $0xe40] sm:$0xff]  ;;  %v1411_v32 = vmul.f32 %v2919_v1, %v642_v27 }
 0x1f6   : > { %2147 = vst [vmem:[%s2931_s20 + $0xd38] sm:$0xff] %v1379_v31  ;;  %v644_v31 = vld [vmem:[%s2912_s4 + $0xe48] sm:$0xff]  ;;  %v1412_v34 = vmul.f32 %v2919_v1, %v643_v29 }
 0x1f7   : > { %2148 = vst [vmem:[%s2931_s20 + $0xd40] sm:$0xff] %v1380_v33  ;;  %v645_v33 = vld [vmem:[%s2912_s4 + $0xe50] sm:$0xff]  ;;  %v1413_v36 = vmul.f32 %v2919_v1, %v644_v31 }
 0x1f8   : > { %2149 = vst [vmem:[%s2931_s20 + $0xd48] sm:$0xff] %v1381_v35  ;;  %v646_v35 = vld [vmem:[%s2912_s4 + $0xe58] sm:$0xff]  ;;  %v1414_v38 = vmul.f32 %v2919_v1, %v645_v33 }
 0x1f9   : > { %2150 = vst [vmem:[%s2931_s20 + $0xd50] sm:$0xff] %v1382_v37  ;;  %v647_v37 = vld [vmem:[%s2912_s4 + $0xe60] sm:$0xff]  ;;  %v1415_v40 = vmul.f32 %v2919_v1, %v646_v35 }
 0x1fa   : > { %2151 = vst [vmem:[%s2931_s20 + $0xd58] sm:$0xff] %v1383_v39  ;;  %v648_v39 = vld [vmem:[%s2912_s4 + $0xe68] sm:$0xff]  ;;  %v1416_v42 = vmul.f32 %v2919_v1, %v647_v37 }
 0x1fb   : > { %2152 = vst [vmem:[%s2931_s20 + $0xd60] sm:$0xff] %v1384_v41  ;;  %v649_v41 = vld [vmem:[%s2912_s4 + $0xe70] sm:$0xff]  ;;  %v1417_v44 = vmul.f32 %v2919_v1, %v648_v39 }
 0x1fc   : > { %2153 = vst [vmem:[%s2931_s20 + $0xd68] sm:$0xff] %v1385_v43  ;;  %v650_v43 = vld [vmem:[%s2912_s4 + $0xe78] sm:$0xff]  ;;  %v1418_v46 = vmul.f32 %v2919_v1, %v649_v41 }
 0x1fd   : > { %2154 = vst [vmem:[%s2931_s20 + $0xd70] sm:$0xff] %v1386_v45  ;;  %v651_v45 = vld [vmem:[%s2912_s4 + $0xe80] sm:$0xff]  ;;  %v1419_v48 = vmul.f32 %v2919_v1, %v650_v43 }
 0x1fe   : > { %2155 = vst [vmem:[%s2931_s20 + $0xd78] sm:$0xff] %v1387_v47  ;;  %v652_v47 = vld [vmem:[%s2912_s4 + $0xe88] sm:$0xff]  ;;  %v1420_v50 = vmul.f32 %v2919_v1, %v651_v45 }
 0x1ff   : > { %2156 = vst [vmem:[%s2931_s20 + $0xd80] sm:$0xff] %v1388_v49  ;;  %v653_v49 = vld [vmem:[%s2912_s4 + $0xe90] sm:$0xff]  ;;  %v1421_v52 = vmul.f32 %v2919_v1, %v652_v47 }
 0x200   : > { %2157 = vst [vmem:[%s2931_s20 + $0xd88] sm:$0xff] %v1389_v51  ;;  %v654_v51 = vld [vmem:[%s2912_s4 + $0xe98] sm:$0xff]  ;;  %v1422_v54 = vmul.f32 %v2919_v1, %v653_v49 }
 0x201   : > { %2158 = vst [vmem:[%s2931_s20 + $0xd90] sm:$0xff] %v1390_v53  ;;  %v655_v53 = vld [vmem:[%s2912_s4 + $0xea0] sm:$0xff]  ;;  %v1423_v56 = vmul.f32 %v2919_v1, %v654_v51 }
 0x202   : > { %2159 = vst [vmem:[%s2931_s20 + $0xd98] sm:$0xff] %v1391_v55  ;;  %v656_v55 = vld [vmem:[%s2912_s4 + $0xea8] sm:$0xff]  ;;  %v1424_v58 = vmul.f32 %v2919_v1, %v655_v53 }
 0x203   : > { %2160 = vst [vmem:[%s2931_s20 + $0xda0] sm:$0xff] %v1392_v57  ;;  %v657_v57 = vld [vmem:[%s2912_s4 + $0xeb0] sm:$0xff]  ;;  %v1425_v60 = vmul.f32 %v2919_v1, %v656_v55 }
 0x204   : > { %2161 = vst [vmem:[%s2931_s20 + $0xda8] sm:$0xff] %v1393_v59  ;;  %v658_v59 = vld [vmem:[%s2912_s4 + $0xeb8] sm:$0xff]  ;;  %v1426_v62 = vmul.f32 %v2919_v1, %v657_v57 }
 0x205   : > { %2162 = vst [vmem:[%s2931_s20 + $0xdb0] sm:$0xff] %v1394_v61  ;;  %v659_v61 = vld [vmem:[%s2912_s4 + $0xec0] sm:$0xff]  ;;  %v1427_v0 = vmul.f32 %v2919_v1, %v658_v59 }
 0x206   : > { %2163 = vst [vmem:[%s2931_s20 + $0xdb8] sm:$0xff] %v1395_v63  ;;  %v660_v63 = vld [vmem:[%s2912_s4 + $0xec8] sm:$0xff]  ;;  %v1428_v3 = vmul.f32 %v2919_v1, %v659_v61 }
 0x207   : > { %2164 = vst [vmem:[%s2931_s20 + $0xdc0] sm:$0xff] %v1396_v2  ;;  %v661_v2 = vld [vmem:[%s2912_s4 + $0xed0] sm:$0xff]  ;;  %v1429_v5 = vmul.f32 %v2919_v1, %v660_v63 }
 0x208   : > { %2165 = vst [vmem:[%s2931_s20 + $0xdc8] sm:$0xff] %v1397_v4  ;;  %v662_v4 = vld [vmem:[%s2912_s4 + $0xed8] sm:$0xff]  ;;  %v1430_v7 = vmul.f32 %v2919_v1, %v661_v2 }
 0x209   : > { %2166 = vst [vmem:[%s2931_s20 + $0xdd0] sm:$0xff] %v1398_v6  ;;  %v663_v6 = vld [vmem:[%s2912_s4 + $0xee0] sm:$0xff]  ;;  %v1431_v9 = vmul.f32 %v2919_v1, %v662_v4 }
 0x20a   : > { %2167 = vst [vmem:[%s2931_s20 + $0xdd8] sm:$0xff] %v1399_v8  ;;  %v664_v8 = vld [vmem:[%s2912_s4 + $0xee8] sm:$0xff]  ;;  %v1432_v11 = vmul.f32 %v2919_v1, %v663_v6 }
 0x20b   : > { %2168 = vst [vmem:[%s2931_s20 + $0xde0] sm:$0xff] %v1400_v10  ;;  %v665_v10 = vld [vmem:[%s2912_s4 + $0xef0] sm:$0xff]  ;;  %v1433_v13 = vmul.f32 %v2919_v1, %v664_v8 }
 0x20c   : > { %2169 = vst [vmem:[%s2931_s20 + $0xde8] sm:$0xff] %v1401_v12  ;;  %v666_v12 = vld [vmem:[%s2912_s4 + $0xef8] sm:$0xff]  ;;  %v1434_v15 = vmul.f32 %v2919_v1, %v665_v10 }
 0x20d   : > { %2170 = vst [vmem:[%s2931_s20 + $0xdf0] sm:$0xff] %v1402_v14  ;;  %v667_v14 = vld [vmem:[%s2912_s4 + $0xf00] sm:$0xff]  ;;  %v1435_v17 = vmul.f32 %v2919_v1, %v666_v12 }
 0x20e   : > { %2171 = vst [vmem:[%s2931_s20 + $0xdf8] sm:$0xff] %v1403_v16  ;;  %v668_v16 = vld [vmem:[%s2912_s4 + $0xf08] sm:$0xff]  ;;  %v1436_v19 = vmul.f32 %v2919_v1, %v667_v14 }
 0x20f   : > { %2172 = vst [vmem:[%s2931_s20 + $0xe00] sm:$0xff] %v1404_v18  ;;  %v669_v18 = vld [vmem:[%s2912_s4 + $0xf10] sm:$0xff]  ;;  %v1437_v21 = vmul.f32 %v2919_v1, %v668_v16 }
 0x210   : > { %2173 = vst [vmem:[%s2931_s20 + $0xe08] sm:$0xff] %v1405_v20  ;;  %v670_v20 = vld [vmem:[%s2912_s4 + $0xf18] sm:$0xff]  ;;  %v1438_v23 = vmul.f32 %v2919_v1, %v669_v18 }
 0x211   : > { %2174 = vst [vmem:[%s2931_s20 + $0xe10] sm:$0xff] %v1406_v22  ;;  %v671_v22 = vld [vmem:[%s2912_s4 + $0xf20] sm:$0xff]  ;;  %v1439_v25 = vmul.f32 %v2919_v1, %v670_v20 }
 0x212   : > { %2175 = vst [vmem:[%s2931_s20 + $0xe18] sm:$0xff] %v1407_v24  ;;  %v672_v24 = vld [vmem:[%s2912_s4 + $0xf28] sm:$0xff]  ;;  %v1440_v27 = vmul.f32 %v2919_v1, %v671_v22 }
 0x213   : > { %2176 = vst [vmem:[%s2931_s20 + $0xe20] sm:$0xff] %v1408_v26  ;;  %v673_v26 = vld [vmem:[%s2912_s4 + $0xf30] sm:$0xff]  ;;  %v1441_v29 = vmul.f32 %v2919_v1, %v672_v24 }
 0x214   : > { %2177 = vst [vmem:[%s2931_s20 + $0xe28] sm:$0xff] %v1409_v28  ;;  %v674_v28 = vld [vmem:[%s2912_s4 + $0xf38] sm:$0xff]  ;;  %v1442_v31 = vmul.f32 %v2919_v1, %v673_v26 }
 0x215   : > { %2178 = vst [vmem:[%s2931_s20 + $0xe30] sm:$0xff] %v1410_v30  ;;  %v675_v30 = vld [vmem:[%s2912_s4 + $0xf40] sm:$0xff]  ;;  %v1443_v33 = vmul.f32 %v2919_v1, %v674_v28 }
 0x216   : > { %2179 = vst [vmem:[%s2931_s20 + $0xe38] sm:$0xff] %v1411_v32  ;;  %v676_v32 = vld [vmem:[%s2912_s4 + $0xf48] sm:$0xff]  ;;  %v1444_v35 = vmul.f32 %v2919_v1, %v675_v30 }
 0x217   : > { %2180 = vst [vmem:[%s2931_s20 + $0xe40] sm:$0xff] %v1412_v34  ;;  %v677_v34 = vld [vmem:[%s2912_s4 + $0xf50] sm:$0xff]  ;;  %v1445_v37 = vmul.f32 %v2919_v1, %v676_v32 }
 0x218   : > { %2181 = vst [vmem:[%s2931_s20 + $0xe48] sm:$0xff] %v1413_v36  ;;  %v678_v36 = vld [vmem:[%s2912_s4 + $0xf58] sm:$0xff]  ;;  %v1446_v39 = vmul.f32 %v2919_v1, %v677_v34 }
 0x219   : > { %2182 = vst [vmem:[%s2931_s20 + $0xe50] sm:$0xff] %v1414_v38  ;;  %v679_v38 = vld [vmem:[%s2912_s4 + $0xf60] sm:$0xff]  ;;  %v1447_v41 = vmul.f32 %v2919_v1, %v678_v36 }
 0x21a   : > { %2183 = vst [vmem:[%s2931_s20 + $0xe58] sm:$0xff] %v1415_v40  ;;  %v680_v40 = vld [vmem:[%s2912_s4 + $0xf68] sm:$0xff]  ;;  %v1448_v43 = vmul.f32 %v2919_v1, %v679_v38 }
 0x21b   : > { %2184 = vst [vmem:[%s2931_s20 + $0xe60] sm:$0xff] %v1416_v42  ;;  %v681_v42 = vld [vmem:[%s2912_s4 + $0xf70] sm:$0xff]  ;;  %v1449_v45 = vmul.f32 %v2919_v1, %v680_v40 }
 0x21c   : > { %2185 = vst [vmem:[%s2931_s20 + $0xe68] sm:$0xff] %v1417_v44  ;;  %v682_v44 = vld [vmem:[%s2912_s4 + $0xf78] sm:$0xff]  ;;  %v1450_v47 = vmul.f32 %v2919_v1, %v681_v42 }
 0x21d   : > { %2186 = vst [vmem:[%s2931_s20 + $0xe70] sm:$0xff] %v1418_v46  ;;  %v683_v46 = vld [vmem:[%s2912_s4 + $0xf80] sm:$0xff]  ;;  %v1451_v49 = vmul.f32 %v2919_v1, %v682_v44 }
 0x21e   : > { %2187 = vst [vmem:[%s2931_s20 + $0xe78] sm:$0xff] %v1419_v48  ;;  %v684_v48 = vld [vmem:[%s2912_s4 + $0xf88] sm:$0xff]  ;;  %v1452_v51 = vmul.f32 %v2919_v1, %v683_v46 }
 0x21f   : > { %2188 = vst [vmem:[%s2931_s20 + $0xe80] sm:$0xff] %v1420_v50  ;;  %v685_v50 = vld [vmem:[%s2912_s4 + $0xf90] sm:$0xff]  ;;  %v1453_v53 = vmul.f32 %v2919_v1, %v684_v48 }
 0x220   : > { %2189 = vst [vmem:[%s2931_s20 + $0xe88] sm:$0xff] %v1421_v52  ;;  %v686_v52 = vld [vmem:[%s2912_s4 + $0xf98] sm:$0xff]  ;;  %v1454_v55 = vmul.f32 %v2919_v1, %v685_v50 }
 0x221   : > { %2190 = vst [vmem:[%s2931_s20 + $0xe90] sm:$0xff] %v1422_v54  ;;  %v687_v54 = vld [vmem:[%s2912_s4 + $0xfa0] sm:$0xff]  ;;  %v1455_v57 = vmul.f32 %v2919_v1, %v686_v52 }
 0x222   : > { %2191 = vst [vmem:[%s2931_s20 + $0xe98] sm:$0xff] %v1423_v56  ;;  %v688_v56 = vld [vmem:[%s2912_s4 + $0xfa8] sm:$0xff]  ;;  %v1456_v59 = vmul.f32 %v2919_v1, %v687_v54 }
 0x223   : > { %2192 = vst [vmem:[%s2931_s20 + $0xea0] sm:$0xff] %v1424_v58  ;;  %v689_v58 = vld [vmem:[%s2912_s4 + $0xfb0] sm:$0xff]  ;;  %v1457_v61 = vmul.f32 %v2919_v1, %v688_v56 }
 0x224   : > { %2193 = vst [vmem:[%s2931_s20 + $0xea8] sm:$0xff] %v1425_v60  ;;  %v690_v60 = vld [vmem:[%s2912_s4 + $0xfb8] sm:$0xff]  ;;  %v1458_v63 = vmul.f32 %v2919_v1, %v689_v58 }
 0x225   : > { %2194 = vst [vmem:[%s2931_s20 + $0xeb0] sm:$0xff] %v1426_v62  ;;  %v691_v62 = vld [vmem:[%s2912_s4 + $0xfc0] sm:$0xff]  ;;  %v1459_v2 = vmul.f32 %v2919_v1, %v690_v60 }
 0x226   : > { %2195 = vst [vmem:[%s2931_s20 + $0xeb8] sm:$0xff] %v1427_v0  ;;  %v692_v0 = vld [vmem:[%s2912_s4 + $0xfc8] sm:$0xff]  ;;  %v1460_v4 = vmul.f32 %v2919_v1, %v691_v62 }
 0x227   : > { %2196 = vst [vmem:[%s2931_s20 + $0xec0] sm:$0xff] %v1428_v3  ;;  %v693_v3 = vld [vmem:[%s2912_s4 + $0xfd0] sm:$0xff]  ;;  %v1461_v6 = vmul.f32 %v2919_v1, %v692_v0 }
 0x228   : > { %2197 = vst [vmem:[%s2931_s20 + $0xec8] sm:$0xff] %v1429_v5  ;;  %v694_v5 = vld [vmem:[%s2912_s4 + $0xfd8] sm:$0xff]  ;;  %v1462_v8 = vmul.f32 %v2919_v1, %v693_v3 }
 0x229   : > { %2198 = vst [vmem:[%s2931_s20 + $0xed0] sm:$0xff] %v1430_v7  ;;  %v695_v7 = vld [vmem:[%s2912_s4 + $0xfe0] sm:$0xff]  ;;  %v1463_v10 = vmul.f32 %v2919_v1, %v694_v5 }
 0x22a   : > { %2199 = vst [vmem:[%s2931_s20 + $0xed8] sm:$0xff] %v1431_v9  ;;  %v696_v9 = vld [vmem:[%s2912_s4 + $0xfe8] sm:$0xff]  ;;  %v1464_v12 = vmul.f32 %v2919_v1, %v695_v7 }
 0x22b   : > { %2200 = vst [vmem:[%s2931_s20 + $0xee0] sm:$0xff] %v1432_v11  ;;  %v697_v11 = vld [vmem:[%s2912_s4 + $0xff0] sm:$0xff]  ;;  %v1465_v14 = vmul.f32 %v2919_v1, %v696_v9 }
 0x22c   : > { %2201 = vst [vmem:[%s2931_s20 + $0xee8] sm:$0xff] %v1433_v13  ;;  %v698_v13 = vld [vmem:[%s2912_s4 + $0xff8] sm:$0xff]  ;;  %v1466_v16 = vmul.f32 %v2919_v1, %v697_v11 }
 0x22d   : > { %2202 = vst [vmem:[%s2931_s20 + $0xef0] sm:$0xff] %v1434_v15  ;;  %v699_v15 = vld [vmem:[%s2912_s4 + $0x1000] sm:$0xff]  ;;  %v1467_v18 = vmul.f32 %v2919_v1, %v698_v13 }
 0x22e   : > { %2203 = vst [vmem:[%s2931_s20 + $0xef8] sm:$0xff] %v1435_v17  ;;  %v700_v17 = vld [vmem:[%s2912_s4 + $0x1008] sm:$0xff]  ;;  %v1468_v20 = vmul.f32 %v2919_v1, %v699_v15 }
 0x22f   : > { %2204 = vst [vmem:[%s2931_s20 + $0xf00] sm:$0xff] %v1436_v19  ;;  %v701_v19 = vld [vmem:[%s2912_s4 + $0x1010] sm:$0xff]  ;;  %v1469_v22 = vmul.f32 %v2919_v1, %v700_v17 }
 0x230   : > { %2205 = vst [vmem:[%s2931_s20 + $0xf08] sm:$0xff] %v1437_v21  ;;  %v702_v21 = vld [vmem:[%s2912_s4 + $0x1018] sm:$0xff]  ;;  %v1470_v24 = vmul.f32 %v2919_v1, %v701_v19 }
 0x231   : > { %2206 = vst [vmem:[%s2931_s20 + $0xf10] sm:$0xff] %v1438_v23  ;;  %v703_v23 = vld [vmem:[%s2912_s4 + $0x1020] sm:$0xff]  ;;  %v1471_v26 = vmul.f32 %v2919_v1, %v702_v21 }
 0x232   : > { %2207 = vst [vmem:[%s2931_s20 + $0xf18] sm:$0xff] %v1439_v25  ;;  %v704_v25 = vld [vmem:[%s2912_s4 + $0x1028] sm:$0xff]  ;;  %v1472_v28 = vmul.f32 %v2919_v1, %v703_v23 }
 0x233   : > { %2208 = vst [vmem:[%s2931_s20 + $0xf20] sm:$0xff] %v1440_v27  ;;  %v705_v27 = vld [vmem:[%s2912_s4 + $0x1030] sm:$0xff]  ;;  %v1473_v30 = vmul.f32 %v2919_v1, %v704_v25 }
 0x234   : > { %2209 = vst [vmem:[%s2931_s20 + $0xf28] sm:$0xff] %v1441_v29  ;;  %v706_v29 = vld [vmem:[%s2912_s4 + $0x1038] sm:$0xff]  ;;  %v1474_v32 = vmul.f32 %v2919_v1, %v705_v27 }
 0x235   : > { %2210 = vst [vmem:[%s2931_s20 + $0xf30] sm:$0xff] %v1442_v31  ;;  %v707_v31 = vld [vmem:[%s2912_s4 + $0x1040] sm:$0xff]  ;;  %v1475_v34 = vmul.f32 %v2919_v1, %v706_v29 }
 0x236   : > { %2211 = vst [vmem:[%s2931_s20 + $0xf38] sm:$0xff] %v1443_v33  ;;  %v708_v33 = vld [vmem:[%s2912_s4 + $0x1048] sm:$0xff]  ;;  %v1476_v36 = vmul.f32 %v2919_v1, %v707_v31 }
 0x237   : > { %2212 = vst [vmem:[%s2931_s20 + $0xf40] sm:$0xff] %v1444_v35  ;;  %v709_v35 = vld [vmem:[%s2912_s4 + $0x1050] sm:$0xff]  ;;  %v1477_v38 = vmul.f32 %v2919_v1, %v708_v33 }
 0x238   : > { %2213 = vst [vmem:[%s2931_s20 + $0xf48] sm:$0xff] %v1445_v37  ;;  %v710_v37 = vld [vmem:[%s2912_s4 + $0x1058] sm:$0xff]  ;;  %v1478_v40 = vmul.f32 %v2919_v1, %v709_v35 }
 0x239   : > { %2214 = vst [vmem:[%s2931_s20 + $0xf50] sm:$0xff] %v1446_v39  ;;  %v711_v39 = vld [vmem:[%s2912_s4 + $0x1060] sm:$0xff]  ;;  %v1479_v42 = vmul.f32 %v2919_v1, %v710_v37 }
 0x23a   : > { %2215 = vst [vmem:[%s2931_s20 + $0xf58] sm:$0xff] %v1447_v41  ;;  %v712_v41 = vld [vmem:[%s2912_s4 + $0x1068] sm:$0xff]  ;;  %v1480_v44 = vmul.f32 %v2919_v1, %v711_v39 }
 0x23b   : > { %2216 = vst [vmem:[%s2931_s20 + $0xf60] sm:$0xff] %v1448_v43  ;;  %v713_v43 = vld [vmem:[%s2912_s4 + $0x1070] sm:$0xff]  ;;  %v1481_v46 = vmul.f32 %v2919_v1, %v712_v41 }
 0x23c   : > { %2217 = vst [vmem:[%s2931_s20 + $0xf68] sm:$0xff] %v1449_v45  ;;  %v714_v45 = vld [vmem:[%s2912_s4 + $0x1078] sm:$0xff]  ;;  %v1482_v48 = vmul.f32 %v2919_v1, %v713_v43 }
 0x23d   : > { %2218 = vst [vmem:[%s2931_s20 + $0xf70] sm:$0xff] %v1450_v47  ;;  %v715_v47 = vld [vmem:[%s2912_s4 + $0x1080] sm:$0xff]  ;;  %v1483_v50 = vmul.f32 %v2919_v1, %v714_v45 }
 0x23e   : > { %2219 = vst [vmem:[%s2931_s20 + $0xf78] sm:$0xff] %v1451_v49  ;;  %v716_v49 = vld [vmem:[%s2912_s4 + $0x1088] sm:$0xff]  ;;  %v1484_v52 = vmul.f32 %v2919_v1, %v715_v47 }
 0x23f   : > { %2220 = vst [vmem:[%s2931_s20 + $0xf80] sm:$0xff] %v1452_v51  ;;  %v717_v51 = vld [vmem:[%s2912_s4 + $0x1090] sm:$0xff]  ;;  %v1485_v54 = vmul.f32 %v2919_v1, %v716_v49 }
 0x240   : > { %2221 = vst [vmem:[%s2931_s20 + $0xf88] sm:$0xff] %v1453_v53  ;;  %v718_v53 = vld [vmem:[%s2912_s4 + $0x1098] sm:$0xff]  ;;  %v1486_v56 = vmul.f32 %v2919_v1, %v717_v51 }
 0x241   : > { %2222 = vst [vmem:[%s2931_s20 + $0xf90] sm:$0xff] %v1454_v55  ;;  %v719_v55 = vld [vmem:[%s2912_s4 + $0x10a0] sm:$0xff]  ;;  %v1487_v58 = vmul.f32 %v2919_v1, %v718_v53 }
 0x242   : > { %2223 = vst [vmem:[%s2931_s20 + $0xf98] sm:$0xff] %v1455_v57  ;;  %v720_v57 = vld [vmem:[%s2912_s4 + $0x10a8] sm:$0xff]  ;;  %v1488_v60 = vmul.f32 %v2919_v1, %v719_v55 }
 0x243   : > { %2224 = vst [vmem:[%s2931_s20 + $0xfa0] sm:$0xff] %v1456_v59  ;;  %v721_v59 = vld [vmem:[%s2912_s4 + $0x10b0] sm:$0xff]  ;;  %v1489_v62 = vmul.f32 %v2919_v1, %v720_v57 }
 0x244   : > { %2225 = vst [vmem:[%s2931_s20 + $0xfa8] sm:$0xff] %v1457_v61  ;;  %v722_v61 = vld [vmem:[%s2912_s4 + $0x10b8] sm:$0xff]  ;;  %v1490_v0 = vmul.f32 %v2919_v1, %v721_v59 }
 0x245   : > { %2226 = vst [vmem:[%s2931_s20 + $0xfb0] sm:$0xff] %v1458_v63  ;;  %v723_v63 = vld [vmem:[%s2912_s4 + $0x10c0] sm:$0xff]  ;;  %v1491_v3 = vmul.f32 %v2919_v1, %v722_v61 }
 0x246   : > { %2227 = vst [vmem:[%s2931_s20 + $0xfb8] sm:$0xff] %v1459_v2  ;;  %v724_v2 = vld [vmem:[%s2912_s4 + $0x10c8] sm:$0xff]  ;;  %v1492_v5 = vmul.f32 %v2919_v1, %v723_v63 }
 0x247   : > { %2228 = vst [vmem:[%s2931_s20 + $0xfc0] sm:$0xff] %v1460_v4  ;;  %v725_v4 = vld [vmem:[%s2912_s4 + $0x10d0] sm:$0xff]  ;;  %v1493_v7 = vmul.f32 %v2919_v1, %v724_v2 }
 0x248   : > { %2229 = vst [vmem:[%s2931_s20 + $0xfc8] sm:$0xff] %v1461_v6  ;;  %v726_v6 = vld [vmem:[%s2912_s4 + $0x10d8] sm:$0xff]  ;;  %v1494_v9 = vmul.f32 %v2919_v1, %v725_v4 }
 0x249   : > { %2230 = vst [vmem:[%s2931_s20 + $0xfd0] sm:$0xff] %v1462_v8  ;;  %v727_v8 = vld [vmem:[%s2912_s4 + $0x10e0] sm:$0xff]  ;;  %v1495_v11 = vmul.f32 %v2919_v1, %v726_v6 }
 0x24a   : > { %2231 = vst [vmem:[%s2931_s20 + $0xfd8] sm:$0xff] %v1463_v10  ;;  %v728_v10 = vld [vmem:[%s2912_s4 + $0x10e8] sm:$0xff]  ;;  %v1496_v13 = vmul.f32 %v2919_v1, %v727_v8 }
 0x24b   : > { %2232 = vst [vmem:[%s2931_s20 + $0xfe0] sm:$0xff] %v1464_v12  ;;  %v729_v12 = vld [vmem:[%s2912_s4 + $0x10f0] sm:$0xff]  ;;  %v1497_v15 = vmul.f32 %v2919_v1, %v728_v10 }
 0x24c   : > { %2233 = vst [vmem:[%s2931_s20 + $0xfe8] sm:$0xff] %v1465_v14  ;;  %v730_v14 = vld [vmem:[%s2912_s4 + $0x10f8] sm:$0xff]  ;;  %v1498_v17 = vmul.f32 %v2919_v1, %v729_v12 }
 0x24d   : > { %2234 = vst [vmem:[%s2931_s20 + $0xff0] sm:$0xff] %v1466_v16  ;;  %v731_v16 = vld [vmem:[%s2912_s4 + $0x1100] sm:$0xff]  ;;  %v1499_v19 = vmul.f32 %v2919_v1, %v730_v14 }
 0x24e   : > { %2235 = vst [vmem:[%s2931_s20 + $0xff8] sm:$0xff] %v1467_v18  ;;  %v732_v18 = vld [vmem:[%s2912_s4 + $0x1108] sm:$0xff]  ;;  %v1500_v21 = vmul.f32 %v2919_v1, %v731_v16 }
 0x24f   : > { %2236 = vst [vmem:[%s2931_s20 + $0x1000] sm:$0xff] %v1468_v20  ;;  %v733_v20 = vld [vmem:[%s2912_s4 + $0x1110] sm:$0xff]  ;;  %v1501_v23 = vmul.f32 %v2919_v1, %v732_v18 }
 0x250   : > { %2237 = vst [vmem:[%s2931_s20 + $0x1008] sm:$0xff] %v1469_v22  ;;  %v734_v22 = vld [vmem:[%s2912_s4 + $0x1118] sm:$0xff]  ;;  %v1502_v25 = vmul.f32 %v2919_v1, %v733_v20 }
 0x251   : > { %2238 = vst [vmem:[%s2931_s20 + $0x1010] sm:$0xff] %v1470_v24  ;;  %v735_v24 = vld [vmem:[%s2912_s4 + $0x1120] sm:$0xff]  ;;  %v1503_v27 = vmul.f32 %v2919_v1, %v734_v22 }
 0x252   : > { %2239 = vst [vmem:[%s2931_s20 + $0x1018] sm:$0xff] %v1471_v26  ;;  %v736_v26 = vld [vmem:[%s2912_s4 + $0x1128] sm:$0xff]  ;;  %v1504_v29 = vmul.f32 %v2919_v1, %v735_v24 }
 0x253   : > { %2240 = vst [vmem:[%s2931_s20 + $0x1020] sm:$0xff] %v1472_v28  ;;  %v737_v28 = vld [vmem:[%s2912_s4 + $0x1130] sm:$0xff]  ;;  %v1505_v31 = vmul.f32 %v2919_v1, %v736_v26 }
 0x254   : > { %2241 = vst [vmem:[%s2931_s20 + $0x1028] sm:$0xff] %v1473_v30  ;;  %v738_v30 = vld [vmem:[%s2912_s4 + $0x1138] sm:$0xff]  ;;  %v1506_v33 = vmul.f32 %v2919_v1, %v737_v28 }
 0x255   : > { %2242 = vst [vmem:[%s2931_s20 + $0x1030] sm:$0xff] %v1474_v32  ;;  %v739_v32 = vld [vmem:[%s2912_s4 + $0x1140] sm:$0xff]  ;;  %v1507_v35 = vmul.f32 %v2919_v1, %v738_v30 }
 0x256   : > { %2243 = vst [vmem:[%s2931_s20 + $0x1038] sm:$0xff] %v1475_v34  ;;  %v740_v34 = vld [vmem:[%s2912_s4 + $0x1148] sm:$0xff]  ;;  %v1508_v37 = vmul.f32 %v2919_v1, %v739_v32 }
 0x257   : > { %2244 = vst [vmem:[%s2931_s20 + $0x1040] sm:$0xff] %v1476_v36  ;;  %v741_v36 = vld [vmem:[%s2912_s4 + $0x1150] sm:$0xff]  ;;  %v1509_v39 = vmul.f32 %v2919_v1, %v740_v34 }
 0x258   : > { %2245 = vst [vmem:[%s2931_s20 + $0x1048] sm:$0xff] %v1477_v38  ;;  %v742_v38 = vld [vmem:[%s2912_s4 + $0x1158] sm:$0xff]  ;;  %v1510_v41 = vmul.f32 %v2919_v1, %v741_v36 }
 0x259   : > { %2246 = vst [vmem:[%s2931_s20 + $0x1050] sm:$0xff] %v1478_v40  ;;  %v743_v40 = vld [vmem:[%s2912_s4 + $0x1160] sm:$0xff]  ;;  %v1511_v43 = vmul.f32 %v2919_v1, %v742_v38 }
 0x25a   : > { %2247 = vst [vmem:[%s2931_s20 + $0x1058] sm:$0xff] %v1479_v42  ;;  %v744_v42 = vld [vmem:[%s2912_s4 + $0x1168] sm:$0xff]  ;;  %v1512_v45 = vmul.f32 %v2919_v1, %v743_v40 }
 0x25b   : > { %2248 = vst [vmem:[%s2931_s20 + $0x1060] sm:$0xff] %v1480_v44  ;;  %v745_v44 = vld [vmem:[%s2912_s4 + $0x1170] sm:$0xff]  ;;  %v1513_v47 = vmul.f32 %v2919_v1, %v744_v42 }
 0x25c   : > { %2249 = vst [vmem:[%s2931_s20 + $0x1068] sm:$0xff] %v1481_v46  ;;  %v746_v46 = vld [vmem:[%s2912_s4 + $0x1178] sm:$0xff]  ;;  %v1514_v49 = vmul.f32 %v2919_v1, %v745_v44 }
 0x25d   : > { %2250 = vst [vmem:[%s2931_s20 + $0x1070] sm:$0xff] %v1482_v48  ;;  %v747_v48 = vld [vmem:[%s2912_s4 + $0x1180] sm:$0xff]  ;;  %v1515_v51 = vmul.f32 %v2919_v1, %v746_v46 }
 0x25e   : > { %2251 = vst [vmem:[%s2931_s20 + $0x1078] sm:$0xff] %v1483_v50  ;;  %v748_v50 = vld [vmem:[%s2912_s4 + $0x1188] sm:$0xff]  ;;  %v1516_v53 = vmul.f32 %v2919_v1, %v747_v48 }
 0x25f   : > { %2252 = vst [vmem:[%s2931_s20 + $0x1080] sm:$0xff] %v1484_v52  ;;  %v749_v52 = vld [vmem:[%s2912_s4 + $0x1190] sm:$0xff]  ;;  %v1517_v55 = vmul.f32 %v2919_v1, %v748_v50 }
 0x260   : > { %2253 = vst [vmem:[%s2931_s20 + $0x1088] sm:$0xff] %v1485_v54  ;;  %v750_v54 = vld [vmem:[%s2912_s4 + $0x1198] sm:$0xff]  ;;  %v1518_v57 = vmul.f32 %v2919_v1, %v749_v52 }
 0x261   : > { %2254 = vst [vmem:[%s2931_s20 + $0x1090] sm:$0xff] %v1486_v56  ;;  %v751_v56 = vld [vmem:[%s2912_s4 + $0x11a0] sm:$0xff]  ;;  %v1519_v59 = vmul.f32 %v2919_v1, %v750_v54 }
 0x262   : > { %2255 = vst [vmem:[%s2931_s20 + $0x1098] sm:$0xff] %v1487_v58  ;;  %v752_v58 = vld [vmem:[%s2912_s4 + $0x11a8] sm:$0xff]  ;;  %v1520_v61 = vmul.f32 %v2919_v1, %v751_v56 }
 0x263   : > { %2256 = vst [vmem:[%s2931_s20 + $0x10a0] sm:$0xff] %v1488_v60  ;;  %v753_v60 = vld [vmem:[%s2912_s4 + $0x11b0] sm:$0xff]  ;;  %v1521_v63 = vmul.f32 %v2919_v1, %v752_v58 }
 0x264   : > { %2257 = vst [vmem:[%s2931_s20 + $0x10a8] sm:$0xff] %v1489_v62  ;;  %v754_v62 = vld [vmem:[%s2912_s4 + $0x11b8] sm:$0xff]  ;;  %v1522_v2 = vmul.f32 %v2919_v1, %v753_v60 }
 0x265   : > { %2258 = vst [vmem:[%s2931_s20 + $0x10b0] sm:$0xff] %v1490_v0  ;;  %v755_v0 = vld [vmem:[%s2912_s4 + $0x11c0] sm:$0xff]  ;;  %v1523_v4 = vmul.f32 %v2919_v1, %v754_v62 }
 0x266   : > { %2259 = vst [vmem:[%s2931_s20 + $0x10b8] sm:$0xff] %v1491_v3  ;;  %v756_v3 = vld [vmem:[%s2912_s4 + $0x11c8] sm:$0xff]  ;;  %v1524_v6 = vmul.f32 %v2919_v1, %v755_v0 }
 0x267   : > { %2260 = vst [vmem:[%s2931_s20 + $0x10c0] sm:$0xff] %v1492_v5  ;;  %v757_v5 = vld [vmem:[%s2912_s4 + $0x11d0] sm:$0xff]  ;;  %v1525_v8 = vmul.f32 %v2919_v1, %v756_v3 }
 0x268   : > { %2261 = vst [vmem:[%s2931_s20 + $0x10c8] sm:$0xff] %v1493_v7  ;;  %v758_v7 = vld [vmem:[%s2912_s4 + $0x11d8] sm:$0xff]  ;;  %v1526_v10 = vmul.f32 %v2919_v1, %v757_v5 }
 0x269   : > { %2262 = vst [vmem:[%s2931_s20 + $0x10d0] sm:$0xff] %v1494_v9  ;;  %v759_v9 = vld [vmem:[%s2912_s4 + $0x11e0] sm:$0xff]  ;;  %v1527_v12 = vmul.f32 %v2919_v1, %v758_v7 }
 0x26a   : > { %2263 = vst [vmem:[%s2931_s20 + $0x10d8] sm:$0xff] %v1495_v11  ;;  %v760_v11 = vld [vmem:[%s2912_s4 + $0x11e8] sm:$0xff]  ;;  %v1528_v14 = vmul.f32 %v2919_v1, %v759_v9 }
 0x26b   : > { %2264 = vst [vmem:[%s2931_s20 + $0x10e0] sm:$0xff] %v1496_v13  ;;  %v761_v13 = vld [vmem:[%s2912_s4 + $0x11f0] sm:$0xff]  ;;  %v1529_v16 = vmul.f32 %v2919_v1, %v760_v11 }
 0x26c   : > { %2265 = vst [vmem:[%s2931_s20 + $0x10e8] sm:$0xff] %v1497_v15  ;;  %v762_v15 = vld [vmem:[%s2912_s4 + $0x11f8] sm:$0xff]  ;;  %v1530_v18 = vmul.f32 %v2919_v1, %v761_v13 }
 0x26d   : > { %2266 = vst [vmem:[%s2931_s20 + $0x10f0] sm:$0xff] %v1498_v17  ;;  %v763_v17 = vld [vmem:[%s2912_s4 + $0x1200] sm:$0xff]  ;;  %v1531_v20 = vmul.f32 %v2919_v1, %v762_v15 }
 0x26e   : > { %2267 = vst [vmem:[%s2931_s20 + $0x10f8] sm:$0xff] %v1499_v19  ;;  %v764_v19 = vld [vmem:[%s2912_s4 + $0x1208] sm:$0xff]  ;;  %v1532_v22 = vmul.f32 %v2919_v1, %v763_v17 }
 0x26f   : > { %2268 = vst [vmem:[%s2931_s20 + $0x1100] sm:$0xff] %v1500_v21  ;;  %v765_v21 = vld [vmem:[%s2912_s4 + $0x1210] sm:$0xff]  ;;  %v1533_v24 = vmul.f32 %v2919_v1, %v764_v19 }
 0x270   : > { %2269 = vst [vmem:[%s2931_s20 + $0x1108] sm:$0xff] %v1501_v23  ;;  %v766_v23 = vld [vmem:[%s2912_s4 + $0x1218] sm:$0xff]  ;;  %v1534_v26 = vmul.f32 %v2919_v1, %v765_v21 }
 0x271   : > { %2270 = vst [vmem:[%s2931_s20 + $0x1110] sm:$0xff] %v1502_v25  ;;  %v767_v25 = vld [vmem:[%s2912_s4 + $0x1220] sm:$0xff]  ;;  %v1535_v28 = vmul.f32 %v2919_v1, %v766_v23 }
 0x272   : > { %2271 = vst [vmem:[%s2931_s20 + $0x1118] sm:$0xff] %v1503_v27  ;;  %v768_v27 = vld [vmem:[%s2912_s4 + $0x1228] sm:$0xff]  ;;  %v1536_v30 = vmul.f32 %v2919_v1, %v767_v25 }
 0x273   : > { %2272 = vst [vmem:[%s2931_s20 + $0x1120] sm:$0xff] %v1504_v29  ;;  %v769_v29 = vld [vmem:[%s2912_s4 + $0x1230] sm:$0xff]  ;;  %v1537_v32 = vmul.f32 %v2919_v1, %v768_v27 }
 0x274   : > { %2273 = vst [vmem:[%s2931_s20 + $0x1128] sm:$0xff] %v1505_v31  ;;  %v770_v31 = vld [vmem:[%s2912_s4 + $0x1238] sm:$0xff]  ;;  %v1538_v34 = vmul.f32 %v2919_v1, %v769_v29 }
 0x275   : > { %2274 = vst [vmem:[%s2931_s20 + $0x1130] sm:$0xff] %v1506_v33  ;;  %v771_v33 = vld [vmem:[%s2912_s4 + $0x1240] sm:$0xff]  ;;  %v1539_v36 = vmul.f32 %v2919_v1, %v770_v31 }
 0x276   : > { %2275 = vst [vmem:[%s2931_s20 + $0x1138] sm:$0xff] %v1507_v35  ;;  %v772_v35 = vld [vmem:[%s2912_s4 + $0x1248] sm:$0xff]  ;;  %v1540_v38 = vmul.f32 %v2919_v1, %v771_v33 }
 0x277   : > { %2276 = vst [vmem:[%s2931_s20 + $0x1140] sm:$0xff] %v1508_v37  ;;  %v773_v37 = vld [vmem:[%s2912_s4 + $0x1250] sm:$0xff]  ;;  %v1541_v40 = vmul.f32 %v2919_v1, %v772_v35 }
 0x278   : > { %2277 = vst [vmem:[%s2931_s20 + $0x1148] sm:$0xff] %v1509_v39  ;;  %v774_v39 = vld [vmem:[%s2912_s4 + $0x1258] sm:$0xff]  ;;  %v1542_v42 = vmul.f32 %v2919_v1, %v773_v37 }
 0x279   : > { %2278 = vst [vmem:[%s2931_s20 + $0x1150] sm:$0xff] %v1510_v41  ;;  %v775_v41 = vld [vmem:[%s2912_s4 + $0x1260] sm:$0xff]  ;;  %v1543_v44 = vmul.f32 %v2919_v1, %v774_v39 }
 0x27a   : > { %2279 = vst [vmem:[%s2931_s20 + $0x1158] sm:$0xff] %v1511_v43  ;;  %v776_v43 = vld [vmem:[%s2912_s4 + $0x1268] sm:$0xff]  ;;  %v1544_v46 = vmul.f32 %v2919_v1, %v775_v41 }
 0x27b   : > { %2280 = vst [vmem:[%s2931_s20 + $0x1160] sm:$0xff] %v1512_v45  ;;  %v777_v45 = vld [vmem:[%s2912_s4 + $0x1270] sm:$0xff]  ;;  %v1545_v48 = vmul.f32 %v2919_v1, %v776_v43 }
 0x27c   : > { %2281 = vst [vmem:[%s2931_s20 + $0x1168] sm:$0xff] %v1513_v47  ;;  %v778_v47 = vld [vmem:[%s2912_s4 + $0x1278] sm:$0xff]  ;;  %v1546_v50 = vmul.f32 %v2919_v1, %v777_v45 }
 0x27d   : > { %2282 = vst [vmem:[%s2931_s20 + $0x1170] sm:$0xff] %v1514_v49  ;;  %v779_v49 = vld [vmem:[%s2912_s4 + $0x1280] sm:$0xff]  ;;  %v1547_v52 = vmul.f32 %v2919_v1, %v778_v47 }
 0x27e   : > { %2283 = vst [vmem:[%s2931_s20 + $0x1178] sm:$0xff] %v1515_v51  ;;  %v780_v51 = vld [vmem:[%s2912_s4 + $0x1288] sm:$0xff]  ;;  %v1548_v54 = vmul.f32 %v2919_v1, %v779_v49 }
 0x27f   : > { %2284 = vst [vmem:[%s2931_s20 + $0x1180] sm:$0xff] %v1516_v53  ;;  %v781_v53 = vld [vmem:[%s2912_s4 + $0x1290] sm:$0xff]  ;;  %v1549_v56 = vmul.f32 %v2919_v1, %v780_v51 }
 0x280   : > { %2285 = vst [vmem:[%s2931_s20 + $0x1188] sm:$0xff] %v1517_v55  ;;  %v782_v55 = vld [vmem:[%s2912_s4 + $0x1298] sm:$0xff]  ;;  %v1550_v58 = vmul.f32 %v2919_v1, %v781_v53 }
 0x281   : > { %2286 = vst [vmem:[%s2931_s20 + $0x1190] sm:$0xff] %v1518_v57  ;;  %v783_v57 = vld [vmem:[%s2912_s4 + $0x12a0] sm:$0xff]  ;;  %v1551_v60 = vmul.f32 %v2919_v1, %v782_v55 }
 0x282   : > { %2287 = vst [vmem:[%s2931_s20 + $0x1198] sm:$0xff] %v1519_v59  ;;  %v784_v59 = vld [vmem:[%s2912_s4 + $0x12a8] sm:$0xff]  ;;  %v1552_v62 = vmul.f32 %v2919_v1, %v783_v57 }
 0x283   : > { %2288 = vst [vmem:[%s2931_s20 + $0x11a0] sm:$0xff] %v1520_v61  ;;  %v785_v61 = vld [vmem:[%s2912_s4 + $0x12b0] sm:$0xff]  ;;  %v1553_v0 = vmul.f32 %v2919_v1, %v784_v59 }
 0x284   : > { %2289 = vst [vmem:[%s2931_s20 + $0x11a8] sm:$0xff] %v1521_v63  ;;  %v786_v63 = vld [vmem:[%s2912_s4 + $0x12b8] sm:$0xff]  ;;  %v1554_v3 = vmul.f32 %v2919_v1, %v785_v61 }
 0x285   : > { %2290 = vst [vmem:[%s2931_s20 + $0x11b0] sm:$0xff] %v1522_v2  ;;  %v787_v2 = vld [vmem:[%s2912_s4 + $0x12c0] sm:$0xff]  ;;  %v1555_v5 = vmul.f32 %v2919_v1, %v786_v63 }
 0x286   : > { %2291 = vst [vmem:[%s2931_s20 + $0x11b8] sm:$0xff] %v1523_v4  ;;  %v788_v4 = vld [vmem:[%s2912_s4 + $0x12c8] sm:$0xff]  ;;  %v1556_v7 = vmul.f32 %v2919_v1, %v787_v2 }
 0x287   : > { %2292 = vst [vmem:[%s2931_s20 + $0x11c0] sm:$0xff] %v1524_v6  ;;  %v789_v6 = vld [vmem:[%s2912_s4 + $0x12d0] sm:$0xff]  ;;  %v1557_v9 = vmul.f32 %v2919_v1, %v788_v4 }
 0x288   : > { %2293 = vst [vmem:[%s2931_s20 + $0x11c8] sm:$0xff] %v1525_v8  ;;  %v790_v8 = vld [vmem:[%s2912_s4 + $0x12d8] sm:$0xff]  ;;  %v1558_v11 = vmul.f32 %v2919_v1, %v789_v6 }
 0x289   : > { %2294 = vst [vmem:[%s2931_s20 + $0x11d0] sm:$0xff] %v1526_v10  ;;  %v791_v10 = vld [vmem:[%s2912_s4 + $0x12e0] sm:$0xff]  ;;  %v1559_v13 = vmul.f32 %v2919_v1, %v790_v8 }
 0x28a   : > { %2295 = vst [vmem:[%s2931_s20 + $0x11d8] sm:$0xff] %v1527_v12  ;;  %v792_v12 = vld [vmem:[%s2912_s4 + $0x12e8] sm:$0xff]  ;;  %v1560_v15 = vmul.f32 %v2919_v1, %v791_v10 }
 0x28b   : > { %2296 = vst [vmem:[%s2931_s20 + $0x11e0] sm:$0xff] %v1528_v14  ;;  %v793_v14 = vld [vmem:[%s2912_s4 + $0x12f0] sm:$0xff]  ;;  %v1561_v17 = vmul.f32 %v2919_v1, %v792_v12 }
 0x28c   : > { %2297 = vst [vmem:[%s2931_s20 + $0x11e8] sm:$0xff] %v1529_v16  ;;  %v794_v16 = vld [vmem:[%s2912_s4 + $0x12f8] sm:$0xff]  ;;  %v1562_v19 = vmul.f32 %v2919_v1, %v793_v14 }
 0x28d   : > { %2298 = vst [vmem:[%s2931_s20 + $0x11f0] sm:$0xff] %v1530_v18  ;;  %v795_v18 = vld [vmem:[%s2912_s4 + $0x1300] sm:$0xff]  ;;  %v1563_v21 = vmul.f32 %v2919_v1, %v794_v16 }
 0x28e   : > { %2299 = vst [vmem:[%s2931_s20 + $0x11f8] sm:$0xff] %v1531_v20  ;;  %v796_v20 = vld [vmem:[%s2912_s4 + $0x1308] sm:$0xff]  ;;  %v1564_v23 = vmul.f32 %v2919_v1, %v795_v18 }
 0x28f   : > { %2300 = vst [vmem:[%s2931_s20 + $0x1200] sm:$0xff] %v1532_v22  ;;  %v797_v22 = vld [vmem:[%s2912_s4 + $0x1310] sm:$0xff]  ;;  %v1565_v25 = vmul.f32 %v2919_v1, %v796_v20 }
 0x290   : > { %2301 = vst [vmem:[%s2931_s20 + $0x1208] sm:$0xff] %v1533_v24  ;;  %v798_v24 = vld [vmem:[%s2912_s4 + $0x1318] sm:$0xff]  ;;  %v1566_v27 = vmul.f32 %v2919_v1, %v797_v22 }
 0x291   : > { %2302 = vst [vmem:[%s2931_s20 + $0x1210] sm:$0xff] %v1534_v26  ;;  %v799_v26 = vld [vmem:[%s2912_s4 + $0x1320] sm:$0xff]  ;;  %v1567_v29 = vmul.f32 %v2919_v1, %v798_v24 }
 0x292   : > { %2303 = vst [vmem:[%s2931_s20 + $0x1218] sm:$0xff] %v1535_v28  ;;  %v800_v28 = vld [vmem:[%s2912_s4 + $0x1328] sm:$0xff]  ;;  %v1568_v31 = vmul.f32 %v2919_v1, %v799_v26 }
 0x293   : > { %2304 = vst [vmem:[%s2931_s20 + $0x1220] sm:$0xff] %v1536_v30  ;;  %v801_v30 = vld [vmem:[%s2912_s4 + $0x1330] sm:$0xff]  ;;  %v1569_v33 = vmul.f32 %v2919_v1, %v800_v28 }
 0x294   : > { %2305 = vst [vmem:[%s2931_s20 + $0x1228] sm:$0xff] %v1537_v32  ;;  %v802_v32 = vld [vmem:[%s2912_s4 + $0x1338] sm:$0xff]  ;;  %v1570_v35 = vmul.f32 %v2919_v1, %v801_v30 }
 0x295   : > { %2306 = vst [vmem:[%s2931_s20 + $0x1230] sm:$0xff] %v1538_v34  ;;  %v803_v34 = vld [vmem:[%s2912_s4 + $0x1340] sm:$0xff]  ;;  %v1571_v37 = vmul.f32 %v2919_v1, %v802_v32 }
 0x296   : > { %2307 = vst [vmem:[%s2931_s20 + $0x1238] sm:$0xff] %v1539_v36  ;;  %v804_v36 = vld [vmem:[%s2912_s4 + $0x1348] sm:$0xff]  ;;  %v1572_v39 = vmul.f32 %v2919_v1, %v803_v34 }
 0x297   : > { %2308 = vst [vmem:[%s2931_s20 + $0x1240] sm:$0xff] %v1540_v38  ;;  %v805_v38 = vld [vmem:[%s2912_s4 + $0x1350] sm:$0xff]  ;;  %v1573_v41 = vmul.f32 %v2919_v1, %v804_v36 }
 0x298   : > { %2309 = vst [vmem:[%s2931_s20 + $0x1248] sm:$0xff] %v1541_v40  ;;  %v806_v40 = vld [vmem:[%s2912_s4 + $0x1358] sm:$0xff]  ;;  %v1574_v43 = vmul.f32 %v2919_v1, %v805_v38 }
 0x299   : > { %2310 = vst [vmem:[%s2931_s20 + $0x1250] sm:$0xff] %v1542_v42  ;;  %v807_v42 = vld [vmem:[%s2912_s4 + $0x1360] sm:$0xff]  ;;  %v1575_v45 = vmul.f32 %v2919_v1, %v806_v40 }
 0x29a   : > { %2311 = vst [vmem:[%s2931_s20 + $0x1258] sm:$0xff] %v1543_v44  ;;  %v808_v44 = vld [vmem:[%s2912_s4 + $0x1368] sm:$0xff]  ;;  %v1576_v47 = vmul.f32 %v2919_v1, %v807_v42 }
 0x29b   : > { %2312 = vst [vmem:[%s2931_s20 + $0x1260] sm:$0xff] %v1544_v46  ;;  %v809_v46 = vld [vmem:[%s2912_s4 + $0x1370] sm:$0xff]  ;;  %v1577_v49 = vmul.f32 %v2919_v1, %v808_v44 }
 0x29c   : > { %2313 = vst [vmem:[%s2931_s20 + $0x1268] sm:$0xff] %v1545_v48  ;;  %v810_v48 = vld [vmem:[%s2912_s4 + $0x1378] sm:$0xff]  ;;  %v1578_v51 = vmul.f32 %v2919_v1, %v809_v46 }
 0x29d   : > { %2314 = vst [vmem:[%s2931_s20 + $0x1270] sm:$0xff] %v1546_v50  ;;  %v811_v50 = vld [vmem:[%s2912_s4 + $0x1380] sm:$0xff]  ;;  %v1579_v53 = vmul.f32 %v2919_v1, %v810_v48 }
 0x29e   : > { %2315 = vst [vmem:[%s2931_s20 + $0x1278] sm:$0xff] %v1547_v52  ;;  %v812_v52 = vld [vmem:[%s2912_s4 + $0x1388] sm:$0xff]  ;;  %v1580_v55 = vmul.f32 %v2919_v1, %v811_v50 }
 0x29f   : > { %2316 = vst [vmem:[%s2931_s20 + $0x1280] sm:$0xff] %v1548_v54  ;;  %v813_v54 = vld [vmem:[%s2912_s4 + $0x1390] sm:$0xff]  ;;  %v1581_v57 = vmul.f32 %v2919_v1, %v812_v52 }
 0x2a0   : > { %2317 = vst [vmem:[%s2931_s20 + $0x1288] sm:$0xff] %v1549_v56  ;;  %v814_v56 = vld [vmem:[%s2912_s4 + $0x1398] sm:$0xff]  ;;  %v1582_v59 = vmul.f32 %v2919_v1, %v813_v54 }
 0x2a1   : > { %2318 = vst [vmem:[%s2931_s20 + $0x1290] sm:$0xff] %v1550_v58  ;;  %v815_v58 = vld [vmem:[%s2912_s4 + $0x13a0] sm:$0xff]  ;;  %v1583_v61 = vmul.f32 %v2919_v1, %v814_v56 }
 0x2a2   : > { %2319 = vst [vmem:[%s2931_s20 + $0x1298] sm:$0xff] %v1551_v60  ;;  %v816_v60 = vld [vmem:[%s2912_s4 + $0x13a8] sm:$0xff]  ;;  %v1584_v63 = vmul.f32 %v2919_v1, %v815_v58 }
 0x2a3   : > { %2320 = vst [vmem:[%s2931_s20 + $0x12a0] sm:$0xff] %v1552_v62  ;;  %v817_v62 = vld [vmem:[%s2912_s4 + $0x13b0] sm:$0xff]  ;;  %v1585_v2 = vmul.f32 %v2919_v1, %v816_v60 }
 0x2a4   : > { %2321 = vst [vmem:[%s2931_s20 + $0x12a8] sm:$0xff] %v1553_v0  ;;  %v818_v0 = vld [vmem:[%s2912_s4 + $0x13b8] sm:$0xff]  ;;  %v1586_v4 = vmul.f32 %v2919_v1, %v817_v62 }
 0x2a5   : > { %2322 = vst [vmem:[%s2931_s20 + $0x12b0] sm:$0xff] %v1554_v3  ;;  %v819_v3 = vld [vmem:[%s2912_s4 + $0x13c0] sm:$0xff]  ;;  %v1587_v6 = vmul.f32 %v2919_v1, %v818_v0 }
 0x2a6   : > { %2323 = vst [vmem:[%s2931_s20 + $0x12b8] sm:$0xff] %v1555_v5  ;;  %v820_v5 = vld [vmem:[%s2912_s4 + $0x13c8] sm:$0xff]  ;;  %v1588_v8 = vmul.f32 %v2919_v1, %v819_v3 }
 0x2a7   : > { %2324 = vst [vmem:[%s2931_s20 + $0x12c0] sm:$0xff] %v1556_v7  ;;  %v821_v7 = vld [vmem:[%s2912_s4 + $0x13d0] sm:$0xff]  ;;  %v1589_v10 = vmul.f32 %v2919_v1, %v820_v5 }
 0x2a8   : > { %2325 = vst [vmem:[%s2931_s20 + $0x12c8] sm:$0xff] %v1557_v9  ;;  %v822_v9 = vld [vmem:[%s2912_s4 + $0x13d8] sm:$0xff]  ;;  %v1590_v12 = vmul.f32 %v2919_v1, %v821_v7 }
 0x2a9   : > { %2326 = vst [vmem:[%s2931_s20 + $0x12d0] sm:$0xff] %v1558_v11  ;;  %v823_v11 = vld [vmem:[%s2912_s4 + $0x13e0] sm:$0xff]  ;;  %v1591_v14 = vmul.f32 %v2919_v1, %v822_v9 }
 0x2aa   : > { %2327 = vst [vmem:[%s2931_s20 + $0x12d8] sm:$0xff] %v1559_v13  ;;  %v824_v13 = vld [vmem:[%s2912_s4 + $0x13e8] sm:$0xff]  ;;  %v1592_v16 = vmul.f32 %v2919_v1, %v823_v11 }
 0x2ab   : > { %2328 = vst [vmem:[%s2931_s20 + $0x12e0] sm:$0xff] %v1560_v15  ;;  %v825_v15 = vld [vmem:[%s2912_s4 + $0x13f0] sm:$0xff]  ;;  %v1593_v18 = vmul.f32 %v2919_v1, %v824_v13 }
 0x2ac   : > { %2329 = vst [vmem:[%s2931_s20 + $0x12e8] sm:$0xff] %v1561_v17  ;;  %v826_v17 = vld [vmem:[%s2912_s4 + $0x13f8] sm:$0xff]  ;;  %v1594_v20 = vmul.f32 %v2919_v1, %v825_v15 }
 0x2ad   : > { %2330 = vst [vmem:[%s2931_s20 + $0x12f0] sm:$0xff] %v1562_v19  ;;  %v827_v19 = vld [vmem:[%s2912_s4 + $0x1400] sm:$0xff]  ;;  %v1595_v22 = vmul.f32 %v2919_v1, %v826_v17 }
 0x2ae   : > { %2331 = vst [vmem:[%s2931_s20 + $0x12f8] sm:$0xff] %v1563_v21  ;;  %v828_v21 = vld [vmem:[%s2912_s4 + $0x1408] sm:$0xff]  ;;  %v1596_v24 = vmul.f32 %v2919_v1, %v827_v19 }
 0x2af   : > { %2332 = vst [vmem:[%s2931_s20 + $0x1300] sm:$0xff] %v1564_v23  ;;  %v829_v23 = vld [vmem:[%s2912_s4 + $0x1410] sm:$0xff]  ;;  %v1597_v26 = vmul.f32 %v2919_v1, %v828_v21 }
 0x2b0   : > { %2333 = vst [vmem:[%s2931_s20 + $0x1308] sm:$0xff] %v1565_v25  ;;  %v830_v25 = vld [vmem:[%s2912_s4 + $0x1418] sm:$0xff]  ;;  %v1598_v28 = vmul.f32 %v2919_v1, %v829_v23 }
 0x2b1   : > { %2334 = vst [vmem:[%s2931_s20 + $0x1310] sm:$0xff] %v1566_v27  ;;  %v831_v27 = vld [vmem:[%s2912_s4 + $0x1420] sm:$0xff]  ;;  %v1599_v30 = vmul.f32 %v2919_v1, %v830_v25 }
 0x2b2   : > { %2335 = vst [vmem:[%s2931_s20 + $0x1318] sm:$0xff] %v1567_v29  ;;  %v832_v29 = vld [vmem:[%s2912_s4 + $0x1428] sm:$0xff]  ;;  %v1600_v32 = vmul.f32 %v2919_v1, %v831_v27 }
 0x2b3   : > { %2336 = vst [vmem:[%s2931_s20 + $0x1320] sm:$0xff] %v1568_v31  ;;  %v833_v31 = vld [vmem:[%s2912_s4 + $0x1430] sm:$0xff]  ;;  %v1601_v34 = vmul.f32 %v2919_v1, %v832_v29 }
 0x2b4   : > { %2337 = vst [vmem:[%s2931_s20 + $0x1328] sm:$0xff] %v1569_v33  ;;  %v834_v33 = vld [vmem:[%s2912_s4 + $0x1438] sm:$0xff]  ;;  %v1602_v36 = vmul.f32 %v2919_v1, %v833_v31 }
 0x2b5   : > { %2338 = vst [vmem:[%s2931_s20 + $0x1330] sm:$0xff] %v1570_v35  ;;  %v835_v35 = vld [vmem:[%s2912_s4 + $0x1440] sm:$0xff]  ;;  %v1603_v38 = vmul.f32 %v2919_v1, %v834_v33 }
 0x2b6   : > { %2339 = vst [vmem:[%s2931_s20 + $0x1338] sm:$0xff] %v1571_v37  ;;  %v836_v37 = vld [vmem:[%s2912_s4 + $0x1448] sm:$0xff]  ;;  %v1604_v40 = vmul.f32 %v2919_v1, %v835_v35 }
 0x2b7   : > { %2340 = vst [vmem:[%s2931_s20 + $0x1340] sm:$0xff] %v1572_v39  ;;  %v837_v39 = vld [vmem:[%s2912_s4 + $0x1450] sm:$0xff]  ;;  %v1605_v42 = vmul.f32 %v2919_v1, %v836_v37 }
 0x2b8   : > { %2341 = vst [vmem:[%s2931_s20 + $0x1348] sm:$0xff] %v1573_v41  ;;  %v838_v41 = vld [vmem:[%s2912_s4 + $0x1458] sm:$0xff]  ;;  %v1606_v44 = vmul.f32 %v2919_v1, %v837_v39 }
 0x2b9   : > { %2342 = vst [vmem:[%s2931_s20 + $0x1350] sm:$0xff] %v1574_v43  ;;  %v839_v43 = vld [vmem:[%s2912_s4 + $0x1460] sm:$0xff]  ;;  %v1607_v46 = vmul.f32 %v2919_v1, %v838_v41 }
 0x2ba   : > { %2343 = vst [vmem:[%s2931_s20 + $0x1358] sm:$0xff] %v1575_v45  ;;  %v840_v45 = vld [vmem:[%s2912_s4 + $0x1468] sm:$0xff]  ;;  %v1608_v48 = vmul.f32 %v2919_v1, %v839_v43 }
 0x2bb   : > { %2344 = vst [vmem:[%s2931_s20 + $0x1360] sm:$0xff] %v1576_v47  ;;  %v841_v47 = vld [vmem:[%s2912_s4 + $0x1470] sm:$0xff]  ;;  %v1609_v50 = vmul.f32 %v2919_v1, %v840_v45 }
 0x2bc   : > { %2345 = vst [vmem:[%s2931_s20 + $0x1368] sm:$0xff] %v1577_v49  ;;  %v842_v49 = vld [vmem:[%s2912_s4 + $0x1478] sm:$0xff]  ;;  %v1610_v52 = vmul.f32 %v2919_v1, %v841_v47 }
 0x2bd   : > { %2346 = vst [vmem:[%s2931_s20 + $0x1370] sm:$0xff] %v1578_v51  ;;  %v843_v51 = vld [vmem:[%s2912_s4 + $0x1480] sm:$0xff]  ;;  %v1611_v54 = vmul.f32 %v2919_v1, %v842_v49 }
 0x2be   : > { %2347 = vst [vmem:[%s2931_s20 + $0x1378] sm:$0xff] %v1579_v53  ;;  %v844_v53 = vld [vmem:[%s2912_s4 + $0x1488] sm:$0xff]  ;;  %v1612_v56 = vmul.f32 %v2919_v1, %v843_v51 }
 0x2bf   : > { %2348 = vst [vmem:[%s2931_s20 + $0x1380] sm:$0xff] %v1580_v55  ;;  %v845_v55 = vld [vmem:[%s2912_s4 + $0x1490] sm:$0xff]  ;;  %v1613_v58 = vmul.f32 %v2919_v1, %v844_v53 }
 0x2c0   : > { %2349 = vst [vmem:[%s2931_s20 + $0x1388] sm:$0xff] %v1581_v57  ;;  %v846_v57 = vld [vmem:[%s2912_s4 + $0x1498] sm:$0xff]  ;;  %v1614_v60 = vmul.f32 %v2919_v1, %v845_v55 }
 0x2c1   : > { %2350 = vst [vmem:[%s2931_s20 + $0x1390] sm:$0xff] %v1582_v59  ;;  %v847_v59 = vld [vmem:[%s2912_s4 + $0x14a0] sm:$0xff]  ;;  %v1615_v62 = vmul.f32 %v2919_v1, %v846_v57 }
 0x2c2   : > { %2351 = vst [vmem:[%s2931_s20 + $0x1398] sm:$0xff] %v1583_v61  ;;  %v848_v61 = vld [vmem:[%s2912_s4 + $0x14a8] sm:$0xff]  ;;  %v1616_v0 = vmul.f32 %v2919_v1, %v847_v59 }
 0x2c3   : > { %2352 = vst [vmem:[%s2931_s20 + $0x13a0] sm:$0xff] %v1584_v63  ;;  %v849_v63 = vld [vmem:[%s2912_s4 + $0x14b0] sm:$0xff]  ;;  %v1617_v3 = vmul.f32 %v2919_v1, %v848_v61 }
 0x2c4   : > { %2353 = vst [vmem:[%s2931_s20 + $0x13a8] sm:$0xff] %v1585_v2  ;;  %v850_v2 = vld [vmem:[%s2912_s4 + $0x14b8] sm:$0xff]  ;;  %v1618_v5 = vmul.f32 %v2919_v1, %v849_v63 }
 0x2c5   : > { %2354 = vst [vmem:[%s2931_s20 + $0x13b0] sm:$0xff] %v1586_v4  ;;  %v851_v4 = vld [vmem:[%s2912_s4 + $0x14c0] sm:$0xff]  ;;  %v1619_v7 = vmul.f32 %v2919_v1, %v850_v2 }
 0x2c6   : > { %2355 = vst [vmem:[%s2931_s20 + $0x13b8] sm:$0xff] %v1587_v6  ;;  %v852_v6 = vld [vmem:[%s2912_s4 + $0x14c8] sm:$0xff]  ;;  %v1620_v9 = vmul.f32 %v2919_v1, %v851_v4 }
 0x2c7   : > { %2356 = vst [vmem:[%s2931_s20 + $0x13c0] sm:$0xff] %v1588_v8  ;;  %v853_v8 = vld [vmem:[%s2912_s4 + $0x14d0] sm:$0xff]  ;;  %v1621_v11 = vmul.f32 %v2919_v1, %v852_v6 }
 0x2c8   : > { %2357 = vst [vmem:[%s2931_s20 + $0x13c8] sm:$0xff] %v1589_v10  ;;  %v854_v10 = vld [vmem:[%s2912_s4 + $0x14d8] sm:$0xff]  ;;  %v1622_v13 = vmul.f32 %v2919_v1, %v853_v8 }
 0x2c9   : > { %2358 = vst [vmem:[%s2931_s20 + $0x13d0] sm:$0xff] %v1590_v12  ;;  %v855_v12 = vld [vmem:[%s2912_s4 + $0x14e0] sm:$0xff]  ;;  %v1623_v15 = vmul.f32 %v2919_v1, %v854_v10 }
 0x2ca   : > { %2359 = vst [vmem:[%s2931_s20 + $0x13d8] sm:$0xff] %v1591_v14  ;;  %v856_v14 = vld [vmem:[%s2912_s4 + $0x14e8] sm:$0xff]  ;;  %v1624_v17 = vmul.f32 %v2919_v1, %v855_v12 }
 0x2cb   : > { %2360 = vst [vmem:[%s2931_s20 + $0x13e0] sm:$0xff] %v1592_v16  ;;  %v857_v16 = vld [vmem:[%s2912_s4 + $0x14f0] sm:$0xff]  ;;  %v1625_v19 = vmul.f32 %v2919_v1, %v856_v14 }
 0x2cc   : > { %2361 = vst [vmem:[%s2931_s20 + $0x13e8] sm:$0xff] %v1593_v18  ;;  %v858_v18 = vld [vmem:[%s2912_s4 + $0x14f8] sm:$0xff]  ;;  %v1626_v21 = vmul.f32 %v2919_v1, %v857_v16 }
 0x2cd   : > { %2362 = vst [vmem:[%s2931_s20 + $0x13f0] sm:$0xff] %v1594_v20  ;;  %v859_v20 = vld [vmem:[%s2912_s4 + $0x1500] sm:$0xff]  ;;  %v1627_v23 = vmul.f32 %v2919_v1, %v858_v18 }
 0x2ce   : > { %2363 = vst [vmem:[%s2931_s20 + $0x13f8] sm:$0xff] %v1595_v22  ;;  %v860_v22 = vld [vmem:[%s2912_s4 + $0x1508] sm:$0xff]  ;;  %v1628_v25 = vmul.f32 %v2919_v1, %v859_v20 }
 0x2cf   : > { %2364 = vst [vmem:[%s2931_s20 + $0x1400] sm:$0xff] %v1596_v24  ;;  %v861_v24 = vld [vmem:[%s2912_s4 + $0x1510] sm:$0xff]  ;;  %v1629_v27 = vmul.f32 %v2919_v1, %v860_v22 }
 0x2d0   : > { %2365 = vst [vmem:[%s2931_s20 + $0x1408] sm:$0xff] %v1597_v26  ;;  %v862_v26 = vld [vmem:[%s2912_s4 + $0x1518] sm:$0xff]  ;;  %v1630_v29 = vmul.f32 %v2919_v1, %v861_v24 }
 0x2d1   : > { %2366 = vst [vmem:[%s2931_s20 + $0x1410] sm:$0xff] %v1598_v28  ;;  %v863_v28 = vld [vmem:[%s2912_s4 + $0x1520] sm:$0xff]  ;;  %v1631_v31 = vmul.f32 %v2919_v1, %v862_v26 }
 0x2d2   : > { %2367 = vst [vmem:[%s2931_s20 + $0x1418] sm:$0xff] %v1599_v30  ;;  %v864_v30 = vld [vmem:[%s2912_s4 + $0x1528] sm:$0xff]  ;;  %v1632_v33 = vmul.f32 %v2919_v1, %v863_v28 }
 0x2d3   : > { %2368 = vst [vmem:[%s2931_s20 + $0x1420] sm:$0xff] %v1600_v32  ;;  %v865_v32 = vld [vmem:[%s2912_s4 + $0x1530] sm:$0xff]  ;;  %v1633_v35 = vmul.f32 %v2919_v1, %v864_v30 }
 0x2d4   : > { %2369 = vst [vmem:[%s2931_s20 + $0x1428] sm:$0xff] %v1601_v34  ;;  %v866_v34 = vld [vmem:[%s2912_s4 + $0x1538] sm:$0xff]  ;;  %v1634_v37 = vmul.f32 %v2919_v1, %v865_v32 }
 0x2d5   : > { %2370 = vst [vmem:[%s2931_s20 + $0x1430] sm:$0xff] %v1602_v36  ;;  %v867_v36 = vld [vmem:[%s2912_s4 + $0x1540] sm:$0xff]  ;;  %v1635_v39 = vmul.f32 %v2919_v1, %v866_v34 }
 0x2d6   : > { %2371 = vst [vmem:[%s2931_s20 + $0x1438] sm:$0xff] %v1603_v38  ;;  %v868_v38 = vld [vmem:[%s2912_s4 + $0x1548] sm:$0xff]  ;;  %v1636_v41 = vmul.f32 %v2919_v1, %v867_v36 }
 0x2d7   : > { %2372 = vst [vmem:[%s2931_s20 + $0x1440] sm:$0xff] %v1604_v40  ;;  %v869_v40 = vld [vmem:[%s2912_s4 + $0x1550] sm:$0xff]  ;;  %v1637_v43 = vmul.f32 %v2919_v1, %v868_v38 }
 0x2d8   : > { %2373 = vst [vmem:[%s2931_s20 + $0x1448] sm:$0xff] %v1605_v42  ;;  %v870_v42 = vld [vmem:[%s2912_s4 + $0x1558] sm:$0xff]  ;;  %v1638_v45 = vmul.f32 %v2919_v1, %v869_v40 }
 0x2d9   : > { %2374 = vst [vmem:[%s2931_s20 + $0x1450] sm:$0xff] %v1606_v44  ;;  %v871_v44 = vld [vmem:[%s2912_s4 + $0x1560] sm:$0xff]  ;;  %v1639_v47 = vmul.f32 %v2919_v1, %v870_v42 }
 0x2da   : > { %2375 = vst [vmem:[%s2931_s20 + $0x1458] sm:$0xff] %v1607_v46  ;;  %v872_v46 = vld [vmem:[%s2912_s4 + $0x1568] sm:$0xff]  ;;  %v1640_v49 = vmul.f32 %v2919_v1, %v871_v44 }
 0x2db   : > { %2376 = vst [vmem:[%s2931_s20 + $0x1460] sm:$0xff] %v1608_v48  ;;  %v873_v48 = vld [vmem:[%s2912_s4 + $0x1570] sm:$0xff]  ;;  %v1641_v51 = vmul.f32 %v2919_v1, %v872_v46 }
 0x2dc   : > { %2377 = vst [vmem:[%s2931_s20 + $0x1468] sm:$0xff] %v1609_v50  ;;  %v874_v50 = vld [vmem:[%s2912_s4 + $0x1578] sm:$0xff]  ;;  %v1642_v53 = vmul.f32 %v2919_v1, %v873_v48 }
 0x2dd   : > { %2378 = vst [vmem:[%s2931_s20 + $0x1470] sm:$0xff] %v1610_v52  ;;  %v875_v52 = vld [vmem:[%s2912_s4 + $0x1580] sm:$0xff]  ;;  %v1643_v55 = vmul.f32 %v2919_v1, %v874_v50 }
 0x2de   : > { %2379 = vst [vmem:[%s2931_s20 + $0x1478] sm:$0xff] %v1611_v54  ;;  %v876_v54 = vld [vmem:[%s2912_s4 + $0x1588] sm:$0xff]  ;;  %v1644_v57 = vmul.f32 %v2919_v1, %v875_v52 }
 0x2df   : > { %2380 = vst [vmem:[%s2931_s20 + $0x1480] sm:$0xff] %v1612_v56  ;;  %v877_v56 = vld [vmem:[%s2912_s4 + $0x1590] sm:$0xff]  ;;  %v1645_v59 = vmul.f32 %v2919_v1, %v876_v54 }
 0x2e0   : > { %2381 = vst [vmem:[%s2931_s20 + $0x1488] sm:$0xff] %v1613_v58  ;;  %v878_v58 = vld [vmem:[%s2912_s4 + $0x1598] sm:$0xff]  ;;  %v1646_v61 = vmul.f32 %v2919_v1, %v877_v56 }
 0x2e1   : > { %2382 = vst [vmem:[%s2931_s20 + $0x1490] sm:$0xff] %v1614_v60  ;;  %v879_v60 = vld [vmem:[%s2912_s4 + $0x15a0] sm:$0xff]  ;;  %v1647_v63 = vmul.f32 %v2919_v1, %v878_v58 }
 0x2e2   : > { %2383 = vst [vmem:[%s2931_s20 + $0x1498] sm:$0xff] %v1615_v62  ;;  %v880_v62 = vld [vmem:[%s2912_s4 + $0x15a8] sm:$0xff]  ;;  %v1648_v2 = vmul.f32 %v2919_v1, %v879_v60 }
 0x2e3   : > { %2384 = vst [vmem:[%s2931_s20 + $0x14a0] sm:$0xff] %v1616_v0  ;;  %v881_v0 = vld [vmem:[%s2912_s4 + $0x15b0] sm:$0xff]  ;;  %v1649_v4 = vmul.f32 %v2919_v1, %v880_v62 }
 0x2e4   : > { %2385 = vst [vmem:[%s2931_s20 + $0x14a8] sm:$0xff] %v1617_v3  ;;  %v882_v3 = vld [vmem:[%s2912_s4 + $0x15b8] sm:$0xff]  ;;  %v1650_v6 = vmul.f32 %v2919_v1, %v881_v0 }
 0x2e5   : > { %2386 = vst [vmem:[%s2931_s20 + $0x14b0] sm:$0xff] %v1618_v5  ;;  %v883_v5 = vld [vmem:[%s2912_s4 + $0x15c0] sm:$0xff]  ;;  %v1651_v8 = vmul.f32 %v2919_v1, %v882_v3 }
 0x2e6   : > { %2387 = vst [vmem:[%s2931_s20 + $0x14b8] sm:$0xff] %v1619_v7  ;;  %v884_v7 = vld [vmem:[%s2912_s4 + $0x15c8] sm:$0xff]  ;;  %v1652_v10 = vmul.f32 %v2919_v1, %v883_v5 }
 0x2e7   : > { %2388 = vst [vmem:[%s2931_s20 + $0x14c0] sm:$0xff] %v1620_v9  ;;  %v885_v9 = vld [vmem:[%s2912_s4 + $0x15d0] sm:$0xff]  ;;  %v1653_v12 = vmul.f32 %v2919_v1, %v884_v7 }
 0x2e8   : > { %2389 = vst [vmem:[%s2931_s20 + $0x14c8] sm:$0xff] %v1621_v11  ;;  %v886_v11 = vld [vmem:[%s2912_s4 + $0x15d8] sm:$0xff]  ;;  %v1654_v14 = vmul.f32 %v2919_v1, %v885_v9 }
 0x2e9   : > { %2390 = vst [vmem:[%s2931_s20 + $0x14d0] sm:$0xff] %v1622_v13  ;;  %v887_v13 = vld [vmem:[%s2912_s4 + $0x15e0] sm:$0xff]  ;;  %v1655_v16 = vmul.f32 %v2919_v1, %v886_v11 }
 0x2ea   : > { %2391 = vst [vmem:[%s2931_s20 + $0x14d8] sm:$0xff] %v1623_v15  ;;  %v888_v15 = vld [vmem:[%s2912_s4 + $0x15e8] sm:$0xff]  ;;  %v1656_v18 = vmul.f32 %v2919_v1, %v887_v13 }
 0x2eb   : > { %2392 = vst [vmem:[%s2931_s20 + $0x14e0] sm:$0xff] %v1624_v17  ;;  %v889_v17 = vld [vmem:[%s2912_s4 + $0x15f0] sm:$0xff]  ;;  %v1657_v20 = vmul.f32 %v2919_v1, %v888_v15 }
 0x2ec   : > { %2393 = vst [vmem:[%s2931_s20 + $0x14e8] sm:$0xff] %v1625_v19  ;;  %v890_v19 = vld [vmem:[%s2912_s4 + $0x15f8] sm:$0xff]  ;;  %v1658_v22 = vmul.f32 %v2919_v1, %v889_v17 }
 0x2ed   : > { %2394 = vst [vmem:[%s2931_s20 + $0x14f0] sm:$0xff] %v1626_v21  ;;  %v891_v21 = vld [vmem:[%s2912_s4 + $0x1600] sm:$0xff]  ;;  %v1659_v24 = vmul.f32 %v2919_v1, %v890_v19 }
 0x2ee   : > { %2395 = vst [vmem:[%s2931_s20 + $0x14f8] sm:$0xff] %v1627_v23  ;;  %v892_v23 = vld [vmem:[%s2912_s4 + $0x1608] sm:$0xff]  ;;  %v1660_v26 = vmul.f32 %v2919_v1, %v891_v21 }
 0x2ef   : > { %2396 = vst [vmem:[%s2931_s20 + $0x1500] sm:$0xff] %v1628_v25  ;;  %v893_v25 = vld [vmem:[%s2912_s4 + $0x1610] sm:$0xff]  ;;  %v1661_v28 = vmul.f32 %v2919_v1, %v892_v23 }
 0x2f0   : > { %2397 = vst [vmem:[%s2931_s20 + $0x1508] sm:$0xff] %v1629_v27  ;;  %v894_v27 = vld [vmem:[%s2912_s4 + $0x1618] sm:$0xff]  ;;  %v1662_v30 = vmul.f32 %v2919_v1, %v893_v25 }
 0x2f1   : > { %2398 = vst [vmem:[%s2931_s20 + $0x1510] sm:$0xff] %v1630_v29  ;;  %v895_v29 = vld [vmem:[%s2912_s4 + $0x1620] sm:$0xff]  ;;  %v1663_v32 = vmul.f32 %v2919_v1, %v894_v27 }
 0x2f2   : > { %2399 = vst [vmem:[%s2931_s20 + $0x1518] sm:$0xff] %v1631_v31  ;;  %v896_v31 = vld [vmem:[%s2912_s4 + $0x1628] sm:$0xff]  ;;  %v1664_v34 = vmul.f32 %v2919_v1, %v895_v29 }
 0x2f3   : > { %2400 = vst [vmem:[%s2931_s20 + $0x1520] sm:$0xff] %v1632_v33  ;;  %v897_v33 = vld [vmem:[%s2912_s4 + $0x1630] sm:$0xff]  ;;  %v1665_v36 = vmul.f32 %v2919_v1, %v896_v31 }
 0x2f4   : > { %2401 = vst [vmem:[%s2931_s20 + $0x1528] sm:$0xff] %v1633_v35  ;;  %v898_v35 = vld [vmem:[%s2912_s4 + $0x1638] sm:$0xff]  ;;  %v1666_v38 = vmul.f32 %v2919_v1, %v897_v33 }
 0x2f5   : > { %2402 = vst [vmem:[%s2931_s20 + $0x1530] sm:$0xff] %v1634_v37  ;;  %v899_v37 = vld [vmem:[%s2912_s4 + $0x1640] sm:$0xff]  ;;  %v1667_v40 = vmul.f32 %v2919_v1, %v898_v35 }
 0x2f6   : > { %2403 = vst [vmem:[%s2931_s20 + $0x1538] sm:$0xff] %v1635_v39  ;;  %v900_v39 = vld [vmem:[%s2912_s4 + $0x1648] sm:$0xff]  ;;  %v1668_v42 = vmul.f32 %v2919_v1, %v899_v37 }
 0x2f7   : > { %2404 = vst [vmem:[%s2931_s20 + $0x1540] sm:$0xff] %v1636_v41  ;;  %v901_v41 = vld [vmem:[%s2912_s4 + $0x1650] sm:$0xff]  ;;  %v1669_v44 = vmul.f32 %v2919_v1, %v900_v39 }
 0x2f8   : > { %2405 = vst [vmem:[%s2931_s20 + $0x1548] sm:$0xff] %v1637_v43  ;;  %v902_v43 = vld [vmem:[%s2912_s4 + $0x1658] sm:$0xff]  ;;  %v1670_v46 = vmul.f32 %v2919_v1, %v901_v41 }
 0x2f9   : > { %2406 = vst [vmem:[%s2931_s20 + $0x1550] sm:$0xff] %v1638_v45  ;;  %v903_v45 = vld [vmem:[%s2912_s4 + $0x1660] sm:$0xff]  ;;  %v1671_v48 = vmul.f32 %v2919_v1, %v902_v43 }
 0x2fa   : > { %2407 = vst [vmem:[%s2931_s20 + $0x1558] sm:$0xff] %v1639_v47  ;;  %v904_v47 = vld [vmem:[%s2912_s4 + $0x1668] sm:$0xff]  ;;  %v1672_v50 = vmul.f32 %v2919_v1, %v903_v45 }
 0x2fb   : > { %2408 = vst [vmem:[%s2931_s20 + $0x1560] sm:$0xff] %v1640_v49  ;;  %v905_v49 = vld [vmem:[%s2912_s4 + $0x1670] sm:$0xff]  ;;  %v1673_v52 = vmul.f32 %v2919_v1, %v904_v47 }
 0x2fc   : > { %2409 = vst [vmem:[%s2931_s20 + $0x1568] sm:$0xff] %v1641_v51  ;;  %v906_v51 = vld [vmem:[%s2912_s4 + $0x1678] sm:$0xff]  ;;  %v1674_v54 = vmul.f32 %v2919_v1, %v905_v49 }
 0x2fd   : > { %2410 = vst [vmem:[%s2931_s20 + $0x1570] sm:$0xff] %v1642_v53  ;;  %v907_v53 = vld [vmem:[%s2912_s4 + $0x1680] sm:$0xff]  ;;  %v1675_v56 = vmul.f32 %v2919_v1, %v906_v51 }
 0x2fe   : > { %2411 = vst [vmem:[%s2931_s20 + $0x1578] sm:$0xff] %v1643_v55  ;;  %v908_v55 = vld [vmem:[%s2912_s4 + $0x1688] sm:$0xff]  ;;  %v1676_v58 = vmul.f32 %v2919_v1, %v907_v53 }
 0x2ff   : > { %2412 = vst [vmem:[%s2931_s20 + $0x1580] sm:$0xff] %v1644_v57  ;;  %v909_v57 = vld [vmem:[%s2912_s4 + $0x1690] sm:$0xff]  ;;  %v1677_v60 = vmul.f32 %v2919_v1, %v908_v55 }
 0x300   : > { %2413 = vst [vmem:[%s2931_s20 + $0x1588] sm:$0xff] %v1645_v59  ;;  %v910_v59 = vld [vmem:[%s2912_s4 + $0x1698] sm:$0xff]  ;;  %v1678_v62 = vmul.f32 %v2919_v1, %v909_v57 }
 0x301   : > { %2414 = vst [vmem:[%s2931_s20 + $0x1590] sm:$0xff] %v1646_v61  ;;  %v911_v61 = vld [vmem:[%s2912_s4 + $0x16a0] sm:$0xff]  ;;  %v1679_v0 = vmul.f32 %v2919_v1, %v910_v59 }
 0x302   : > { %2415 = vst [vmem:[%s2931_s20 + $0x1598] sm:$0xff] %v1647_v63  ;;  %v912_v63 = vld [vmem:[%s2912_s4 + $0x16a8] sm:$0xff]  ;;  %v1680_v3 = vmul.f32 %v2919_v1, %v911_v61 }
 0x303   : > { %2416 = vst [vmem:[%s2931_s20 + $0x15a0] sm:$0xff] %v1648_v2  ;;  %v913_v2 = vld [vmem:[%s2912_s4 + $0x16b0] sm:$0xff]  ;;  %v1681_v5 = vmul.f32 %v2919_v1, %v912_v63 }
 0x304   : > { %2417 = vst [vmem:[%s2931_s20 + $0x15a8] sm:$0xff] %v1649_v4  ;;  %v914_v4 = vld [vmem:[%s2912_s4 + $0x16b8] sm:$0xff]  ;;  %v1682_v7 = vmul.f32 %v2919_v1, %v913_v2 }
 0x305   : > { %2418 = vst [vmem:[%s2931_s20 + $0x15b0] sm:$0xff] %v1650_v6  ;;  %v915_v6 = vld [vmem:[%s2912_s4 + $0x16c0] sm:$0xff]  ;;  %v1683_v9 = vmul.f32 %v2919_v1, %v914_v4 }
 0x306   : > { %2419 = vst [vmem:[%s2931_s20 + $0x15b8] sm:$0xff] %v1651_v8  ;;  %v916_v8 = vld [vmem:[%s2912_s4 + $0x16c8] sm:$0xff]  ;;  %v1684_v11 = vmul.f32 %v2919_v1, %v915_v6 }
 0x307   : > { %2420 = vst [vmem:[%s2931_s20 + $0x15c0] sm:$0xff] %v1652_v10  ;;  %v917_v10 = vld [vmem:[%s2912_s4 + $0x16d0] sm:$0xff]  ;;  %v1685_v13 = vmul.f32 %v2919_v1, %v916_v8 }
 0x308   : > { %2421 = vst [vmem:[%s2931_s20 + $0x15c8] sm:$0xff] %v1653_v12  ;;  %v918_v12 = vld [vmem:[%s2912_s4 + $0x16d8] sm:$0xff]  ;;  %v1686_v15 = vmul.f32 %v2919_v1, %v917_v10 }
 0x309   : > { %2422 = vst [vmem:[%s2931_s20 + $0x15d0] sm:$0xff] %v1654_v14  ;;  %v919_v14 = vld [vmem:[%s2912_s4 + $0x16e0] sm:$0xff]  ;;  %v1687_v17 = vmul.f32 %v2919_v1, %v918_v12 }
 0x30a   : > { %2423 = vst [vmem:[%s2931_s20 + $0x15d8] sm:$0xff] %v1655_v16  ;;  %v920_v16 = vld [vmem:[%s2912_s4 + $0x16e8] sm:$0xff]  ;;  %v1688_v19 = vmul.f32 %v2919_v1, %v919_v14 }
 0x30b   : > { %2424 = vst [vmem:[%s2931_s20 + $0x15e0] sm:$0xff] %v1656_v18  ;;  %v921_v18 = vld [vmem:[%s2912_s4 + $0x16f0] sm:$0xff]  ;;  %v1689_v21 = vmul.f32 %v2919_v1, %v920_v16 }
 0x30c   : > { %2425 = vst [vmem:[%s2931_s20 + $0x15e8] sm:$0xff] %v1657_v20  ;;  %v922_v20 = vld [vmem:[%s2912_s4 + $0x16f8] sm:$0xff]  ;;  %v1690_v23 = vmul.f32 %v2919_v1, %v921_v18 }
 0x30d   : > { %2426 = vst [vmem:[%s2931_s20 + $0x15f0] sm:$0xff] %v1658_v22  ;;  %v923_v22 = vld [vmem:[%s2912_s4 + $0x1700] sm:$0xff]  ;;  %v1691_v25 = vmul.f32 %v2919_v1, %v922_v20 }
 0x30e   : > { %2427 = vst [vmem:[%s2931_s20 + $0x15f8] sm:$0xff] %v1659_v24  ;;  %v924_v24 = vld [vmem:[%s2912_s4 + $0x1708] sm:$0xff]  ;;  %v1692_v27 = vmul.f32 %v2919_v1, %v923_v22 }
 0x30f   : > { %2428 = vst [vmem:[%s2931_s20 + $0x1600] sm:$0xff] %v1660_v26  ;;  %v925_v26 = vld [vmem:[%s2912_s4 + $0x1710] sm:$0xff]  ;;  %v1693_v29 = vmul.f32 %v2919_v1, %v924_v24 }
 0x310   : > { %2429 = vst [vmem:[%s2931_s20 + $0x1608] sm:$0xff] %v1661_v28  ;;  %v926_v28 = vld [vmem:[%s2912_s4 + $0x1718] sm:$0xff]  ;;  %v1694_v31 = vmul.f32 %v2919_v1, %v925_v26 }
 0x311   : > { %2430 = vst [vmem:[%s2931_s20 + $0x1610] sm:$0xff] %v1662_v30  ;;  %v927_v30 = vld [vmem:[%s2912_s4 + $0x1720] sm:$0xff]  ;;  %v1695_v33 = vmul.f32 %v2919_v1, %v926_v28 }
 0x312   : > { %2431 = vst [vmem:[%s2931_s20 + $0x1618] sm:$0xff] %v1663_v32  ;;  %v928_v32 = vld [vmem:[%s2912_s4 + $0x1728] sm:$0xff]  ;;  %v1696_v35 = vmul.f32 %v2919_v1, %v927_v30 }
 0x313   : > { %2432 = vst [vmem:[%s2931_s20 + $0x1620] sm:$0xff] %v1664_v34  ;;  %v929_v34 = vld [vmem:[%s2912_s4 + $0x1730] sm:$0xff]  ;;  %v1697_v37 = vmul.f32 %v2919_v1, %v928_v32 }
 0x314   : > { %2433 = vst [vmem:[%s2931_s20 + $0x1628] sm:$0xff] %v1665_v36  ;;  %v930_v36 = vld [vmem:[%s2912_s4 + $0x1738] sm:$0xff]  ;;  %v1698_v39 = vmul.f32 %v2919_v1, %v929_v34 }
 0x315   : > { %2434 = vst [vmem:[%s2931_s20 + $0x1630] sm:$0xff] %v1666_v38  ;;  %v931_v38 = vld [vmem:[%s2912_s4 + $0x1740] sm:$0xff]  ;;  %v1699_v41 = vmul.f32 %v2919_v1, %v930_v36 }
 0x316   : > { %2435 = vst [vmem:[%s2931_s20 + $0x1638] sm:$0xff] %v1667_v40  ;;  %v932_v40 = vld [vmem:[%s2912_s4 + $0x1748] sm:$0xff]  ;;  %v1700_v43 = vmul.f32 %v2919_v1, %v931_v38 }
 0x317   : > { %2436 = vst [vmem:[%s2931_s20 + $0x1640] sm:$0xff] %v1668_v42  ;;  %v933_v42 = vld [vmem:[%s2912_s4 + $0x1750] sm:$0xff]  ;;  %v1701_v45 = vmul.f32 %v2919_v1, %v932_v40 }
 0x318   : > { %2437 = vst [vmem:[%s2931_s20 + $0x1648] sm:$0xff] %v1669_v44  ;;  %v934_v44 = vld [vmem:[%s2912_s4 + $0x1758] sm:$0xff]  ;;  %v1702_v47 = vmul.f32 %v2919_v1, %v933_v42 }
 0x319   : > { %2438 = vst [vmem:[%s2931_s20 + $0x1650] sm:$0xff] %v1670_v46  ;;  %v935_v46 = vld [vmem:[%s2912_s4 + $0x1760] sm:$0xff]  ;;  %v1703_v49 = vmul.f32 %v2919_v1, %v934_v44 }
 0x31a   : > { %2439 = vst [vmem:[%s2931_s20 + $0x1658] sm:$0xff] %v1671_v48  ;;  %v936_v48 = vld [vmem:[%s2912_s4 + $0x1768] sm:$0xff]  ;;  %v1704_v51 = vmul.f32 %v2919_v1, %v935_v46 }
 0x31b   : > { %2440 = vst [vmem:[%s2931_s20 + $0x1660] sm:$0xff] %v1672_v50  ;;  %v937_v50 = vld [vmem:[%s2912_s4 + $0x1770] sm:$0xff]  ;;  %v1705_v53 = vmul.f32 %v2919_v1, %v936_v48 }
 0x31c   : > { %2441 = vst [vmem:[%s2931_s20 + $0x1668] sm:$0xff] %v1673_v52  ;;  %v938_v52 = vld [vmem:[%s2912_s4 + $0x1778] sm:$0xff]  ;;  %v1706_v55 = vmul.f32 %v2919_v1, %v937_v50 }
 0x31d   : > { %2442 = vst [vmem:[%s2931_s20 + $0x1670] sm:$0xff] %v1674_v54  ;;  %v939_v54 = vld [vmem:[%s2912_s4 + $0x1780] sm:$0xff]  ;;  %v1707_v57 = vmul.f32 %v2919_v1, %v938_v52 }
 0x31e   : > { %2443 = vst [vmem:[%s2931_s20 + $0x1678] sm:$0xff] %v1675_v56  ;;  %v940_v56 = vld [vmem:[%s2912_s4 + $0x1788] sm:$0xff]  ;;  %v1708_v59 = vmul.f32 %v2919_v1, %v939_v54 }
 0x31f   : > { %2444 = vst [vmem:[%s2931_s20 + $0x1680] sm:$0xff] %v1676_v58  ;;  %v941_v58 = vld [vmem:[%s2912_s4 + $0x1790] sm:$0xff]  ;;  %v1709_v61 = vmul.f32 %v2919_v1, %v940_v56 }
 0x320   : > { %2445 = vst [vmem:[%s2931_s20 + $0x1688] sm:$0xff] %v1677_v60  ;;  %v942_v60 = vld [vmem:[%s2912_s4 + $0x1798] sm:$0xff]  ;;  %v1710_v63 = vmul.f32 %v2919_v1, %v941_v58 }
 0x321   : > { %2446 = vst [vmem:[%s2931_s20 + $0x1690] sm:$0xff] %v1678_v62  ;;  %v943_v62 = vld [vmem:[%s2912_s4 + $0x17a0] sm:$0xff]  ;;  %v1711_v2 = vmul.f32 %v2919_v1, %v942_v60 }
 0x322   : > { %2447 = vst [vmem:[%s2931_s20 + $0x1698] sm:$0xff] %v1679_v0  ;;  %v944_v0 = vld [vmem:[%s2912_s4 + $0x17a8] sm:$0xff]  ;;  %v1712_v4 = vmul.f32 %v2919_v1, %v943_v62 }
 0x323   : > { %2448 = vst [vmem:[%s2931_s20 + $0x16a0] sm:$0xff] %v1680_v3  ;;  %v945_v3 = vld [vmem:[%s2912_s4 + $0x17b0] sm:$0xff]  ;;  %v1713_v6 = vmul.f32 %v2919_v1, %v944_v0 }
 0x324   : > { %2449 = vst [vmem:[%s2931_s20 + $0x16a8] sm:$0xff] %v1681_v5  ;;  %v946_v5 = vld [vmem:[%s2912_s4 + $0x17b8] sm:$0xff]  ;;  %v1714_v8 = vmul.f32 %v2919_v1, %v945_v3 }
 0x325   : > { %2450 = vst [vmem:[%s2931_s20 + $0x16b0] sm:$0xff] %v1682_v7  ;;  %v947_v7 = vld [vmem:[%s2912_s4 + $0x17c0] sm:$0xff]  ;;  %v1715_v10 = vmul.f32 %v2919_v1, %v946_v5 }
 0x326   : > { %2451 = vst [vmem:[%s2931_s20 + $0x16b8] sm:$0xff] %v1683_v9  ;;  %v948_v9 = vld [vmem:[%s2912_s4 + $0x17c8] sm:$0xff]  ;;  %v1716_v12 = vmul.f32 %v2919_v1, %v947_v7 }
 0x327   : > { %2452 = vst [vmem:[%s2931_s20 + $0x16c0] sm:$0xff] %v1684_v11  ;;  %v949_v11 = vld [vmem:[%s2912_s4 + $0x17d0] sm:$0xff]  ;;  %v1717_v14 = vmul.f32 %v2919_v1, %v948_v9 }
 0x328   : > { %2453 = vst [vmem:[%s2931_s20 + $0x16c8] sm:$0xff] %v1685_v13  ;;  %v950_v13 = vld [vmem:[%s2912_s4 + $0x17d8] sm:$0xff]  ;;  %v1718_v16 = vmul.f32 %v2919_v1, %v949_v11 }
 0x329   : > { %2454 = vst [vmem:[%s2931_s20 + $0x16d0] sm:$0xff] %v1686_v15  ;;  %v951_v15 = vld [vmem:[%s2912_s4 + $0x17e0] sm:$0xff]  ;;  %v1719_v18 = vmul.f32 %v2919_v1, %v950_v13 }
 0x32a   : > { %2455 = vst [vmem:[%s2931_s20 + $0x16d8] sm:$0xff] %v1687_v17  ;;  %v952_v17 = vld [vmem:[%s2912_s4 + $0x17e8] sm:$0xff]  ;;  %v1720_v20 = vmul.f32 %v2919_v1, %v951_v15 }
 0x32b   : > { %2456 = vst [vmem:[%s2931_s20 + $0x16e0] sm:$0xff] %v1688_v19  ;;  %v953_v19 = vld [vmem:[%s2912_s4 + $0x17f0] sm:$0xff]  ;;  %v1721_v22 = vmul.f32 %v2919_v1, %v952_v17 }
 0x32c   : > { %2457 = vst [vmem:[%s2931_s20 + $0x16e8] sm:$0xff] %v1689_v21  ;;  %v954_v21 = vld [vmem:[%s2912_s4 + $0x17f8] sm:$0xff] }
 0x32d   : > { %2458 = vst [vmem:[%s2931_s20 + $0x16f0] sm:$0xff] %v1690_v23  ;;  %v1722_v23 = vmul.f32 %v2919_v1, %v953_v19  ;;  %v1723_v24 = vmul.f32 %v2919_v1, %v954_v21 }
 0x32e   : > { %2459 = vst [vmem:[%s2931_s20 + $0x16f8] sm:$0xff] %v1691_v25 }
 0x32f   : > { %2460 = vst [vmem:[%s2931_s20 + $0x1700] sm:$0xff] %v1692_v27 }
 0x330   : > { %2461 = vst [vmem:[%s2931_s20 + $0x1708] sm:$0xff] %v1693_v29 }
 0x331   : > { %2462 = vst [vmem:[%s2931_s20 + $0x1710] sm:$0xff] %v1694_v31 }
 0x332   : > { %2463 = vst [vmem:[%s2931_s20 + $0x1718] sm:$0xff] %v1695_v33 }
 0x333   : > { %2464 = vst [vmem:[%s2931_s20 + $0x1720] sm:$0xff] %v1696_v35 }
 0x334   : > { %2465 = vst [vmem:[%s2931_s20 + $0x1728] sm:$0xff] %v1697_v37 }
 0x335   : > { %2466 = vst [vmem:[%s2931_s20 + $0x1730] sm:$0xff] %v1698_v39 }
 0x336   : > { %2467 = vst [vmem:[%s2931_s20 + $0x1738] sm:$0xff] %v1699_v41 }
 0x337   : > { %2468 = vst [vmem:[%s2931_s20 + $0x1740] sm:$0xff] %v1700_v43 }
 0x338   : > { %2469 = vst [vmem:[%s2931_s20 + $0x1748] sm:$0xff] %v1701_v45 }
 0x339   : > { %2470 = vst [vmem:[%s2931_s20 + $0x1750] sm:$0xff] %v1702_v47 }
 0x33a   : > { %2471 = vst [vmem:[%s2931_s20 + $0x1758] sm:$0xff] %v1703_v49 }
 0x33b   : > { %2472 = vst [vmem:[%s2931_s20 + $0x1760] sm:$0xff] %v1704_v51 }
 0x33c   : > { %2473 = vst [vmem:[%s2931_s20 + $0x1768] sm:$0xff] %v1705_v53 }
 0x33d   : > { %2474 = vst [vmem:[%s2931_s20 + $0x1770] sm:$0xff] %v1706_v55 }
 0x33e   : > { %2475 = vst [vmem:[%s2931_s20 + $0x1778] sm:$0xff] %v1707_v57 }
 0x33f   : > { %2476 = vst [vmem:[%s2931_s20 + $0x1780] sm:$0xff] %v1708_v59 }
 0x340   : > { %2477 = vst [vmem:[%s2931_s20 + $0x1788] sm:$0xff] %v1709_v61 }
 0x341   : > { %2478 = vst [vmem:[%s2931_s20 + $0x1790] sm:$0xff] %v1710_v63 }
 0x342   : > { %2479 = vst [vmem:[%s2931_s20 + $0x1798] sm:$0xff] %v1711_v2 }
 0x343   : > { %2480 = vst [vmem:[%s2931_s20 + $0x17a0] sm:$0xff] %v1712_v4 }
 0x344   : > { %2481 = vst [vmem:[%s2931_s20 + $0x17a8] sm:$0xff] %v1713_v6 }
 0x345   : > { %2482 = vst [vmem:[%s2931_s20 + $0x17b0] sm:$0xff] %v1714_v8 }
 0x346   : > { %2483 = vst [vmem:[%s2931_s20 + $0x17b8] sm:$0xff] %v1715_v10 }
 0x347   : > { %2484 = vst [vmem:[%s2931_s20 + $0x17c0] sm:$0xff] %v1716_v12 }
 0x348   : > { %2485 = vst [vmem:[%s2931_s20 + $0x17c8] sm:$0xff] %v1717_v14 }
 0x349   : > { %2486 = vst [vmem:[%s2931_s20 + $0x17d0] sm:$0xff] %v1718_v16 }
 0x34a   : > { %2487 = vst [vmem:[%s2931_s20 + $0x17d8] sm:$0xff] %v1719_v18  ;;  %2499 = sbr.rel (!%p2849_p9) target bundleno = 878 (0x36e), region = 36 }
 0x34b   : > { %2488 = vst [vmem:[%s2931_s20 + $0x17e0] sm:$0xff] %v1720_v20 }
 0x34c   : > { %2489 = vst [vmem:[%s2931_s20 + $0x17e8] sm:$0xff] %v1721_v22 }
 0x34d   : > { %2490 = vst [vmem:[%s2931_s20 + $0x17f0] sm:$0xff] %v1722_v23 }
 0x34e   : > { %2491 = vst [vmem:[%s2931_s20 + $0x17f8] sm:$0xff] %v1723_v24 }
 0x34f   : > { %s5306_s7 = smov (!%p2502_p6, %s2501_s7), 96 }
 0x350   : > { %s2613_s15 = sshll.u32 %s5306_s7, 6 }
 0x351   : > { %s2506_s25 = ssub.s32 6144, %s2613_s15 }
 0x352   : > { %s2507_s27 = sshll.u32 %s2506_s25, 4 }
 0x353   : > { %2508 = vsyncadd %s2493_s30, %s2507_s27  ;;  %p5235_p11 = scmp.ne.s32.totalorder %s2613_s15, 0  ;;  %s2617_s28 = smul.u32 6144, %s2826_s0 }
 0x354   : > { %s2514_s29 = sshll.u32 %s2931_s20, 4  ;;  %s2607_s3 = sshll.u32 %s5306_s7, 10  ;;  %s5245_s29 = int_to_ptr.vmem [resolvable:$true] %s2514_s29 }
 0x355   : > { %s2512_s9 = scalar_lea.hbm %s5291_s2, %s2617_s28  ;;  %s2702_s17 = sshra.s32 %s5245_s29, 4  ;;  %s2703_s17 = int_to_ptr.vmem [resolvable:$true] %s2702_s17 }
 0x356   : > { %s2516_s10 = sshll.u32 %s2512_s9, 4  ;;  %s2704_s23 = sshrl.u32 %s2607_s3, 4  ;;  %s5247_s10 = int_to_ptr.hbm [resolvable:$true] %s2516_s10 }
 0x357   : > { %s2709_s24 = scalar_lea.vmem %s2703_s17, %s2704_s23  ;;  %s2784_s0 = smov [#allocation6]  }
 0x358   : > { %p2710_p9 = scmp.ne.s32.totalorder %s2703_s17, %s2709_s24  ;;  %s2713_s4 = scalar_lea.vmem %s2784_s0, 12288 }
 0x359   : > { %p2715_p7 = scmp.lt.s32.totalorder %s2713_s4, %s2709_s24 }
 0x35a   : > { %p2711_p13 = pnand %p2710_p9, %p5235_p11 }
 0x35c   : > { %p2712_p5 = pneg %p2711_p13 }
 0x35e   : > { %p2717_p8 = pnand %p2715_p7, %p2712_p5 }
 0x360   : > { %2720 = shalt.err (!%p2717_p8)
}
 0x361   : > { %s2721_s26 = sshra.s32 %s5247_s10, 4  ;;  %s2732_s25 = scalar_lea.hbm %s5291_s2, 8192  ;;  %s2722_s26 = int_to_ptr.hbm [resolvable:$true] %s2721_s26 }
 0x362   : > { %s2728_s20 = scalar_lea.hbm %s2722_s26, %s2704_s23  ;;  %p2733_p2 = scmp.lt.s32.totalorder %s2722_s26, %s5291_s2 }
 0x363   : > { %p2729_p12 = scmp.ne.s32.totalorder %s2722_s26, %s2728_s20  ;;  %p2734_p3 = scmp.lt.s32.totalorder %s2732_s25, %s2728_s20 }
 0x365   : > { %p2730_p0 = pnand %p2729_p12, %p5235_p11  ;;  %p2735_p4 = por %p2734_p3, %p2733_p2 }
 0x367   : > { %p2731_p1 = pneg %p2730_p0 }
 0x369   : > { %p2736_p6 = pnand %p2735_p4, %p2731_p1 }
 0x36b   : > { %2739 = shalt.err (!%p2736_p6)
}
 0x36c   : > { %s2785_s5 = smov 1024   ;;  %s2786_s8 = smov 64  }
 0x36d   : > { %2522 = dma.vmem_to_hbm [thread:$0]  (%p5235_p11), %s5245_s29, %s2607_s3, %s5247_s10, %s2493_s30, %s2785_s5, %s2785_s5, %s2786_s8  }
 0x36e PF: > { %s2531_s9 = sand.u32 1, %s2767_s11   ;;  %p5298_p9 = scmp.ge.s32.totalorder %s2779_s14, 2 }
 0x36f   : > { %s2532_s17 = scalar_lea.sflag [#allocation5], %s2531_s9 }
 0x370   : > { %p2623_p13 = pnand %p5298_p9, %p2853_p10 }
 0x372   : > { %p2624_p5 = pneg %p2623_p13 }
 0x374   : > { %2762 = dma.done.wait (%p2624_p5), %s2532_s17, 98304  }
 0x375   : > { %2764 = vsyncadd (%p2624_p5), %s2532_s17, 4294868992  ;;  %p16_p7 = scmp.ge.s32.totalorder %s2830_s16, 4   ;;  %s5299_s11 = smov %s2771_s12 }
 0x376   : > { %s5300_s12 = smov %s2775_s13  ;;  %s5301_s13 = smov %s2842_s19 }
 0x377   : > { %s5302_s14 = smov %s2830_s16  ;;  %18 = sbr.rel (!%p16_p7) target bundleno = 7 (0x7), region = 73 }
 0x37c   :  { %2538 = vsyncpa [#allocation4], 1 }
 0x37d   :  { %2540 = vsyncpa [#allocation4 + $0x1], 1 }
 0x37e   :  { %2541 = vsyncpa [#allocation5], 1 }
 0x37f   :  { %2543 = vsyncpa [#allocation5 + $0x1], 1 }

</bundles_post_ra>
